<compile_context>
chip_gen: v6e
topology: v6e:2x2x1
jax: 0.10.0
libtpu: 0.0.40
codegen_flags: <defaults>
</compile_context>

<pallas_src>
import functools

import jax
import jax.numpy as jnp
from jax.experimental import pallas as pl
from jax.experimental.pallas import tpu as pltpu


# ----------------------------------------------------------------------------
# Fused forward kernel (single invocation, everything VMEM-resident)
# ----------------------------------------------------------------------------
def _snmpnet_kernel(
    cols_ref,                   # (B*HW, Cp)       stem im2col patches, bf16, zero-padded K
    w_stem_ref, b_stem_ref,     # (Cp, Cp) bf16, (1, Cp) f32
    w_c1d_ref, b_c1d_ref,       # (Cp, 2*Cp) bf16, (1, 2*Cp) f32  merged [down | conv1]
    w_c2_ref, b_c2_ref,         # (9*Cp, Cp) bf16, (1, Cp) f32
    w_c3_ref, b_c3_ref,         # (Cp, Cp) bf16, (1, Cp) f32
    w_se1_ref, b_se1_ref,       # (Cp, Cp) bf16, (1, Cp) f32
    w_se2_ref, b_se2_ref,       # (Cp, Cp) bf16, (1, Cp) f32
    w_attn_ref, b_attn_ref,     # (1, 1, Cp) f32, (1, 1, 1) f32
    w_ratio_ref, b_ratio_ref,   # (Cp, Cp) bf16, (1, Cp) f32
    mix_ref,                    # out: (B, Cp) f32   (sliced to num_tr in wrapper)
    feat_ref,                   # out: (B, Cp) f32   (sliced to c_feat in wrapper)
    pad_ref,                    # scratch: (B, Ho+2, Wo+2, Cp) f32   zero-padded feature map
    col9_ref,                   # scratch: (B*HW, 9*Cp) bf16         in-VMEM im2col buffer
    *, B, Ho, Wo, Cp,
):
    HW = Ho * Wo
    f32 = jnp.float32
    bf16 = jnp.bfloat16

    # --- stem conv (matmul on pre-extracted patches), BN-folded bias, ReLU ---
    stem = jnp.dot(cols_ref[...], w_stem_ref[...], preferred_element_type=f32)
    stem = jnp.maximum(stem + b_stem_ref[...], 0.0)                  # (B*HW, Cp) f32

    # --- merged 1x1 convs [downsample | conv1]: residual slice starts at lane 0,
    #     conv1 slice starts at lane Cp -> both slices tile-aligned ---
    yr = (jnp.dot(stem.astype(bf16), w_c1d_ref[...], preferred_element_type=f32)
          + b_c1d_ref[...])                                          # (B*HW, 2*Cp)
    res = yr[:, :Cp]                                                 # (B*HW, Cp)
    y1 = jnp.maximum(yr[:, Cp:], 0.0)                                # (B*HW, Cp)

    # --- 3x3 conv (stride 1, pad 1) fully in VMEM:
    #     lane-dense zero-padded scratch -> 9 lane-tile-aligned im2col stores
    #     -> ONE K=9*Cp MXU dot (no per-tap drains / VPU accumulation) ---
    pad_ref[...] = jnp.zeros((B, Ho + 2, Wo + 2, Cp), f32)
    pad_ref[:, 1:1 + Ho, 1:1 + Wo, :] = y1.reshape(B, Ho, Wo, Cp)
    for di in range(3):
        for dj in range(3):
            k = di * 3 + dj
            win = pad_ref[:, di:di + Ho, dj:dj + Wo, :]              # (B, Ho, Wo, Cp)
            col9_ref[:, k * Cp:(k + 1) * Cp] = win.reshape(B * HW, Cp).astype(bf16)
    y2 = jnp.dot(col9_ref[...], w_c2_ref[...], preferred_element_type=f32)
    y2 = jnp.maximum(y2 + b_c2_ref[...], 0.0)                        # (B*HW, Cp)

    # --- 1x1 conv3 (no activation before the residual add) ---
    y3 = (jnp.dot(y2.astype(bf16), w_c3_ref[...], preferred_element_type=f32)
          + b_c3_ref[...])
    y3 = y3.reshape(B, HW, Cp)
    res = res.reshape(B, HW, Cp)

    # --- SE gate (squeeze/excite batched over B) + residual + ReLU ---
    s = jnp.mean(y3, axis=1)                                         # (B, Cp)
    z = jnp.maximum(
        jnp.dot(s.astype(bf16), w_se1_ref[...], preferred_element_type=f32)
        + b_se1_ref[...], 0.0)
    g = jax.nn.sigmoid(
        jnp.dot(z.astype(bf16), w_se2_ref[...], preferred_element_type=f32)
        + b_se2_ref[...])
    feats = jnp.maximum(y3 * g[:, None, :] + res, 0.0)               # (B, HW, Cp)

    # --- SoftAttention (spatial softmax gate) fused with global avg pool ---
    logits = jnp.sum(feats * w_attn_ref[...], axis=-1, keepdims=True) + b_attn_ref[...]
    m = jnp.max(logits, axis=1, keepdims=True)
    e = jnp.exp(logits - m)
    attn = e / jnp.sum(e, axis=1, keepdims=True)                     # exact softmax
    # mean(f + f*attn) == mean(f * (1 + attn)): single pass, one reduction
    pooled = jnp.mean(feats * (1.0 + attn), axis=1)                  # (B, Cp)
    feat_ref[...] = pooled

    # --- ratio predictor head ---
    mix_ref[...] = (jnp.dot(pooled.astype(bf16), w_ratio_ref[...],
                            preferred_element_type=f32) + b_ratio_ref[...])


# ----------------------------------------------------------------------------
# Plain-JAX glue: stem patch extraction (layout only, feeds the fused kernel)
# ----------------------------------------------------------------------------
def im2col(x, ksize, stride, pad):
    """x: (B, H, W, C) NHWC -> (B, Ho, Wo, ksize*ksize*C), plus (Ho, Wo)."""
    B, H, W, C = x.shape
    xp = jnp.pad(x, ((0, 0), (pad, pad), (pad, pad), (0, 0)))
    Ho = (H + 2 * pad - ksize) // stride + 1
    Wo = (W + 2 * pad - ksize) // stride + 1
    cols = []
    for di in range(ksize):
        for dj in range(ksize):
            cols.append(xp[:, di:di + stride * Ho:stride, dj:dj + stride * Wo:stride, :])
    return jnp.concatenate(cols, axis=-1), Ho, Wo


def _pad2d(a, rows, cols):
    """Zero-pad a 2-D array up to (rows, cols)."""
    r, c = a.shape
    return jnp.zeros((rows, cols), a.dtype).at[:r, :c].set(a)


def _pad_bias(b, cols):
    """Zero-pad a 1-D bias up to (1, cols) f32."""
    return jnp.zeros((1, cols), jnp.float32).at[0, :b.shape[0]].set(b.astype(jnp.float32))


# ----------------------------------------------------------------------------
# SnMpNet forward: one fused pallas_call
# ----------------------------------------------------------------------------
def snmpnet_forward(x_nchw, p):
    f32 = jnp.float32
    bf16 = jnp.bfloat16
    Cp = 128                                                         # lane-dense width

    x = jnp.transpose(x_nchw, (0, 2, 3, 1)).astype(f32)              # -> NHWC
    B, _, _, c_in = x.shape

    cols, Ho, Wo = im2col(x, ksize=3, stride=2, pad=1)               # (B, 8, 8, 9*c_in)
    HW = Ho * Wo
    k_stem = 9 * c_in

    c_stem = p["w_stem"].shape[1]
    c_mid = p["w_c1"].shape[1]
    c_feat = p["w_c3"].shape[1]
    num_tr = p["w_ratio"].shape[1]

    # --- lane-dense, zero-padded operands (exact no-op numerically) ---
    cols_p = _pad2d(cols.reshape(B * HW, k_stem), B * HW, Cp).astype(bf16)
    w_stem_p = _pad2d(p["w_stem"], Cp, Cp).astype(bf16)
    b_stem_p = _pad_bias(p["b_stem"], Cp)

    # merged [downsample | conv1]: wide residual slice lands at lane 0
    w_c1d_p = jnp.concatenate(
        [_pad2d(p["w_down"], Cp, Cp), _pad2d(p["w_c1"], Cp, Cp)], axis=1).astype(bf16)
    b_c1d_p = jnp.concatenate(
        [_pad_bias(p["b_down"], Cp), _pad_bias(p["b_c1"], Cp)], axis=1)

    # 3x3 conv weight: per-tap (c_mid, c_mid) blocks dropped into (9*Cp, Cp)
    w_c2_blk = p["w_c2"].reshape(9, c_mid, c_mid)
    w_c2_p = (jnp.zeros((9, Cp, Cp), f32).at[:, :c_mid, :c_mid].set(w_c2_blk)
              .reshape(9 * Cp, Cp).astype(bf16))
    b_c2_p = _pad_bias(p["b_c2"], Cp)

    w_c3_p = _pad2d(p["w_c3"], Cp, Cp).astype(bf16)
    b_c3_p = _pad_bias(p["b_c3"], Cp)
    w_se1_p = _pad2d(p["w_se1"], Cp, Cp).astype(bf16)
    b_se1_p = _pad_bias(p["b_se1"], Cp)
    w_se2_p = _pad2d(p["w_se2"], Cp, Cp).astype(bf16)
    b_se2_p = _pad_bias(p["b_se2"], Cp)
    w_attn_p = (jnp.zeros((1, 1, Cp), f32)
                .at[0, 0, :c_feat].set(p["w_attn"][:, 0].astype(f32)))
    b_attn_p = p["b_attn"].reshape(1, 1, 1).astype(f32)
    w_ratio_p = _pad2d(p["w_ratio"], Cp, Cp).astype(bf16)
    b_ratio_p = _pad_bias(p["b_ratio"], Cp)

    args = (
        cols_p,
        w_stem_p, b_stem_p,
        w_c1d_p, b_c1d_p,
        w_c2_p, b_c2_p,
        w_c3_p, b_c3_p,
        w_se1_p, b_se1_p,
        w_se2_p, b_se2_p,
        w_attn_p, b_attn_p,
        w_ratio_p, b_ratio_p,
    )

    kernel = functools.partial(_snmpnet_kernel, B=B, Ho=Ho, Wo=Wo, Cp=Cp)

    # Advisory cost estimate so XLA can overlap wrapper-side layout work.
    M = B * HW
    flops = (2 * M * Cp * Cp            # stem
             + 2 * M * Cp * (2 * Cp)    # merged conv1|downsample
             + 2 * M * (9 * Cp) * Cp    # 3x3 conv (single im2col dot)
             + 2 * M * Cp * Cp          # conv3
             + 3 * 2 * B * Cp * Cp      # se1, se2, ratio head
             + 16 * M * Cp)             # elementwise (bias/relu/SE/attn/pool)
    transcendentals = 3 * B * Cp + 2 * B * HW
    bytes_accessed = (sum(int(a.size) * a.dtype.itemsize for a in args)
                      + 2 * B * Cp * 4)

    vmem = pl.BlockSpec(memory_space=pltpu.MemorySpace.VMEM)
    mix_p, feat_p = pl.pallas_call(
        kernel,
        out_shape=(jax.ShapeDtypeStruct((B, Cp), f32),
                   jax.ShapeDtypeStruct((B, Cp), f32)),
        in_specs=[vmem] * len(args),
        out_specs=(vmem, vmem),
        scratch_shapes=[
            pltpu.VMEM((B, Ho + 2, Wo + 2, Cp), f32),   # zero-padded feature map
            pltpu.VMEM((B * HW, 9 * Cp), bf16),         # im2col buffer for the 3x3 conv
        ],
        compiler_params=pltpu.CompilerParams(vmem_limit_bytes=32 * 1024 * 1024),
        cost_estimate=pl.CostEstimate(flops=int(flops),
                                      transcendentals=int(transcendentals),
                                      bytes_accessed=int(bytes_accessed)),
    )(*args)

    # Strip the lane padding back off (layout plumbing only).
    return mix_p[:, :num_tr], feat_p[:, :c_feat]


# ----------------------------------------------------------------------------
# Deterministic synthetic parameters (reduced-scale SE-ResNet backbone + heads)
# ----------------------------------------------------------------------------
def init_params(key, c_in=3, c_stem=16, c_mid=8, c_feat=64, c_se=4, num_tr_classes=16):
    ks = jax.random.split(key, 20)
    f32 = jnp.float32

    def w(k, shape, scale=0.1):
        return (scale * jax.random.normal(k, shape)).astype(f32)

    return {
        "w_stem": w(ks[0], (9 * c_in, c_stem)),  "b_stem": w(ks[1], (c_stem,)),
        "w_c1":   w(ks[2], (c_stem, c_mid)),     "b_c1":   w(ks[3], (c_mid,)),
        "w_c2":   w(ks[4], (9 * c_mid, c_mid)),  "b_c2":   w(ks[5], (c_mid,)),
        "w_c3":   w(ks[6], (c_mid, c_feat)),     "b_c3":   w(ks[7], (c_feat,)),
        "w_down": w(ks[8], (c_stem, c_feat)),    "b_down": w(ks[9], (c_feat,)),
        "w_se1":  w(ks[10], (c_feat, c_se)),     "b_se1":  w(ks[11], (c_se,)),
        "w_se2":  w(ks[12], (c_se, c_feat)),     "b_se2":  w(ks[13], (c_feat,)),
        "w_attn": w(ks[14], (c_feat, 1)),        "b_attn": w(ks[15], (1,)),
        "w_ratio": w(ks[16], (c_feat, num_tr_classes)), "b_ratio": w(ks[17], (num_tr_classes,)),
    }


if __name__ == "__main__":
    key = jax.random.PRNGKey(0)
    k_param, k_x = jax.random.split(key)

    params = init_params(k_param)
    x = jax.random.normal(k_x, (2, 3, 16, 16), dtype=jnp.float32)    # NCHW, like PyTorch

    fwd = jax.jit(snmpnet_forward)
    mixup_ratio, feat_final = fwd(x, params)
    jax.block_until_ready((mixup_ratio, feat_final))

    assert mixup_ratio.shape == (2, 16), mixup_ratio.shape
    assert feat_final.shape == (2, 64), feat_final.shape
    assert bool(jnp.all(jnp.isfinite(mixup_ratio))) and bool(jnp.all(jnp.isfinite(feat_final)))

    print("KERNEL_OK")
</pallas_src>

<mosaic_0001>
module attributes {stable_mosaic.version = 11 : i64} {
  func.func @_snmpnet_kernel(%arg0: memref<128x128xbf16, #tpu.memory_space<vmem>>, %arg1: memref<128x128xbf16, #tpu.memory_space<vmem>>, %arg2: memref<1x128xf32, #tpu.memory_space<vmem>>, %arg3: memref<128x256xbf16, #tpu.memory_space<vmem>>, %arg4: memref<1x256xf32, #tpu.memory_space<vmem>>, %arg5: memref<1152x128xbf16, #tpu.memory_space<vmem>>, %arg6: memref<1x128xf32, #tpu.memory_space<vmem>>, %arg7: memref<128x128xbf16, #tpu.memory_space<vmem>>, %arg8: memref<1x128xf32, #tpu.memory_space<vmem>>, %arg9: memref<128x128xbf16, #tpu.memory_space<vmem>>, %arg10: memref<1x128xf32, #tpu.memory_space<vmem>>, %arg11: memref<128x128xbf16, #tpu.memory_space<vmem>>, %arg12: memref<1x128xf32, #tpu.memory_space<vmem>>, %arg13: memref<1x1x128xf32, #tpu.memory_space<vmem>>, %arg14: memref<1x1x1xf32, #tpu.memory_space<vmem>>, %arg15: memref<128x128xbf16, #tpu.memory_space<vmem>>, %arg16: memref<1x128xf32, #tpu.memory_space<vmem>>, %arg17: memref<2x128xf32, #tpu.memory_space<vmem>>, %arg18: memref<2x128xf32, #tpu.memory_space<vmem>>, %arg19: memref<2x10x10x128xf32, #tpu.memory_space<vmem>>, %arg20: memref<128x1152xbf16, #tpu.memory_space<vmem>>) attributes {dimension_semantics = [], scalar_prefetch = 0 : i64, scratch_operands = 2 : i64, tpu.core_type = #tpu.core_type<tc>} {
    %c0 = arith.constant 0 : index
    %c0_0 = arith.constant 0 : index
    %0 = vector.load %arg0[%c0, %c0_0] : memref<128x128xbf16, #tpu.memory_space<vmem>>, vector<128x128xbf16>
    %c0_1 = arith.constant 0 : index
    %c0_2 = arith.constant 0 : index
    %1 = vector.load %arg1[%c0_1, %c0_2] : memref<128x128xbf16, #tpu.memory_space<vmem>>, vector<128x128xbf16>
    %cst = arith.constant dense<0.000000e+00> : vector<128x128xf32>
    %2 = tpu.matmul %0, %1, %cst {dimension_numbers = #tpu.dot_dimension_numbers<[1], [0], [0], [1], [0, 0, 1, 1], [], []>} : vector<128x128xbf16>, vector<128x128xbf16>, vector<128x128xf32> -> vector<128x128xf32>
    %c0_3 = arith.constant 0 : index
    %c0_4 = arith.constant 0 : index
    %3 = vector.load %arg2[%c0_3, %c0_4] : memref<1x128xf32, #tpu.memory_space<vmem>>, vector<1x128xf32>
    %4 = vector.broadcast %3 : vector<1x128xf32> to vector<128x128xf32>
    %5 = arith.addf %2, %4 : vector<128x128xf32>
    %cst_5 = arith.constant 0.000000e+00 : f32
    %6 = vector.broadcast %cst_5 : f32 to vector<128x128xf32>
    %7 = arith.maximumf %5, %6 : vector<128x128xf32>
    %8 = arith.truncf %7 : vector<128x128xf32> to vector<128x128xbf16>
    %c0_6 = arith.constant 0 : index
    %c0_7 = arith.constant 0 : index
    %9 = vector.load %arg3[%c0_6, %c0_7] : memref<128x256xbf16, #tpu.memory_space<vmem>>, vector<128x256xbf16>
    %cst_8 = arith.constant dense<0.000000e+00> : vector<128x256xf32>
    %10 = tpu.matmul %8, %9, %cst_8 {dimension_numbers = #tpu.dot_dimension_numbers<[1], [0], [0], [1], [0, 0, 1, 1], [], []>} : vector<128x128xbf16>, vector<128x256xbf16>, vector<128x256xf32> -> vector<128x256xf32>
    %c0_9 = arith.constant 0 : index
    %c0_10 = arith.constant 0 : index
    %11 = vector.load %arg4[%c0_9, %c0_10] : memref<1x256xf32, #tpu.memory_space<vmem>>, vector<1x256xf32>
    %12 = vector.broadcast %11 : vector<1x256xf32> to vector<128x256xf32>
    %13 = arith.addf %10, %12 : vector<128x256xf32>
    %14 = vector.extract_strided_slice %13 {offsets = [0, 0], sizes = [128, 128], strides = [1, 1]} : vector<128x256xf32> to vector<128x128xf32>
    %15 = vector.extract_strided_slice %13 {offsets = [0, 128], sizes = [128, 128], strides = [1, 1]} : vector<128x256xf32> to vector<128x128xf32>
    %cst_11 = arith.constant 0.000000e+00 : f32
    %16 = vector.broadcast %cst_11 : f32 to vector<128x128xf32>
    %17 = arith.maximumf %15, %16 : vector<128x128xf32>
    %cst_12 = arith.constant 0.000000e+00 : f32
    %18 = vector.broadcast %cst_12 : f32 to vector<2x10x10x128xf32>
    %c0_13 = arith.constant 0 : index
    %c0_14 = arith.constant 0 : index
    %c0_15 = arith.constant 0 : index
    %c0_16 = arith.constant 0 : index
    %19 = vector.load %arg19[%c0_13, %c0_14, %c0_15, %c0_16] : memref<2x10x10x128xf32, #tpu.memory_space<vmem>>, vector<2x10x10x128xf32>
    tpu.vector_store %arg19[%c0_13, %c0_14, %c0_15, %c0_16], %18 {strides = array<i32>} : memref<2x10x10x128xf32, #tpu.memory_space<vmem>>, vector<2x10x10x128xf32>,
    %20 = vector.shape_cast %17 : vector<128x128xf32> to vector<2x8x8x128xf32>
    %c0_17 = arith.constant 0 : index
    %c1 = arith.constant 1 : index
    %c1_18 = arith.constant 1 : index
    %c0_19 = arith.constant 0 : index
    %21 = vector.load %arg19[%c0_17, %c1, %c1_18, %c0_19] : memref<2x10x10x128xf32, #tpu.memory_space<vmem>>, vector<2x8x8x128xf32>
    tpu.vector_store %arg19[%c0_17, %c1, %c1_18, %c0_19], %20 {strides = array<i32>} : memref<2x10x10x128xf32, #tpu.memory_space<vmem>>, vector<2x8x8x128xf32>,
    %c0_20 = arith.constant 0 : index
    %c0_21 = arith.constant 0 : index
    %c0_22 = arith.constant 0 : index
    %c0_23 = arith.constant 0 : index
    %22 = vector.load %arg19[%c0_20, %c0_21, %c0_22, %c0_23] : memref<2x10x10x128xf32, #tpu.memory_space<vmem>>, vector<2x8x8x128xf32>
    %23 = vector.shape_cast %22 : vector<2x8x8x128xf32> to vector<128x128xf32>
    %24 = arith.truncf %23 : vector<128x128xf32> to vector<128x128xbf16>
    %c0_24 = arith.constant 0 : index
    %c0_25 = arith.constant 0 : index
    %25 = vector.load %arg20[%c0_24, %c0_25] : memref<128x1152xbf16, #tpu.memory_space<vmem>>, vector<128x128xbf16>
    tpu.vector_store %arg20[%c0_24, %c0_25], %24 {strides = array<i32>} : memref<128x1152xbf16, #tpu.memory_space<vmem>>, vector<128x128xbf16>,
    %c0_26 = arith.constant 0 : index
    %c0_27 = arith.constant 0 : index
    %c1_28 = arith.constant 1 : index
    %c0_29 = arith.constant 0 : index
    %26 = vector.load %arg19[%c0_26, %c0_27, %c1_28, %c0_29] : memref<2x10x10x128xf32, #tpu.memory_space<vmem>>, vector<2x8x8x128xf32>
    %27 = vector.shape_cast %26 : vector<2x8x8x128xf32> to vector<128x128xf32>
    %28 = arith.truncf %27 : vector<128x128xf32> to vector<128x128xbf16>
    %c0_30 = arith.constant 0 : index
    %c128 = arith.constant 128 : index
    %29 = vector.load %arg20[%c0_30, %c128] : memref<128x1152xbf16, #tpu.memory_space<vmem>>, vector<128x128xbf16>
    tpu.vector_store %arg20[%c0_30, %c128], %28 {strides = array<i32>} : memref<128x1152xbf16, #tpu.memory_space<vmem>>, vector<128x128xbf16>,
    %c0_31 = arith.constant 0 : index
    %c0_32 = arith.constant 0 : index
    %c2 = arith.constant 2 : index
    %c0_33 = arith.constant 0 : index
    %30 = vector.load %arg19[%c0_31, %c0_32, %c2, %c0_33] : memref<2x10x10x128xf32, #tpu.memory_space<vmem>>, vector<2x8x8x128xf32>
    %31 = vector.shape_cast %30 : vector<2x8x8x128xf32> to vector<128x128xf32>
    %32 = arith.truncf %31 : vector<128x128xf32> to vector<128x128xbf16>
    %c0_34 = arith.constant 0 : index
    %c256 = arith.constant 256 : index
    %33 = vector.load %arg20[%c0_34, %c256] : memref<128x1152xbf16, #tpu.memory_space<vmem>>, vector<128x128xbf16>
    tpu.vector_store %arg20[%c0_34, %c256], %32 {strides = array<i32>} : memref<128x1152xbf16, #tpu.memory_space<vmem>>, vector<128x128xbf16>,
    %c0_35 = arith.constant 0 : index
    %c1_36 = arith.constant 1 : index
    %c0_37 = arith.constant 0 : index
    %c0_38 = arith.constant 0 : index
    %34 = vector.load %arg19[%c0_35, %c1_36, %c0_37, %c0_38] : memref<2x10x10x128xf32, #tpu.memory_space<vmem>>, vector<2x8x8x128xf32>
    %35 = vector.shape_cast %34 : vector<2x8x8x128xf32> to vector<128x128xf32>
    %36 = arith.truncf %35 : vector<128x128xf32> to vector<128x128xbf16>
    %c0_39 = arith.constant 0 : index
    %c384 = arith.constant 384 : index
    %37 = vector.load %arg20[%c0_39, %c384] : memref<128x1152xbf16, #tpu.memory_space<vmem>>, vector<128x128xbf16>
    tpu.vector_store %arg20[%c0_39, %c384], %36 {strides = array<i32>} : memref<128x1152xbf16, #tpu.memory_space<vmem>>, vector<128x128xbf16>,
    %c0_40 = arith.constant 0 : index
    %c1_41 = arith.constant 1 : index
    %c1_42 = arith.constant 1 : index
    %c0_43 = arith.constant 0 : index
    %38 = vector.load %arg19[%c0_40, %c1_41, %c1_42, %c0_43] : memref<2x10x10x128xf32, #tpu.memory_space<vmem>>, vector<2x8x8x128xf32>
    %39 = vector.shape_cast %38 : vector<2x8x8x128xf32> to vector<128x128xf32>
    %40 = arith.truncf %39 : vector<128x128xf32> to vector<128x128xbf16>
    %c0_44 = arith.constant 0 : index
    %c512 = arith.constant 512 : index
    %41 = vector.load %arg20[%c0_44, %c512] : memref<128x1152xbf16, #tpu.memory_space<vmem>>, vector<128x128xbf16>
    tpu.vector_store %arg20[%c0_44, %c512], %40 {strides = array<i32>} : memref<128x1152xbf16, #tpu.memory_space<vmem>>, vector<128x128xbf16>,
    %c0_45 = arith.constant 0 : index
    %c1_46 = arith.constant 1 : index
    %c2_47 = arith.constant 2 : index
    %c0_48 = arith.constant 0 : index
    %42 = vector.load %arg19[%c0_45, %c1_46, %c2_47, %c0_48] : memref<2x10x10x128xf32, #tpu.memory_space<vmem>>, vector<2x8x8x128xf32>
    %43 = vector.shape_cast %42 : vector<2x8x8x128xf32> to vector<128x128xf32>
    %44 = arith.truncf %43 : vector<128x128xf32> to vector<128x128xbf16>
    %c0_49 = arith.constant 0 : index
    %c640 = arith.constant 640 : index
    %45 = vector.load %arg20[%c0_49, %c640] : memref<128x1152xbf16, #tpu.memory_space<vmem>>, vector<128x128xbf16>
    tpu.vector_store %arg20[%c0_49, %c640], %44 {strides = array<i32>} : memref<128x1152xbf16, #tpu.memory_space<vmem>>, vector<128x128xbf16>,
    %c0_50 = arith.constant 0 : index
    %c2_51 = arith.constant 2 : index
    %c0_52 = arith.constant 0 : index
    %c0_53 = arith.constant 0 : index
    %46 = vector.load %arg19[%c0_50, %c2_51, %c0_52, %c0_53] : memref<2x10x10x128xf32, #tpu.memory_space<vmem>>, vector<2x8x8x128xf32>
    %47 = vector.shape_cast %46 : vector<2x8x8x128xf32> to vector<128x128xf32>
    %48 = arith.truncf %47 : vector<128x128xf32> to vector<128x128xbf16>
    %c0_54 = arith.constant 0 : index
    %c768 = arith.constant 768 : index
    %49 = vector.load %arg20[%c0_54, %c768] : memref<128x1152xbf16, #tpu.memory_space<vmem>>, vector<128x128xbf16>
    tpu.vector_store %arg20[%c0_54, %c768], %48 {strides = array<i32>} : memref<128x1152xbf16, #tpu.memory_space<vmem>>, vector<128x128xbf16>,
    %c0_55 = arith.constant 0 : index
    %c2_56 = arith.constant 2 : index
    %c1_57 = arith.constant 1 : index
    %c0_58 = arith.constant 0 : index
    %50 = vector.load %arg19[%c0_55, %c2_56, %c1_57, %c0_58] : memref<2x10x10x128xf32, #tpu.memory_space<vmem>>, vector<2x8x8x128xf32>
    %51 = vector.shape_cast %50 : vector<2x8x8x128xf32> to vector<128x128xf32>
    %52 = arith.truncf %51 : vector<128x128xf32> to vector<128x128xbf16>
    %c0_59 = arith.constant 0 : index
    %c896 = arith.constant 896 : index
    %53 = vector.load %arg20[%c0_59, %c896] : memref<128x1152xbf16, #tpu.memory_space<vmem>>, vector<128x128xbf16>
    tpu.vector_store %arg20[%c0_59, %c896], %52 {strides = array<i32>} : memref<128x1152xbf16, #tpu.memory_space<vmem>>, vector<128x128xbf16>,
    %c0_60 = arith.constant 0 : index
    %c2_61 = arith.constant 2 : index
    %c2_62 = arith.constant 2 : index
    %c0_63 = arith.constant 0 : index
    %54 = vector.load %arg19[%c0_60, %c2_61, %c2_62, %c0_63] : memref<2x10x10x128xf32, #tpu.memory_space<vmem>>, vector<2x8x8x128xf32>
    %55 = vector.shape_cast %54 : vector<2x8x8x128xf32> to vector<128x128xf32>
    %56 = arith.truncf %55 : vector<128x128xf32> to vector<128x128xbf16>
    %c0_64 = arith.constant 0 : index
    %c1024 = arith.constant 1024 : index
    %57 = vector.load %arg20[%c0_64, %c1024] : memref<128x1152xbf16, #tpu.memory_space<vmem>>, vector<128x128xbf16>
    tpu.vector_store %arg20[%c0_64, %c1024], %56 {strides = array<i32>} : memref<128x1152xbf16, #tpu.memory_space<vmem>>, vector<128x128xbf16>,
    %c0_65 = arith.constant 0 : index
    %c0_66 = arith.constant 0 : index
    %58 = vector.load %arg20[%c0_65, %c0_66] : memref<128x1152xbf16, #tpu.memory_space<vmem>>, vector<128x1152xbf16>
    %c0_67 = arith.constant 0 : index
    %c0_68 = arith.constant 0 : index
    %59 = vector.load %arg5[%c0_67, %c0_68] : memref<1152x128xbf16, #tpu.memory_space<vmem>>, vector<1152x128xbf16>
    %cst_69 = arith.constant dense<0.000000e+00> : vector<128x128xf32>
    %60 = tpu.matmul %58, %59, %cst_69 {dimension_numbers = #tpu.dot_dimension_numbers<[1], [0], [0], [1], [0, 0, 1, 1], [], []>} : vector<128x1152xbf16>, vector<1152x128xbf16>, vector<128x128xf32> -> vector<128x128xf32>
    %c0_70 = arith.constant 0 : index
    %c0_71 = arith.constant 0 : index
    %61 = vector.load %arg6[%c0_70, %c0_71] : memref<1x128xf32, #tpu.memory_space<vmem>>, vector<1x128xf32>
    %62 = vector.broadcast %61 : vector<1x128xf32> to vector<128x128xf32>
    %63 = arith.addf %60, %62 : vector<128x128xf32>
    %cst_72 = arith.constant 0.000000e+00 : f32
    %64 = vector.broadcast %cst_72 : f32 to vector<128x128xf32>
    %65 = arith.maximumf %63, %64 : vector<128x128xf32>
    %66 = arith.truncf %65 : vector<128x128xf32> to vector<128x128xbf16>
    %c0_73 = arith.constant 0 : index
    %c0_74 = arith.constant 0 : index
    %67 = vector.load %arg7[%c0_73, %c0_74] : memref<128x128xbf16, #tpu.memory_space<vmem>>, vector<128x128xbf16>
    %cst_75 = arith.constant dense<0.000000e+00> : vector<128x128xf32>
    %68 = tpu.matmul %66, %67, %cst_75 {dimension_numbers = #tpu.dot_dimension_numbers<[1], [0], [0], [1], [0, 0, 1, 1], [], []>} : vector<128x128xbf16>, vector<128x128xbf16>, vector<128x128xf32> -> vector<128x128xf32>
    %c0_76 = arith.constant 0 : index
    %c0_77 = arith.constant 0 : index
    %69 = vector.load %arg8[%c0_76, %c0_77] : memref<1x128xf32, #tpu.memory_space<vmem>>, vector<1x128xf32>
    %70 = vector.broadcast %69 : vector<1x128xf32> to vector<128x128xf32>
    %71 = arith.addf %68, %70 : vector<128x128xf32>
    %72 = vector.shape_cast %71 : vector<128x128xf32> to vector<2x64x128xf32>
    %73 = vector.shape_cast %14 : vector<128x128xf32> to vector<2x64x128xf32>
    %cst_78 = arith.constant dense<0.000000e+00> : vector<2x128xf32>
    %74 = vector.multi_reduction <add>, %72, %cst_78 [1] : vector<2x64x128xf32> to vector<2x128xf32>
    %cst_79 = arith.constant 6.400000e+01 : f32
    %75 = vector.broadcast %cst_79 : f32 to vector<2x128xf32>
    %76 = arith.divf %74, %75 : vector<2x128xf32>
    %77 = arith.truncf %76 : vector<2x128xf32> to vector<2x128xbf16>
    %c0_80 = arith.constant 0 : index
    %c0_81 = arith.constant 0 : index
    %78 = vector.load %arg9[%c0_80, %c0_81] : memref<128x128xbf16, #tpu.memory_space<vmem>>, vector<128x128xbf16>
    %cst_82 = arith.constant dense<0.000000e+00> : vector<2x128xf32>
    %79 = tpu.matmul %77, %78, %cst_82 {dimension_numbers = #tpu.dot_dimension_numbers<[1], [0], [0], [1], [0, 0, 1, 1], [], []>} : vector<2x128xbf16>, vector<128x128xbf16>, vector<2x128xf32> -> vector<2x128xf32>
    %c0_83 = arith.constant 0 : index
    %c0_84 = arith.constant 0 : index
    %80 = vector.load %arg10[%c0_83, %c0_84] : memref<1x128xf32, #tpu.memory_space<vmem>>, vector<1x128xf32>
    %81 = vector.broadcast %80 : vector<1x128xf32> to vector<2x128xf32>
    %82 = arith.addf %79, %81 : vector<2x128xf32>
    %cst_85 = arith.constant 0.000000e+00 : f32
    %83 = vector.broadcast %cst_85 : f32 to vector<2x128xf32>
    %84 = arith.maximumf %82, %83 : vector<2x128xf32>
    %85 = arith.truncf %84 : vector<2x128xf32> to vector<2x128xbf16>
    %c0_86 = arith.constant 0 : index
    %c0_87 = arith.constant 0 : index
    %86 = vector.load %arg11[%c0_86, %c0_87] : memref<128x128xbf16, #tpu.memory_space<vmem>>, vector<128x128xbf16>
    %cst_88 = arith.constant dense<0.000000e+00> : vector<2x128xf32>
    %87 = tpu.matmul %85, %86, %cst_88 {dimension_numbers = #tpu.dot_dimension_numbers<[1], [0], [0], [1], [0, 0, 1, 1], [], []>} : vector<2x128xbf16>, vector<128x128xbf16>, vector<2x128xf32> -> vector<2x128xf32>
    %c0_89 = arith.constant 0 : index
    %c0_90 = arith.constant 0 : index
    %88 = vector.load %arg12[%c0_89, %c0_90] : memref<1x128xf32, #tpu.memory_space<vmem>>, vector<1x128xf32>
    %89 = vector.broadcast %88 : vector<1x128xf32> to vector<2x128xf32>
    %90 = arith.addf %87, %89 : vector<2x128xf32>
    %91 = arith.negf %90 : vector<2x128xf32>
    %92 = math.exp %91 : vector<2x128xf32>
    %cst_91 = arith.constant 1.000000e+00 : f32
    %93 = vector.broadcast %cst_91 : f32 to vector<2x128xf32>
    %94 = arith.addf %93, %92 : vector<2x128xf32>
    %95 = arith.divf %93, %94 : vector<2x128xf32>
    %96 = vector.shape_cast %95 : vector<2x128xf32> to vector<2x1x128xf32>
    %97 = vector.broadcast %96 : vector<2x1x128xf32> to vector<2x64x128xf32>
    %98 = arith.mulf %72, %97 : vector<2x64x128xf32>
    %99 = arith.addf %98, %73 : vector<2x64x128xf32>
    %cst_92 = arith.constant 0.000000e+00 : f32
    %100 = vector.broadcast %cst_92 : f32 to vector<2x64x128xf32>
    %101 = arith.maximumf %99, %100 : vector<2x64x128xf32>
    %c0_93 = arith.constant 0 : index
    %c0_94 = arith.constant 0 : index
    %c0_95 = arith.constant 0 : index
    %102 = vector.load %arg13[%c0_93, %c0_94, %c0_95] : memref<1x1x128xf32, #tpu.memory_space<vmem>>, vector<1x1x128xf32>
    %103 = vector.broadcast %102 : vector<1x1x128xf32> to vector<2x64x128xf32>
    %104 = arith.mulf %101, %103 : vector<2x64x128xf32>
    %cst_96 = arith.constant dense<0.000000e+00> : vector<2x64xf32>
    %105 = vector.multi_reduction <add>, %104, %cst_96 [2] : vector<2x64x128xf32> to vector<2x64xf32>
    %106 = vector.shape_cast %105 : vector<2x64xf32> to vector<2x64x1xf32>
    %c0_97 = arith.constant 0 : index
    %c0_98 = arith.constant 0 : index
    %c0_99 = arith.constant 0 : index
    %107 = vector.load %arg14[%c0_97, %c0_98, %c0_99] : memref<1x1x1xf32, #tpu.memory_space<vmem>>, vector<1x1x1xf32>
    %108 = vector.broadcast %107 : vector<1x1x1xf32> to vector<2x64x1xf32>
    %109 = arith.addf %106, %108 : vector<2x64x1xf32>
    %cst_100 = arith.constant dense<0xFF800000> : vector<2x1xf32>
    %110 = vector.multi_reduction <maximumf>, %109, %cst_100 [1] : vector<2x64x1xf32> to vector<2x1xf32>
    %111 = vector.shape_cast %110 : vector<2x1xf32> to vector<2x1x1xf32>
    %112 = vector.broadcast %111 : vector<2x1x1xf32> to vector<2x64x1xf32>
    %113 = arith.subf %109, %112 : vector<2x64x1xf32>
    %114 = math.exp %113 : vector<2x64x1xf32>
    %cst_101 = arith.constant dense<0.000000e+00> : vector<2x1xf32>
    %115 = vector.multi_reduction <add>, %114, %cst_101 [1] : vector<2x64x1xf32> to vector<2x1xf32>
    %116 = vector.shape_cast %115 : vector<2x1xf32> to vector<2x1x1xf32>
    %117 = vector.broadcast %116 : vector<2x1x1xf32> to vector<2x64x1xf32>
    %118 = arith.divf %114, %117 : vector<2x64x1xf32>
    %cst_102 = arith.constant 1.000000e+00 : f32
    %119 = vector.broadcast %cst_102 : f32 to vector<2x64x1xf32>
    %120 = arith.addf %119, %118 : vector<2x64x1xf32>
    %121 = vector.broadcast %120 : vector<2x64x1xf32> to vector<2x64x128xf32>
    %122 = arith.mulf %101, %121 : vector<2x64x128xf32>
    %cst_103 = arith.constant dense<0.000000e+00> : vector<2x128xf32>
    %123 = vector.multi_reduction <add>, %122, %cst_103 [1] : vector<2x64x128xf32> to vector<2x128xf32>
    %cst_104 = arith.constant 6.400000e+01 : f32
    %124 = vector.broadcast %cst_104 : f32 to vector<2x128xf32>
    %125 = arith.divf %123, %124 : vector<2x128xf32>
    %c0_105 = arith.constant 0 : index
    %c0_106 = arith.constant 0 : index
    %126 = vector.load %arg18[%c0_105, %c0_106] : memref<2x128xf32, #tpu.memory_space<vmem>>, vector<2x128xf32>
    tpu.vector_store %arg18[%c0_105, %c0_106], %125 {strides = array<i32>} : memref<2x128xf32, #tpu.memory_space<vmem>>, vector<2x128xf32>,
    %127 = arith.truncf %125 : vector<2x128xf32> to vector<2x128xbf16>
    %c0_107 = arith.constant 0 : index
    %c0_108 = arith.constant 0 : index
    %128 = vector.load %arg15[%c0_107, %c0_108] : memref<128x128xbf16, #tpu.memory_space<vmem>>, vector<128x128xbf16>
    %cst_109 = arith.constant dense<0.000000e+00> : vector<2x128xf32>
    %129 = tpu.matmul %127, %128, %cst_109 {dimension_numbers = #tpu.dot_dimension_numbers<[1], [0], [0], [1], [0, 0, 1, 1], [], []>} : vector<2x128xbf16>, vector<128x128xbf16>, vector<2x128xf32> -> vector<2x128xf32>
    %c0_110 = arith.constant 0 : index
    %c0_111 = arith.constant 0 : index
    %130 = vector.load %arg16[%c0_110, %c0_111] : memref<1x128xf32, #tpu.memory_space<vmem>>, vector<1x128xf32>
    %131 = vector.broadcast %130 : vector<1x128xf32> to vector<2x128xf32>
    %132 = arith.addf %129, %131 : vector<2x128xf32>
    %c0_112 = arith.constant 0 : index
    %c0_113 = arith.constant 0 : index
    %133 = vector.load %arg17[%c0_112, %c0_113] : memref<2x128xf32, #tpu.memory_space<vmem>>, vector<2x128xf32>
    tpu.vector_store %arg17[%c0_112, %c0_113], %132 {strides = array<i32>} : memref<2x128xf32, #tpu.memory_space<vmem>>, vector<2x128xf32>,
    return
  }
}

</mosaic_0001>

<bundles_post_ra>
// kernel: snmpnet_forward.1
= control target key start
LH: loop header
LB: loop body
LE: loop exit
PB: predicated region body
PF: predicated region fallthrough
CT: control target
= control target key end

     0   :  { %s6622_s0 = inlined_call_operand.vmem [shape: bf16[128,128], index: 0, kind: input, shape index: {}]   ;;  %s6623_s1 = inlined_call_operand.vmem [shape: bf16[128,128], index: 1, kind: input, shape index: {}]   ;;  %s6624_s2 = inlined_call_operand.vmem [shape: f32[1,128], index: 2, kind: input, shape index: {}]   ;;  %s6625_s3 = inlined_call_operand.vmem [shape: bf16[128,256], index: 3, kind: input, shape index: {}]   ;;  %s6626_s4 = inlined_call_operand.vmem [shape: f32[1,256], index: 4, kind: input, shape index: {}]   ;;  %s6627_s5 = inlined_call_operand.vmem [shape: bf16[1152,128], index: 5, kind: input, shape index: {}]   ;;  %s6628_s6 = inlined_call_operand.vmem [shape: f32[1,128], index: 6, kind: input, shape index: {}]   ;;  %s6629_s7 = inlined_call_operand.vmem [shape: bf16[128,128], index: 7, kind: input, shape index: {}]   ;;  %s6630_s8 = inlined_call_operand.vmem [shape: f32[1,128], index: 8, kind: input, shape index: {}]   ;;  %s6631_s9 = inlined_call_operand.vmem [shape: bf16[128,128], index: 9, kind: input, shape index: {}]   ;;  %s6632_s10 = inlined_call_operand.vmem [shape: f32[1,128], index: 10, kind: input, shape index: {}]   ;;  %s6633_s11 = inlined_call_operand.vmem [shape: bf16[128,128], index: 11, kind: input, shape index: {}]   ;;  %s6634_s12 = inlined_call_operand.vmem [shape: f32[1,128], index: 12, kind: input, shape index: {}]   ;;  %s6635_s13 = inlined_call_operand.vmem [shape: f32[1,1,128], index: 13, kind: input, shape index: {}]   ;;  %s6636_s14 = inlined_call_operand.<no memory space> [shape: f32[1,1,1], index: 14, kind: input, shape index: {}]   ;;  %s6637_s15 = inlined_call_operand.vmem [shape: bf16[128,128], index: 15, kind: input, shape index: {}]   ;;  %s6638_s16 = inlined_call_operand.vmem [shape: f32[1,128], index: 16, kind: input, shape index: {}]   ;;  %s6639_s17 = inlined_call_operand.hbm [shape: f32[2,128], index: 17, kind: output, shape index: {0}]   ;;  %s6640_s18 = inlined_call_operand.hbm [shape: f32[2,128], index: 18, kind: output, shape index: {1}]  }
   0x1   :  { %6652 = sst [smem:[#allocation53_spill]] %s6622_s0  ;;  %v24_v0 = vstv %s6636_s14 }
   0x2   :  { %6653 = sst [smem:[#allocation54_spill]] %s6623_s1  ;;  %25 = vst [vmem:[#allocation4] sm:$0x1] %v24_v0 }
   0x3   :  { %6654 = sst [smem:[#allocation55_spill]] %s6624_s2 }
   0x4   :  { %26 = vsyncpa [#allocation6], 0  ;;  %s6655_s0 = sld [smem:[#allocation54_spill]]  ;;  %v5075_v8 = vld [vmem:[%s6625_s3 + $0x74] ss:$8 sps:$4 sm:$0xff]  }
   0x5   :  { %s6656_s24 = sld [smem:[#allocation53_spill]]  ;;  %v5077_v9 = vld [vmem:[%s6625_s3 + $0x70] ss:$8 sps:$4 sm:$0xff]   ;;  %427 = vmatprep.subr.bf16.mxu1 %v5075_v8  ;;  %v5078_v10 = vld [vmem:[%s6625_s3 + $0x64] ss:$8 sps:$4 sm:$0xff]  }
   0x6   :  { %428 = vmatpush1.bf16.msra.mxu1 %v5077_v9  ;;  %v5080_v12 = vld [vmem:[%s6625_s3 + $0x60] ss:$8 sps:$4 sm:$0xff]   ;;  %v5081_v13 = vld [vmem:[%s6625_s3 + $0x54] ss:$8 sps:$4 sm:$0xff]   ;;  %v5083_v15 = vld [vmem:[%s6625_s3 + $0x50] ss:$8 sps:$4 sm:$0xff]  }
   0x7   :  { %429 = vmatprep.subr.bf16.mxu1 %v5078_v10  ;;  %v5084_v16 = vld [vmem:[%s6625_s3 + $0x44] ss:$8 sps:$4 sm:$0xff]   ;;  %v5086_v17 = vld [vmem:[%s6625_s3 + $0x40] ss:$8 sps:$4 sm:$0xff]   ;;  %v5087_v18 = vld [vmem:[%s6625_s3 + $0x34] ss:$8 sps:$4 sm:$0xff]  }
   0x8   :  { %v5089_v21 = vld [vmem:[%s6625_s3 + $0x30] ss:$8 sps:$4 sm:$0xff]  }
   0xa   :  { %v5059_v1 = vld [vmem:[%s6655_s0 + $0x38] sm:$0xff]   ;;  %v5060_v2 = vld [vmem:[%s6655_s0 + $0x30] sm:$0xff]   ;;  %v5061_v3 = vld [vmem:[%s6655_s0 + $0x28] sm:$0xff]   ;;  %430 = vmatpush1.bf16.msra.mxu1 %v5080_v12 }
   0xb   :  { %4895 = vmatprep.subr.bf16.mxu0 %v5059_v1  ;;  %v5062_v4 = vld [vmem:[%s6655_s0 + $0x20] sm:$0xff]   ;;  %v5063_v6 = vld [vmem:[%s6655_s0 + $0x18] sm:$0xff]   ;;  %v5064_v7 = vld [vmem:[%s6655_s0 + $0x10] sm:$0xff]   ;;  %431 = vmatprep.subr.bf16.mxu1 %v5081_v13 }
   0xc   :  { %4896 = vmatpush3.bf16.msra.mxu0 %v5059_v1  ;;  %v5067_v5 = vld [vmem:[%s6656_s24] sm:$0xff]   ;;  %v5065_v11 = vld [vmem:[%s6655_s0 + $0x8] sm:$0xff]   ;;  %v5069_v20 = vld [vmem:[%s6656_s24 + $0x10] sm:$0xff]  }
   0xd   :  { %4897 = vmatprep.subr.bf16.mxu0 %v5060_v2  ;;  %4911 = vmatprep.mubr.bf16.mxu0 %v5067_v5  ;;  %v5066_v14 = vld [vmem:[%s6655_s0] sm:$0xff]   ;;  %v5068_v19 = vld [vmem:[%s6656_s24 + $0x8] sm:$0xff]   ;;  %v5070_v22 = vld [vmem:[%s6656_s24 + $0x18] sm:$0xff]  }
   0xe   :  { %432 = vmatpush1.bf16.msra.mxu1 %v5083_v15  ;;  %v5071_v23 = vld [vmem:[%s6656_s24 + $0x20] sm:$0xff]   ;;  %v5072_v24 = vld [vmem:[%s6656_s24 + $0x28] sm:$0xff]   ;;  %v5073_v25 = vld [vmem:[%s6656_s24 + $0x30] sm:$0xff]  }
   0xf   :  { %433 = vmatprep.subr.bf16.mxu1 %v5084_v16  ;;  %v5074_v26 = vld [vmem:[%s6656_s24 + $0x38] sm:$0xff]  }
  0x10   :  { %4898 = vmatpush3.bf16.msra.mxu0 %v5060_v2 }
  0x11   :  { %4899 = vmatprep.subr.bf16.mxu0 %v5061_v3 }
  0x12   :  { %434 = vmatpush1.bf16.msra.mxu1 %v5086_v17 }
  0x13   :  { %435 = vmatprep.subr.bf16.mxu1 %v5087_v18 }
  0x14   :  { %4900 = vmatpush3.bf16.msra.mxu0 %v5061_v3 }
  0x15   :  { %4901 = vmatprep.subr.bf16.mxu0 %v5062_v4 }
  0x16   :  { %436 = vmatpush1.bf16.msra.mxu1 %v5089_v21 }
  0x18   :  { %4902 = vmatpush3.bf16.msra.mxu0 %v5062_v4 }
  0x19   :  { %4903 = vmatprep.subr.bf16.mxu0 %v5063_v6 }
  0x1c   :  { %4904 = vmatpush3.bf16.msra.mxu0 %v5063_v6 }
  0x1d   :  { %4905 = vmatprep.subr.bf16.mxu0 %v5064_v7 }
  0x20   :  { %4906 = vmatpush3.bf16.msra.mxu0 %v5064_v7 }
  0x21   :  { %4907 = vmatprep.subr.bf16.mxu0 %v5065_v11 }
  0x24   :  { %4908 = vmatpush3.bf16.msra.mxu0 %v5065_v11 }
  0x25   :  { %4909 = vmatprep.subr.bf16.mxu0 %v5066_v14 }
  0x28   :  { %4910 = vmatpush3.bf16.msra.mxu0 %v5066_v14 }
  0x2b   :  { %4912 = vmatmul.mubr.bf16.vlgmr.msra.gmra.mxu0 %v5068_v19 }
  0x2c   :  { %4915 = vmatprep.mubr.bf16.mxu0 %v5069_v20 }
  0x33   :  { %4916 = vmatmul.mubr.bf16.gmra.mxu0 %v5070_v22 }
  0x34   :  { %4919 = vmatprep.mubr.bf16.mxu0 %v5071_v23 }
  0x3b   :  { %4920 = vmatmul.mubr.bf16.gmra.mxu0 %v5072_v24 }
  0x3c   :  { %4923 = vmatprep.mubr.bf16.mxu0 %v5073_v25 }
  0x43   :  { %4924 = vmatmul.mubr.bf16.gmra.mxu0 %v5074_v26 }
  0x44   :  { %27 = vsyncpa [#allocation8], 0  ;;  %v5090_v27 = vld [vmem:[%s6625_s3 + $0x24] ss:$8 sps:$4 sm:$0xff]   ;;  %v5092_v28 = vld [vmem:[%s6625_s3 + $0x20] ss:$8 sps:$4 sm:$0xff]  }
  0x45   :  { %437 = vmatprep.subr.bf16.mxu1 %v5090_v27  ;;  %v5093_v29 = vld [vmem:[%s6625_s3 + $0x14] ss:$8 sps:$4 sm:$0xff]   ;;  %v5095_v30 = vld [vmem:[%s6625_s3 + $0x10] ss:$8 sps:$4 sm:$0xff]   ;;  %v5096_v31 = vld [vmem:[%s6625_s3 + $0x4] ss:$8 sps:$4 sm:$0xff]  }
  0x46   :  { %438 = vmatpush1.bf16.msra.mxu1 %v5092_v28  ;;  %v5098_v32 = vld [vmem:[%s6625_s3] ss:$8 sps:$4 sm:$0xff]   ;;  %v5387_v33 = vmov 0   ;;  %v5099_v34 = vld [vmem:[%s6627_s5 + $0xf8] sm:$0xff]   ;;  %v5103_v37 = vld [vmem:[%s6627_s5 + $0x70] sm:$0xff]   ;;  %s6657_s28 = sld [smem:[#allocation55_spill]] }
  0x47   :  { %439 = vmatprep.subr.bf16.mxu1 %v5093_v29  ;;  %459 = vmatprep.mubr.bf16.mxu1 %v5387_v33  ;;  %v5101_v35 = vld [vmem:[%s6627_s5 + $0x78] sm:$0xff]   ;;  %vm5390_vm0 = vmmov 0   ;;  %vm3244_vm1 = vcmask 1041409   ;;  %vm3614_vm2 = vcmask 7168  }
  0x48   :  { %5058 = vset.pattern.permute.xlu1 %v5387_v33  ;;  %5057 = vset.pattern.permute.xlu0 %v5387_v33  ;;  %v5102_v36 = vld [vmem:[%s6627_s5 + $0x38] sm:$0xff]  }
  0x49   :  { %4580 = vmatprep.subr.bf16.mxu0 %v5101_v35  ;;  %v5100_v49 = vld [vmem:[%s6627_s5 + $0xb8] sm:$0xff]   ;;  %v5106_v35 = vld [vmem:[%s6627_s5 + $0xb0] sm:$0xff]  }
  0x4a   :  { %440 = vmatpush1.bf16.msra.mxu1 %v5095_v30  ;;  %4581 = vmatpush3.bf16.msra.mxu0 %v5102_v36  ;;  %v5108_v36 = vld [vmem:[%s6627_s5 + $0x28] sm:$0xff]  }
  0x4b   :  { %441 = vmatprep.subr.bf16.mxu1 %v5096_v31  ;;  %4582 = vmatprep.subr.bf16.mxu0 %v5103_v37  ;;  %v5109_v37 = vld [vmem:[%s6627_s5 + $0x60] sm:$0xff]  }
  0x4c   :  { %v5606_v40 = vld [vmem:[%s6657_s28] ss:$0 sm:$0xff] }
  0x4e   :  { %442 = vmatpush1.bf16.msra.mxu1 %v5098_v32  ;;  %v5104_v32 = vld [vmem:[%s6627_s5 + $0x30] sm:$0xff]  }
  0x4f   :  { %4644 = vmatprep.subr.bf16.mxu1 %v5099_v34  ;;  %4583 = vmatpush3.bf16.msra.mxu0 %v5104_v32  ;;  %v5105_v34 = vld [vmem:[%s6627_s5 + $0xf0] sm:$0xff]  }
  0xeb   :  { %v4913_v38 = vpop.f32.mrf.mxu0 }
  0xec   :  { %v241_v53 = vadd.f32 %v4913_v38, %v5606_v40  ;;  %v5111_v38 = vld [vmem:[%s6627_s5 + $0xe8] sm:$0xff]  }
  0xed   :  { %v232_v39 = vpop.f32.mrf.mxu0 }
  0xee   :  { %v233_v42 = vadd.f32 %v5606_v40, %v232_v39  ;;  %v297_v56 = vmax.f32 %v241_v53, 0.0  ;;  %v5388_v39 = vmov 0.0  }
  0xef   :  { %v4914_v41 = vpop.f32.mrf.mxu0  ;;  %558 = vst [vmem:[#allocation2 + $0x10] sm:$0xff] %v5388_v39  ;;  %559 = vst [vmem:[#allocation2 + $0x18] sm:$0x3] %v5388_v39 }
  0xf0   :  { %v295_v46 = vmax.f32 %v233_v42, 0.0  ;;  %v244_v50 = vadd.f32 %v4914_v41, %v5606_v40  ;;  %556 = vst [vmem:[#allocation2] sm:$0xff] %v5388_v39  ;;  %557 = vst [vmem:[#allocation2 + $0x8] sm:$0x3] %v5388_v39  ;;  %v5112_v41 = vld [vmem:[%s6627_s5 + $0xa8] sm:$0xff]   ;;  %v5113_v42 = vld [vmem:[%s6627_s5 + $0x58] sm:$0xff]  }
  0xf1   :  { %v235_v43 = vpop.f32.mrf.mxu0  ;;  %560 = vst [vmem:[#allocation2 + $0x20] sm:$0xff] %v5388_v39  ;;  %561 = vst [vmem:[#allocation2 + $0x28] sm:$0x3] %v5388_v39 }
  0xf2   :  { %v236_v44 = vadd.f32 %v5606_v40, %v235_v43  ;;  %v298_v54 = vmax.f32 %v244_v50, 0.0  ;;  %562 = vst [vmem:[#allocation2 + $0x30] sm:$0xff] %v5388_v39  ;;  %563 = vst [vmem:[#allocation2 + $0x38] sm:$0x3] %v5388_v39  ;;  %v5115_v43 = vld [vmem:[%s6627_s5 + $0xe0] sm:$0xff]  }
  0xf3   :  { %v4917_v45 = vpop.f32.mrf.mxu0  ;;  %564 = vst [vmem:[#allocation2 + $0x40] sm:$0xff] %v5388_v39  ;;  %565 = vst [vmem:[#allocation2 + $0x48] sm:$0x3] %v5388_v39 }
  0xf4   :  { %v296_v47 = vmax.f32 %v236_v44, 0.0  ;;  %v312_v57 = vpack.c.bf16 %v298_v54, %v297_v56  ;;  %v257_v0 = vadd.f32 %v4917_v45, %v5606_v40  ;;  %566 = vst [vmem:[#allocation2 + $0x50] sm:$0xff] %v5388_v39  ;;  %567 = vst [vmem:[#allocation2 + $0x58] sm:$0x3] %v5388_v39  ;;  %v5114_v44 = vld [vmem:[%s6627_s5 + $0x18] sm:$0xff]   ;;  %v5116_v45 = vld [vmem:[%s6627_s5 + $0xa0] sm:$0xff]  }
  0xf5   :  { %v248_v48 = vpop.f32.mrf.mxu0  ;;  %568 = vst [vmem:[#allocation2 + $0x60] sm:$0xff] %v5388_v39  ;;  %569 = vst [vmem:[#allocation2 + $0x68] sm:$0x3] %v5388_v39  ;;  %v5121_v54 = vld [vmem:[%s6627_s5 + $0x48] sm:$0xff]   ;;  %v5389_v56 = vmov 0.0|0.0  }
  0xf6   :  { %v311_v51 = vpack.c.bf16 %v296_v47, %v295_v46  ;;  %v249_v58 = vadd.f32 %v5606_v40, %v248_v48  ;;  %v301_v4 = vmax.f32 %v257_v0, 0.0  ;;  %570 = vst [vmem:[#allocation2 + $0x70] sm:$0xff] %v5388_v39  ;;  %571 = vst [vmem:[#allocation2 + $0x78] sm:$0x3] %v5388_v39  ;;  %v5117_v46 = vld [vmem:[%s6627_s5 + $0x50] sm:$0xff]   ;;  %v5119_v47 = vld [vmem:[%s6627_s5 + $0xd8] sm:$0xff]  }
  0xf7   :  { %v4918_v52 = vpop.f32.mrf.mxu0  ;;  %572 = vst [vmem:[#allocation2 + $0x80] sm:$0xff] %v5388_v39  ;;  %573 = vst [vmem:[#allocation2 + $0x88] sm:$0x3] %v5388_v39  ;;  %v5118_v48 = vld [vmem:[%s6627_s5 + $0x10] sm:$0xff]   ;;  %v709_v50 = vld [vmem:[#allocation2 + $0x1] sm:$0xff] }
  0xf8   :  { %460 = vmatmul.mubr.bf16.vlgmr.msra.gmra.mxu1 %v311_v51  ;;  %v299_v61 = vmax.f32 %v249_v58, 0.0  ;;  %v260_v1 = vadd.f32 %v4918_v52, %v5606_v40  ;;  %574 = vst [vmem:[#allocation2 + $0x90] sm:$0xff] %v5388_v39  ;;  %575 = vst [vmem:[#allocation2 + $0x98] sm:$0x3] %v5388_v39  ;;  %v4436_v51 = vpack.c.bf16 %v709_v50, %v709_v50  ;;  %v805_v52 = vld [vmem:[#allocation2 + $0x2] sm:$0xff]  ;;  %v5124_v58 = vld [vmem:[%s6627_s5 + $0x90] sm:$0xff]  }
  0xf9   :  { %469 = vmatprep.mubr.bf16.mxu1 %v5387_v33  ;;  %4645 = vmatpush3.bf16.msra.mxu1 %v5100_v49  ;;  %v251_v55 = vpop.f32.mrf.mxu0  ;;  %576 = vst [vmem:[#allocation2 + $0xa0] sm:$0xff] %v5388_v39  ;;  %577 = vst [vmem:[#allocation2 + $0xa8] sm:$0x3] %v5388_v39  ;;  %v5120_v49 = vld [vmem:[%s6627_s5 + $0x98] sm:$0xff]   ;;  %v4452_v53 = vpack.c.bf16 %v805_v52, %v805_v52  ;;  %v5135_v0 = vld [vmem:[%s6627_s5 + $0x80] sm:$0xff]  }
  0xfa   :  { %v252_v59 = vadd.f32 %v5606_v40, %v251_v55  ;;  %v302_v5 = vmax.f32 %v260_v1, 0.0  ;;  %4646 = vmatprep.subr.bf16.mxu1 %v5105_v34  ;;  %578 = vst [vmem:[#allocation2 + $0xb0] sm:$0xff] %v5388_v39  ;;  %579 = vst [vmem:[#allocation2 + $0xb8] sm:$0x3] %v5388_v39  ;;  %v5123_v55 = vld [vmem:[%s6627_s5 + $0xd0] sm:$0xff]   ;;  %v5132_v1 = vld [vmem:[%s6627_s5 + $0x178] sm:$0xff]  }
  0xfb   :  { %v4921_v60 = vpop.f32.mrf.mxu0  ;;  %580 = vst [vmem:[#allocation2 + $0xc0] sm:$0xff] %v5388_v39  ;;  %581 = vst [vmem:[#allocation2 + $0xc8] sm:$0x3] %v5388_v39 }
  0xfc   :  { %v300_v62 = vmax.f32 %v252_v59, 0.0  ;;  %v314_v7 = vpack.c.bf16 %v302_v5, %v301_v4  ;;  %v273_v14 = vadd.f32 %v4921_v60, %v5606_v40  ;;  %582 = vst [vmem:[#allocation2 + $0xd0] sm:$0xff] %v5388_v39  ;;  %583 = vst [vmem:[#allocation2 + $0xd8] sm:$0x3] %v5388_v39  ;;  %v5125_v59 = vld [vmem:[%s6627_s5 + $0x40] sm:$0xff]   ;;  %v5127_v60 = vld [vmem:[%s6627_s5 + $0xc8] sm:$0xff]  }
  0xfd   :  { %v264_v63 = vpop.f32.mrf.mxu0  ;;  %4647 = vmatpush3.bf16.msra.mxu1 %v5106_v35  ;;  %584 = vst [vmem:[#allocation2 + $0xe0] sm:$0xff] %v5388_v39  ;;  %585 = vst [vmem:[#allocation2 + $0xe8] sm:$0x3] %v5388_v39 }
  0xfe   :  { %v313_v2 = vpack.c.bf16 %v300_v62, %v299_v61  ;;  %v265_v8 = vadd.f32 %v5606_v40, %v264_v63  ;;  %v305_v18 = vmax.f32 %v273_v14, 0.0  ;;  %586 = vst [vmem:[#allocation2 + $0xf0] sm:$0xff] %v5388_v39  ;;  %587 = vst [vmem:[#allocation2 + $0xf8] sm:$0x3] %v5388_v39  ;;  %4648 = vmatprep.subr.bf16.mxu1 %v5111_v38  ;;  %v5126_v61 = vld [vmem:[%s6627_s5] sm:$0xff]   ;;  %v5128_v62 = vld [vmem:[%s6627_s5 + $0x88] sm:$0xff]  }
  0xff   :  { %v4922_v3 = vpop.f32.mrf.mxu0  ;;  %588 = vst [vmem:[#allocation2 + $0x100] sm:$0xff] %v5388_v39  ;;  %589 = vst [vmem:[#allocation2 + $0x108] sm:$0x3] %v5388_v39  ;;  %v5133_v63 = vld [vmem:[%s6627_s5 + $0xc0] sm:$0xff]  }
 0x100   :  { %470 = vmatmul.mubr.bf16.gmra.mxu1 %v312_v57  ;;  %v303_v11 = vmax.f32 %v265_v8, 0.0  ;;  %v276_v15 = vadd.f32 %v4922_v3, %v5606_v40  ;;  %590 = vst [vmem:[#allocation2 + $0x110] sm:$0xff] %v5388_v39  ;;  %591 = vst [vmem:[#allocation2 + $0x118] sm:$0x3] %v5388_v39  ;;  %v5122_v57 = vld [vmem:[%s6627_s5 + $0x8] sm:$0xff]   ;;  %v1389_v3 = vld [vmem:[#allocation2 + $0x92] sm:$0xff] }
 0x101   :  { %479 = vmatprep.mubr.bf16.mxu1 %v5387_v33  ;;  %v267_v6 = vpop.f32.mrf.mxu0  ;;  %592 = vst [vmem:[#allocation2 + $0x120] sm:$0xff] %v5388_v39  ;;  %593 = vst [vmem:[#allocation2 + $0x128] sm:$0x3] %v5388_v39  ;;  %4649 = vmatpush3.bf16.msra.mxu1 %v5112_v41  ;;  %v4555_v5 = vpack.c.bf16 %v1389_v3, %v1389_v3 }
 0x102   :  { %v268_v9 = vadd.f32 %v5606_v40, %v267_v6  ;;  %v306_v19 = vmax.f32 %v276_v15, 0.0  ;;  %594 = vst [vmem:[#allocation2 + $0x130] sm:$0xff] %v5388_v39  ;;  %595 = vst [vmem:[#allocation2 + $0x138] sm:$0x3] %v5388_v39  ;;  %4650 = vmatprep.subr.bf16.mxu1 %v5115_v43  ;;  %v717_v6 = vld [vmem:[#allocation2 + $0xa1] sm:$0xff]  ;;  %v337_v15 = vlaneseq }
 0x103   :  { %v4925_v10 = vpop.f32.mrf.mxu0  ;;  %693 = vst [vmem:[#allocation3] sm:$0xf] %v5389_v56  ;;  %789 = vst [vmem:[#allocation3 + $0x4] sm:$0xf] %v4436_v51  ;;  %v4444_v8 = vpack.c.bf16 %v717_v6, %v717_v6 }
 0x104   :  { %v304_v12 = vmax.f32 %v268_v9, 0.0  ;;  %v316_v21 = vpack.c.bf16 %v306_v19, %v305_v18  ;;  %v289_v26 = vadd.f32 %v4925_v10, %v5606_v40  ;;  %701 = vst [vmem:[#allocation3 + $0x120] sm:$0xf] %v5389_v56  ;;  %885 = vst [vmem:[#allocation3 + $0x8] sm:$0xf] %v4452_v53  ;;  %v5163_v10 = vld [vmem:[%s6627_s5 + $0x1f8] sm:$0xff]  }
 0x105   :  { %v280_v13 = vpop.f32.mrf.mxu0  ;;  %4651 = vmatpush3.bf16.msra.mxu1 %v5116_v45  ;;  %1277 = vst [vmem:[#allocation3 + $0x114] sm:$0xf] %v5389_v56  ;;  %1285 = vst [vmem:[#allocation3 + $0x234] sm:$0xf] %v5389_v56  ;;  %v335_v18 = vld [vmem:[%s6626_s4] sm:$0x3] }
 0x106   :  { %v315_v16 = vpack.c.bf16 %v304_v12, %v303_v11  ;;  %v281_v22 = vadd.f32 %v5606_v40, %v280_v13  ;;  %v309_v29 = vmax.f32 %v289_v26, 0.0  ;;  %4652 = vmatprep.subr.bf16.mxu1 %v5119_v47  ;;  %1469 = vst [vmem:[#allocation3 + $0x11c] sm:$0xf] %v4555_v5  ;;  %797 = vst [vmem:[#allocation3 + $0x124] sm:$0xf] %v4444_v8  ;;  %v5143_v8 = vld [vmem:[%s6627_s5 + $0x130] sm:$0xff]  }
 0x107   :  { %v4926_v17 = vpop.f32.mrf.mxu0 }
 0x108   :  { %480 = vmatmul.mubr.bf16.gmra.mxu1 %v313_v2  ;;  %v307_v24 = vmax.f32 %v281_v22, 0.0  ;;  %v292_v27 = vadd.f32 %v4926_v17, %v5606_v40  ;;  %v1293_v2 = vld [vmem:[#allocation2 + $0x91] sm:$0xff] }
 0x109   :  { %489 = vmatprep.mubr.bf16.mxu1 %v5387_v33  ;;  %v283_v20 = vpop.f32.mrf.mxu0  ;;  %4653 = vmatpush3.bf16.msra.mxu1 %v5120_v49  ;;  %v4539_v4 = vpack.c.bf16 %v1293_v2, %v1293_v2  ;;  %v1301_v11 = vld [vmem:[#allocation2 + $0x131] sm:$0xff] }
 0x10a   :  { %v284_v23 = vadd.f32 %v5606_v40, %v283_v20  ;;  %v310_v30 = vmax.f32 %v292_v27, 0.0  ;;  %v5110_v40 = vld [vmem:[%s6627_s5 + $0x20] sm:$0xff]   ;;  %4654 = vmatprep.subr.bf16.mxu1 %v5123_v55  ;;  %v1397_v12 = vld [vmem:[#allocation2 + $0x132] sm:$0xff]  ;;  %v4547_v13 = vpack.c.bf16 %v1301_v11, %v1301_v11 }
 0x10b   :  { %1373 = vst [vmem:[#allocation3 + $0x118] sm:$0xf] %v4539_v4  ;;  %v4563_v14 = vpack.c.bf16 %v1397_v12, %v1397_v12  ;;  %v5141_v2 = vld [vmem:[%s6627_s5 + $0x170] sm:$0xff]   ;;  %v5164_v12 = vld [vmem:[%s6627_s5 + $0x1b8] sm:$0xff]  }
 0x10c   :  { %v308_v25 = vmax.f32 %v284_v23, 0.0  ;;  %v318_v31 = vpack.c.bf16 %v310_v30, %v309_v29  ;;  %1381 = vst [vmem:[#allocation3 + $0x238] sm:$0xf] %v4547_v13 }
 0x10d   :  { %4655 = vmatpush3.bf16.msra.mxu1 %v5124_v58  ;;  %1477 = vst [vmem:[#allocation3 + $0x23c] sm:$0xf] %v4563_v14  ;;  %v5134_v58 = vld [vmem:[%s6627_s5 + $0x138] sm:$0xff]  }
 0x10e   :  { %v317_v28 = vpack.c.bf16 %v308_v25, %v307_v24  ;;  %4656 = vmatprep.subr.bf16.mxu1 %v5127_v60 }
 0x110   :  { %490 = vmatmul.mubr.bf16.gmra.mxu1 %v314_v7  ;;  %v813_v7 = vld [vmem:[#allocation2 + $0xa2] sm:$0xff] }
 0x111   :  { %499 = vmatprep.mubr.bf16.mxu1 %v5387_v33  ;;  %4657 = vmatpush3.bf16.msra.mxu1 %v5128_v62  ;;  %v4460_v9 = vpack.c.bf16 %v813_v7, %v813_v7 }
 0x112   :  { %4658 = vmatprep.subr.bf16.mxu1 %v5133_v63 }
 0x113   :  { %893 = vst [vmem:[#allocation3 + $0x128] sm:$0xf] %v4460_v9 }
 0x115   :  { %4659 = vmatpush3.bf16.msra.mxu1 %v5135_v0 }
 0x116   :  { %4772 = vmatprep.subr.bf16.mxu1 %v5163_v10  ;;  %v5149_v10 = vld [vmem:[%s6627_s5 + $0x168] sm:$0xff]  }
 0x118   :  { %500 = vmatmul.mubr.bf16.gmra.mxu1 %v315_v16  ;;  %v5761_v16 = vshrl.u32 %v337_v15, 7 }
 0x119   :  { %509 = vmatprep.mubr.bf16.mxu1 %v5387_v33 }
 0x11a   :  { %6658 = vst [vmem:[#allocation11_spill] sm:$0xff] %v5761_v16  ;;  %v343_v17 = vsub.s32 1, %v5761_v16 }
 0x11c   :  { %v5767_v19 = vrot.slane %v335_v18, %v343_v17  ;;  %v5173_v18 = vld [vmem:[%s6627_s5 + $0x1f0] sm:$0xff]  }
 0x120   :  { %510 = vmatmul.mubr.bf16.gmra.mxu1 %v316_v21 }
 0x121   :  { %519 = vmatprep.mubr.bf16.mxu1 %v5387_v33 }
 0x128   :  { %520 = vmatmul.mubr.bf16.gmra.mxu1 %v317_v28 }
 0x129   :  { %529 = vmatprep.mubr.bf16.mxu1 %v5387_v33  ;;  %v5107_v33 = vld [vmem:[%s6627_s5 + $0x68] sm:$0xff]  }
 0x12a   :  { %4584 = vmatprep.subr.bf16.mxu0 %v5107_v33 }
 0x12b   :  { %4585 = vmatpush3.bf16.msra.mxu0 %v5108_v36 }
 0x12c   :  { %4586 = vmatprep.subr.bf16.mxu0 %v5109_v37 }
 0x12f   :  { %4587 = vmatpush3.bf16.msra.mxu0 %v5110_v40 }
 0x130   :  { %530 = vmatmul.mubr.bf16.gmra.mxu1 %v318_v31  ;;  %4588 = vmatprep.subr.bf16.mxu0 %v5113_v42 }
 0x133   :  { %4589 = vmatpush3.bf16.msra.mxu0 %v5114_v44 }
 0x134   :  { %4590 = vmatprep.subr.bf16.mxu0 %v5117_v46 }
 0x137   :  { %4591 = vmatpush3.bf16.msra.mxu0 %v5118_v48 }
 0x138   :  { %4592 = vmatprep.subr.bf16.mxu0 %v5121_v54 }
 0x13b   :  { %4593 = vmatpush3.bf16.msra.mxu0 %v5122_v57 }
 0x13c   :  { %4594 = vmatprep.subr.bf16.mxu0 %v5125_v59 }
 0x13f   :  { %4595 = vmatpush3.bf16.msra.mxu0 %v5126_v61 }
 0x140   :  { %4708 = vmatprep.subr.bf16.mxu0 %v5132_v1 }
 0x1b8   :  { %v5769_v20 = vpop.f32.mrf.mxu1 }
 0x1b9   :  { %6659 = vst [vmem:[#allocation12_spill] sm:$0xff] %v5769_v20 }
 0x1ba   :  { %v463_v21 = vpop.f32.mrf.mxu1 }
 0x1bb   :  { %v464_v22 = vadd.f32 %v463_v21, %v5767_v19 }
 0x1bc   :  { %v5772_v23 = vpop.f32.mrf.mxu1 }
 0x1bd   :  { %6660 = vst [vmem:[#allocation13_spill] sm:$0xff] %v5772_v23  ;;  %v540_v24 = vmax.f32 %v464_v22, 0.0 }
 0x1be   :  { %v467_v25 = vpop.f32.mrf.mxu1 }
 0x1bf   :  { %597 = vst [vmem:[#allocation2 + $0x11] sm:$0xff] %v540_v24  ;;  %v468_v26 = vadd.f32 %v467_v25, %v5767_v19  ;;  %v4437_v27 = vpack.c.bf16 %v540_v24, %v540_v24  ;;  %v5151_v25 = vld [vmem:[%s6627_s5 + $0x128] sm:$0xff]  }
 0x1c0   :  { %v5775_v28 = vpop.f32.mrf.mxu1 }
 0x1c1   :  { %6661 = vst [vmem:[#allocation14_spill] sm:$0xff] %v5775_v28  ;;  %v541_v29 = vmax.f32 %v468_v26, 0.0  ;;  %790 = vst [vmem:[#allocation3 + $0x28] sm:$0xf] %v4437_v27 }
 0x1c2   :  { %1077 = vst [vmem:[#allocation3 + $0x10] sm:$0xf] %v4437_v27  ;;  %v473_v30 = vpop.f32.mrf.mxu1 }
 0x1c3   :  { %598 = vst [vmem:[#allocation2 + $0x21] sm:$0xff] %v541_v29  ;;  %v474_v31 = vadd.f32 %v473_v30, %v5767_v19  ;;  %v4438_v32 = vpack.c.bf16 %v541_v29, %v541_v29 }
 0x1c4   :  { %v5778_v34 = vpop.f32.mrf.mxu1 }
 0x1c5   :  { %6662 = vst [vmem:[#allocation15_spill] sm:$0xff] %v5778_v34  ;;  %v542_v35 = vmax.f32 %v474_v31, 0.0  ;;  %791 = vst [vmem:[#allocation3 + $0x4c] sm:$0xf] %v4438_v32  ;;  %v5157_v31 = vld [vmem:[%s6627_s5 + $0x160] sm:$0xff]  }
 0x1c6   :  { %1078 = vst [vmem:[#allocation3 + $0x34] sm:$0xf] %v4438_v32  ;;  %1366 = vst [vmem:[#allocation3 + $0x1c] sm:$0xf] %v4438_v32  ;;  %v614_v33 = vld [vmem:[#allocation2 + $0x10] sm:$0xff]  ;;  %v477_v37 = vpop.f32.mrf.mxu1 }
 0x1c7   :  { %v806_v36 = vld [vmem:[#allocation2 + $0x12] sm:$0xff]  ;;  %599 = vst [vmem:[#allocation2 + $0x31] sm:$0xff] %v542_v35  ;;  %v478_v38 = vadd.f32 %v477_v37, %v5767_v19  ;;  %v4421_v40 = vpack.c.bf16 %v614_v33, %v614_v33  ;;  %v4439_v42 = vpack.c.bf16 %v542_v35, %v542_v35 }
 0x1c8   :  { %v4453_v41 = vpack.c.bf16 %v806_v36, %v806_v36  ;;  %v5781_v43 = vpop.f32.mrf.mxu1  ;;  %v5131_v0 = vld [vmem:[#allocation3 + $0x4] ss:$36 sps:$4 sm:$0xff]   ;;  %v5174_v32 = vld [vmem:[%s6627_s5 + $0x1b0] sm:$0xff]  }
 0x1c9   :  { %6663 = vst [vmem:[#allocation16_spill] sm:$0xff] %v5781_v43  ;;  %v543_v44 = vmax.f32 %v478_v38, 0.0  ;;  %694 = vst [vmem:[#allocation3 + $0x24] sm:$0xf] %v4421_v40  ;;  %2541 = vmatprep.mubr.bf16.mxu0 %v5131_v0  ;;  %v5183_v38 = vld [vmem:[%s6627_s5 + $0x1e8] sm:$0xff]  }
 0x1ca   :  { %886 = vst [vmem:[#allocation3 + $0x2c] sm:$0xf] %v4453_v41  ;;  %981 = vst [vmem:[#allocation3 + $0xc] sm:$0xf] %v4421_v40  ;;  %v615_v45 = vld [vmem:[#allocation2 + $0x20] sm:$0xff]  ;;  %v483_v47 = vpop.f32.mrf.mxu1 }
 0x1cb   :  { %792 = vst [vmem:[#allocation3 + $0x70] sm:$0xf] %v4439_v42  ;;  %1173 = vst [vmem:[#allocation3 + $0x14] sm:$0xf] %v4453_v41  ;;  %v807_v46 = vld [vmem:[#allocation2 + $0x22] sm:$0xff]  ;;  %v484_v48 = vadd.f32 %v483_v47, %v5767_v19  ;;  %v4469_v49 = vpack.c.bf16 %v615_v45, %v615_v45  ;;  %v4440_v51 = vpack.c.bf16 %v543_v44, %v543_v44 }
 0x1cc   :  { %1367 = vst [vmem:[#allocation3 + $0x40] sm:$0xf] %v4439_v42  ;;  %1079 = vst [vmem:[#allocation3 + $0x58] sm:$0xf] %v4439_v42  ;;  %v4454_v50 = vpack.c.bf16 %v807_v46, %v807_v46  ;;  %v5784_v52 = vpop.f32.mrf.mxu1  ;;  %v5159_v46 = vld [vmem:[%s6627_s5 + $0x120] sm:$0xff]  }
 0x1cd   :  { %600 = vst [vmem:[#allocation2 + $0x41] sm:$0xff] %v543_v44  ;;  %6664 = vst [vmem:[#allocation17_spill] sm:$0xff] %v5784_v52  ;;  %v544_v53 = vmax.f32 %v484_v48, 0.0  ;;  %v5184_v48 = vld [vmem:[%s6627_s5 + $0x1a8] sm:$0xff]  }
 0x1ce   :  { %982 = vst [vmem:[#allocation3 + $0x30] sm:$0xf] %v4469_v49  ;;  %695 = vst [vmem:[#allocation3 + $0x48] sm:$0xf] %v4469_v49  ;;  %v616_v54 = vld [vmem:[#allocation2 + $0x30] sm:$0xff]  ;;  %v487_v56 = vpop.f32.mrf.mxu1 }
 0x1cf   :  { %887 = vst [vmem:[#allocation3 + $0x50] sm:$0xf] %v4454_v50  ;;  %793 = vst [vmem:[#allocation3 + $0x94] sm:$0xf] %v4440_v51  ;;  %v808_v55 = vld [vmem:[#allocation2 + $0x32] sm:$0xff]  ;;  %v488_v57 = vadd.f32 %v487_v56, %v5767_v19  ;;  %v4423_v59 = vpack.c.bf16 %v616_v54, %v616_v54  ;;  %v4441_v61 = vpack.c.bf16 %v544_v53, %v544_v53  ;;  %v5190_v56 = vld [vmem:[%s6627_s5 + $0x1e0] sm:$0xff]  }
 0x1d0   :  { %1174 = vst [vmem:[#allocation3 + $0x38] sm:$0xf] %v4454_v50  ;;  %1270 = vst [vmem:[#allocation3 + $0x18] sm:$0xf] %v4469_v49  ;;  %v4455_v60 = vpack.c.bf16 %v808_v55, %v808_v55  ;;  %v5790_v62 = vpop.f32.mrf.mxu1  ;;  %v5129_v63 = vld [vmem:[#allocation3] ss:$36 sps:$4 sm:$0xff]  }
 0x1d1   :  { %1080 = vst [vmem:[#allocation3 + $0x7c] sm:$0xf] %v4440_v51  ;;  %1368 = vst [vmem:[#allocation3 + $0x64] sm:$0xf] %v4440_v51  ;;  %v545_v1 = vmax.f32 %v488_v57, 0.0  ;;  %2542 = vmatmul.mubr.bf16.vlgmr.msra.gmra.mxu0 %v5129_v63  ;;  %v5167_v55 = vld [vmem:[%s6627_s5 + $0x158] sm:$0xff]  }
 0x1d2   :  { %1462 = vst [vmem:[#allocation3 + $0x20] sm:$0xf] %v4454_v50  ;;  %601 = vst [vmem:[#allocation2 + $0x51] sm:$0xff] %v544_v53  ;;  %v493_v5 = vpop.f32.mrf.mxu1  ;;  %4709 = vmatpush3.bf16.msra.mxu0 %v5134_v58  ;;  %v5136_v14 = vld [vmem:[#allocation3 + $0x8] ss:$36 sps:$4 sm:$0xff]  }
 0x1d3   :  { %6665 = vst [vmem:[#allocation18_spill] sm:$0xff] %v5790_v62  ;;  %696 = vst [vmem:[#allocation3 + $0x6c] sm:$0xf] %v4423_v59  ;;  %v494_v7 = vadd.f32 %v493_v5, %v5767_v19  ;;  %v4442_v11 = vpack.c.bf16 %v545_v1, %v545_v1  ;;  %4710 = vmatprep.subr.bf16.mxu0 %v5141_v2  ;;  %v5139_v33 = vld [vmem:[#allocation3 + $0x4c] ss:$36 sps:$4 sm:$0xff]  }
 0x1d4   :  { %888 = vst [vmem:[#allocation3 + $0x74] sm:$0xf] %v4455_v60  ;;  %983 = vst [vmem:[#allocation3 + $0x54] sm:$0xf] %v4423_v59  ;;  %v617_v3 = vld [vmem:[#allocation2 + $0x40] sm:$0xff]  ;;  %v5805_v13 = vpop.f32.mrf.mxu1  ;;  %2549 = vmatprep.mubr.bf16.mxu0 %v5139_v33  ;;  %v5177_v2 = vld [vmem:[%s6627_s5 + $0x150] sm:$0xff]  }
 0x1d5   :  { %794 = vst [vmem:[#allocation3 + $0xb8] sm:$0xf] %v4441_v61  ;;  %1271 = vst [vmem:[#allocation3 + $0x3c] sm:$0xf] %v4423_v59  ;;  %v809_v4 = vld [vmem:[#allocation2 + $0x42] sm:$0xff]  ;;  %v4471_v9 = vpack.c.bf16 %v617_v3, %v617_v3  ;;  %v546_v17 = vmax.f32 %v494_v7, 0.0 }
 0x1d6   :  { %1175 = vst [vmem:[#allocation3 + $0x5c] sm:$0xf] %v4455_v60  ;;  %1369 = vst [vmem:[#allocation3 + $0x88] sm:$0xf] %v4441_v61  ;;  %v4550_v6 = vpack.c.bf16 %v809_v4, %v809_v4  ;;  %v5138_v15 = vld [vmem:[#allocation3 + $0xc] ss:$36 sps:$4 sm:$0xff]   ;;  %v497_v24 = vpop.f32.mrf.mxu1  ;;  %4711 = vmatpush3.bf16.msra.mxu0 %v5143_v8 }
 0x1d7   :  { %1081 = vst [vmem:[#allocation3 + $0xa0] sm:$0xf] %v4441_v61  ;;  %1463 = vst [vmem:[#allocation3 + $0x44] sm:$0xf] %v4455_v60  ;;  %2638 = vmatprep.mubr.bf16.mxu1 %v5138_v15  ;;  %v498_v27 = vadd.f32 %v497_v24, %v5767_v19  ;;  %v4443_v30 = vpack.c.bf16 %v546_v17, %v546_v17  ;;  %4712 = vmatprep.subr.bf16.mxu0 %v5149_v10  ;;  %v5169_v60 = vld [vmem:[%s6627_s5 + $0x118] sm:$0xff]   ;;  %v5191_v3 = vld [vmem:[%s6627_s5 + $0x1a0] sm:$0xff]  }
 0x1d8   :  { %602 = vst [vmem:[#allocation2 + $0x61] sm:$0xff] %v545_v1  ;;  %6666 = vst [vmem:[#allocation19_spill] sm:$0xff] %v5805_v13  ;;  %2639 = vmatmul.mubr.bf16.vlgmr.msra.gmra.mxu1 %v5136_v14  ;;  %v5820_v35 = vpop.f32.mrf.mxu1  ;;  %v5195_v8 = vld [vmem:[%s6627_s5 + $0x1d8] sm:$0xff]   ;;  %v5189_v33 = vld [vmem:[%s6627_s5 + $0x108] sm:$0xff]  }
 0x1d9   :  { %1464 = vst [vmem:[#allocation3 + $0x68] sm:$0xf] %v4550_v6  ;;  %984 = vst [vmem:[#allocation3 + $0x78] sm:$0xf] %v4471_v9  ;;  %v618_v21 = vld [vmem:[#allocation2 + $0x50] sm:$0xff]  ;;  %4773 = vmatpush3.bf16.msra.mxu1 %v5164_v12  ;;  %v547_v37 = vmax.f32 %v498_v27, 0.0 }
 0x1da   :  { %697 = vst [vmem:[#allocation3 + $0x90] sm:$0xf] %v4471_v9  ;;  %889 = vst [vmem:[#allocation3 + $0x98] sm:$0xf] %v4550_v6  ;;  %v810_v22 = vld [vmem:[#allocation2 + $0x52] sm:$0xff]  ;;  %v4425_v29 = vpack.c.bf16 %v618_v21, %v618_v21  ;;  %4774 = vmatprep.subr.bf16.mxu1 %v5173_v18  ;;  %v503_v42 = vpop.f32.mrf.mxu1  ;;  %4713 = vmatpush3.bf16.msra.mxu0 %v5151_v25  ;;  %v5187_v27 = vld [vmem:[%s6627_s5 + $0x148] sm:$0xff]  }
 0x1db   :  { %795 = vst [vmem:[#allocation3 + $0xdc] sm:$0xf] %v4442_v11  ;;  %1272 = vst [vmem:[#allocation3 + $0x60] sm:$0xf] %v4471_v9  ;;  %v4551_v26 = vpack.c.bf16 %v810_v22, %v810_v22  ;;  %v5142_v36 = vld [vmem:[#allocation3 + $0x48] ss:$36 sps:$4 sm:$0xff]   ;;  %v504_v44 = vadd.f32 %v503_v42, %v5767_v19  ;;  %v4491_v49 = vpack.c.bf16 %v547_v37, %v547_v37  ;;  %4714 = vmatprep.subr.bf16.mxu0 %v5157_v31 }
 0x1dc   :  { %1082 = vst [vmem:[#allocation3 + $0xc4] sm:$0xf] %v4442_v11  ;;  %1370 = vst [vmem:[#allocation3 + $0xac] sm:$0xf] %v4442_v11  ;;  %2550 = vmatmul.mubr.bf16.gmra.mxu0 %v5142_v36  ;;  %v5832_v50 = vpop.f32.mrf.mxu1  ;;  %v5146_v53 = vld [vmem:[#allocation3 + $0x50] ss:$36 sps:$4 sm:$0xff]  }
 0x1dd   :  { %1176 = vst [vmem:[#allocation3 + $0x80] sm:$0xf] %v4550_v6  ;;  %603 = vst [vmem:[#allocation2 + $0x71] sm:$0xff] %v546_v17  ;;  %4775 = vmatpush3.bf16.msra.mxu1 %v5174_v32  ;;  %v548_v54 = vmax.f32 %v504_v44, 0.0  ;;  %v5147_v5 = vld [vmem:[#allocation3 + $0x94] ss:$36 sps:$4 sm:$0xff]  }
 0x1de   :  { %6667 = vst [vmem:[#allocation20_spill] sm:$0xff] %v5820_v35  ;;  %1465 = vst [vmem:[#allocation3 + $0x8c] sm:$0xf] %v4551_v26  ;;  %4776 = vmatprep.subr.bf16.mxu1 %v5183_v38  ;;  %v507_v59 = vpop.f32.mrf.mxu1  ;;  %4715 = vmatpush3.bf16.msra.mxu0 %v5159_v46  ;;  %v5179_v17 = vld [vmem:[%s6627_s5 + $0x110] sm:$0xff]   ;;  %v5196_v18 = vld [vmem:[%s6627_s5 + $0x198] sm:$0xff]  }
 0x1df   :  { %698 = vst [vmem:[#allocation3 + $0xb4] sm:$0xf] %v4425_v29  ;;  %890 = vst [vmem:[#allocation3 + $0xbc] sm:$0xf] %v4551_v26  ;;  %v619_v40 = vld [vmem:[#allocation2 + $0x60] sm:$0xff]  ;;  %v508_v61 = vadd.f32 %v507_v59, %v5767_v19  ;;  %v4445_v1 = vpack.c.bf16 %v548_v54, %v548_v54  ;;  %4716 = vmatprep.subr.bf16.mxu0 %v5167_v55  ;;  %2557 = vmatprep.mubr.bf16.mxu0 %v5147_v5  ;;  %v5206_v42 = vld [vmem:[%s6627_s5 + $0x190] sm:$0xff]  }
 0x1e0   :  { %985 = vst [vmem:[#allocation3 + $0x9c] sm:$0xf] %v4425_v29  ;;  %796 = vst [vmem:[#allocation3 + $0x100] sm:$0xf] %v4443_v30  ;;  %v811_v41 = vld [vmem:[#allocation2 + $0x62] sm:$0xff]  ;;  %v4473_v45 = vpack.c.bf16 %v619_v40, %v619_v40  ;;  %v5850_v4 = vpop.f32.mrf.mxu1 }
 0x1e1   :  { %1273 = vst [vmem:[#allocation3 + $0x84] sm:$0xf] %v4425_v29  ;;  %1371 = vst [vmem:[#allocation3 + $0xd0] sm:$0xf] %v4443_v30  ;;  %v4458_v47 = vpack.c.bf16 %v811_v41, %v811_v41  ;;  %v5144_v51 = vld [vmem:[#allocation3 + $0x54] ss:$36 sps:$4 sm:$0xff]   ;;  %4777 = vmatpush3.bf16.msra.mxu1 %v5184_v48 }
 0x1e2   :  { %1083 = vst [vmem:[#allocation3 + $0xe8] sm:$0xf] %v4443_v30  ;;  %1177 = vst [vmem:[#allocation3 + $0xa4] sm:$0xf] %v4551_v26  ;;  %2646 = vmatprep.mubr.bf16.mxu1 %v5144_v51  ;;  %v549_v7 = vmax.f32 %v508_v61, 0.0  ;;  %4778 = vmatprep.subr.bf16.mxu1 %v5190_v56  ;;  %v513_v11 = vpop.f32.mrf.mxu1  ;;  %v5202_v29 = vld [vmem:[%s6627_s5 + $0x1d0] sm:$0xff]  }
 0x1e3   :  { %604 = vst [vmem:[#allocation2 + $0x81] sm:$0xff] %v547_v37  ;;  %6668 = vst [vmem:[#allocation21_spill] sm:$0xff] %v5832_v50  ;;  %2647 = vmatmul.mubr.bf16.gmra.mxu1 %v5146_v53  ;;  %v514_v12 = vadd.f32 %v513_v11, %v5767_v19  ;;  %4717 = vmatpush3.bf16.msra.mxu0 %v5169_v60  ;;  %v5199_v41 = vld [vmem:[%s6627_s5 + $0x140] sm:$0xff]   ;;  %v5210_v48 = vld [vmem:[%s6627_s5 + $0x1c8] sm:$0xff]  }
 0x1e4   :  { %986 = vst [vmem:[#allocation3 + $0xc0] sm:$0xf] %v4473_v45  ;;  %699 = vst [vmem:[#allocation3 + $0xd8] sm:$0xf] %v4473_v45  ;;  %v620_v57 = vld [vmem:[#allocation2 + $0x70] sm:$0xff]  ;;  %v4446_v15 = vpack.c.bf16 %v549_v7, %v549_v7  ;;  %v5862_v22 = vpop.f32.mrf.mxu1  ;;  %4718 = vmatprep.subr.bf16.mxu0 %v5177_v2  ;;  %v5211_v59 = vld [vmem:[%s6627_s5 + $0x188] sm:$0xff]  }
 0x1e5   :  { %891 = vst [vmem:[#allocation3 + $0xe0] sm:$0xf] %v4458_v47  ;;  %1178 = vst [vmem:[#allocation3 + $0xc8] sm:$0xf] %v4458_v47  ;;  %v812_v58 = vld [vmem:[#allocation2 + $0x72] sm:$0xff]  ;;  %v4427_v63 = vpack.c.bf16 %v620_v57, %v620_v57  ;;  %4779 = vmatpush3.bf16.msra.mxu1 %v5191_v3  ;;  %v550_v26 = vmax.f32 %v514_v12, 0.0 }
 0x1e6   :  { %1274 = vst [vmem:[#allocation3 + $0xa8] sm:$0xf] %v4473_v45  ;;  %1084 = vst [vmem:[#allocation3 + $0x10c] sm:$0xf] %v4491_v49  ;;  %v4459_v0 = vpack.c.bf16 %v812_v58, %v812_v58  ;;  %v5150_v6 = vld [vmem:[#allocation3 + $0x90] ss:$36 sps:$4 sm:$0xff]   ;;  %4780 = vmatprep.subr.bf16.mxu1 %v5195_v8  ;;  %v517_v32 = vpop.f32.mrf.mxu1 }
 0x1e7   :  { %1372 = vst [vmem:[#allocation3 + $0xf4] sm:$0xf] %v4491_v49  ;;  %1466 = vst [vmem:[#allocation3 + $0xb0] sm:$0xf] %v4458_v47  ;;  %2558 = vmatmul.mubr.bf16.gmra.mxu0 %v5150_v6  ;;  %v5154_v25 = vld [vmem:[#allocation3 + $0x98] ss:$36 sps:$4 sm:$0xff]   ;;  %v518_v36 = vadd.f32 %v517_v32, %v5767_v19  ;;  %v4447_v40 = vpack.c.bf16 %v550_v26, %v550_v26 }
 0x1e8   :  { %605 = vst [vmem:[#allocation2 + $0xb1] sm:$0xff] %v548_v54  ;;  %6669 = vst [vmem:[#allocation22_spill] sm:$0xff] %v5850_v4  ;;  %v5880_v44 = vpop.f32.mrf.mxu1  ;;  %v5155_v45 = vld [vmem:[#allocation3 + $0xdc] ss:$36 sps:$4 sm:$0xff]   ;;  %4719 = vmatpush3.bf16.msra.mxu0 %v5179_v17 }
 0x1e9   :  { %700 = vst [vmem:[#allocation3 + $0xfc] sm:$0xf] %v4427_v63  ;;  %892 = vst [vmem:[#allocation3 + $0x104] sm:$0xf] %v4459_v0  ;;  %4781 = vmatpush3.bf16.msra.mxu1 %v5196_v18  ;;  %v551_v47 = vmax.f32 %v518_v36, 0.0  ;;  %4720 = vmatprep.subr.bf16.mxu0 %v5187_v27  ;;  %v5201_v58 = vld [vmem:[%s6627_s5 + $0x100] sm:$0xff]  }
 0x1ea   :  { %987 = vst [vmem:[#allocation3 + $0xe4] sm:$0xf] %v4427_v63  ;;  %798 = vst [vmem:[#allocation3 + $0x148] sm:$0xf] %v4445_v1  ;;  %v908_v9 = vld [vmem:[#allocation2 + $0x80] sm:$0xff]  ;;  %4782 = vmatprep.subr.bf16.mxu1 %v5202_v29  ;;  %v523_v53 = vpop.f32.mrf.mxu1  ;;  %2565 = vmatprep.mubr.bf16.mxu0 %v5155_v45 }
 0x1eb   :  { %1275 = vst [vmem:[#allocation3 + $0xcc] sm:$0xf] %v4427_v63  ;;  %1179 = vst [vmem:[#allocation3 + $0xec] sm:$0xf] %v4459_v0  ;;  %v1100_v10 = vld [vmem:[#allocation2 + $0x82] sm:$0xff]  ;;  %v4475_v14 = vpack.c.bf16 %v908_v9, %v908_v9  ;;  %v524_v54 = vadd.f32 %v523_v53, %v5767_v19  ;;  %v4448_v57 = vpack.c.bf16 %v551_v47, %v551_v47 }
 0x1ec   :  { %1085 = vst [vmem:[#allocation3 + $0x130] sm:$0xf] %v4445_v1  ;;  %1467 = vst [vmem:[#allocation3 + $0xd4] sm:$0xf] %v4459_v0  ;;  %v4507_v21 = vpack.c.bf16 %v1100_v10, %v1100_v10  ;;  %v5152_v24 = vld [vmem:[#allocation3 + $0x9c] ss:$36 sps:$4 sm:$0xff]   ;;  %v5892_v60 = vpop.f32.mrf.mxu1  ;;  %4721 = vmatpush3.bf16.msra.mxu0 %v5189_v33 }
 0x1ed   :  { %606 = vst [vmem:[#allocation2 + $0xc1] sm:$0xff] %v549_v7  ;;  %6670 = vst [vmem:[#allocation23_spill] sm:$0xff] %v5862_v22  ;;  %2654 = vmatprep.mubr.bf16.mxu1 %v5152_v24  ;;  %4783 = vmatpush3.bf16.msra.mxu1 %v5206_v42  ;;  %v552_v0 = vmax.f32 %v524_v54, 0.0  ;;  %v5897_v1 = vld [vmem:[%s6627_s5 + $0x238] sm:$0xff]   ;;  %v5216_v2 = vld [vmem:[%s6627_s5 + $0x1c0] sm:$0xff]  }
 0x1ee   :  { %988 = vst [vmem:[#allocation3 + $0x108] sm:$0xf] %v4475_v14  ;;  %799 = vst [vmem:[#allocation3 + $0x16c] sm:$0xf] %v4446_v15  ;;  %2655 = vmatmul.mubr.bf16.gmra.mxu1 %v5154_v25  ;;  %4722 = vmatprep.subr.bf16.mxu0 %v5199_v41  ;;  %v527_v6 = vpop.f32.mrf.mxu1  ;;  %v5219_v11 = vld [vmem:[%s6627_s5 + $0x180] sm:$0xff]  }
 0x1ef   :  { %1180 = vst [vmem:[#allocation3 + $0x110] sm:$0xf] %v4507_v21  ;;  %1276 = vst [vmem:[#allocation3 + $0xf0] sm:$0xf] %v4475_v14  ;;  %v622_v30 = vld [vmem:[#allocation2 + $0xb0] sm:$0xff]  ;;  %4784 = vmatprep.subr.bf16.mxu1 %v5210_v48  ;;  %v528_v7 = vadd.f32 %v527_v6, %v5767_v19  ;;  %v4449_v10 = vpack.c.bf16 %v552_v0, %v552_v0 }
 0x1f0   :  { %1086 = vst [vmem:[#allocation3 + $0x154] sm:$0xf] %v4446_v15  ;;  %1374 = vst [vmem:[#allocation3 + $0x13c] sm:$0xf] %v4446_v15  ;;  %v814_v31 = vld [vmem:[#allocation2 + $0xb2] sm:$0xff]  ;;  %v4429_v37 = vpack.c.bf16 %v622_v30, %v622_v30  ;;  %v5906_v12 = vpop.f32.mrf.mxu1  ;;  %4723 = vmatpush3.bf16.msra.mxu0 %v5201_v58 }
 0x1f1   :  { %1468 = vst [vmem:[#allocation3 + $0xf8] sm:$0xf] %v4507_v21  ;;  %607 = vst [vmem:[#allocation2 + $0xd1] sm:$0xff] %v550_v26  ;;  %v4461_v38 = vpack.c.bf16 %v814_v31, %v814_v31  ;;  %v5158_v46 = vld [vmem:[#allocation3 + $0xd8] ss:$36 sps:$4 sm:$0xff]   ;;  %4785 = vmatpush3.bf16.msra.mxu1 %v5211_v59  ;;  %v553_v17 = vmax.f32 %v528_v7, 0.0  ;;  %4927 = vmatprep.subr.bf16.mxu0 %v5897_v1 }
 0x1f2   :  { %6671 = vst [vmem:[#allocation24_spill] sm:$0xff] %v5880_v44  ;;  %702 = vst [vmem:[#allocation3 + $0x144] sm:$0xf] %v4429_v37  ;;  %2566 = vmatmul.mubr.bf16.gmra.mxu0 %v5158_v46  ;;  %v5162_v63 = vld [vmem:[#allocation3 + $0xe0] ss:$36 sps:$4 sm:$0xff]   ;;  %4786 = vmatprep.subr.bf16.mxu1 %v5216_v2  ;;  %v533_v24 = vpop.f32.mrf.mxu1 }
 0x1f3   :  { %894 = vst [vmem:[#allocation3 + $0x14c] sm:$0xf] %v4461_v38  ;;  %989 = vst [vmem:[#allocation3 + $0x12c] sm:$0xf] %v4429_v37  ;;  %v5165_v14 = vld [vmem:[#allocation3 + $0x124] ss:$36 sps:$4 sm:$0xff]   ;;  %v534_v25 = vadd.f32 %v533_v24, %v5767_v19  ;;  %v4450_v29 = vpack.c.bf16 %v553_v17, %v553_v17 }
 0x1f4   :  { %800 = vst [vmem:[#allocation3 + $0x190] sm:$0xf] %v4447_v40  ;;  %1181 = vst [vmem:[#allocation3 + $0x134] sm:$0xf] %v4461_v38  ;;  %v623_v49 = vld [vmem:[#allocation2 + $0xc0] sm:$0xff]  ;;  %2573 = vmatprep.mubr.bf16.mxu0 %v5165_v14  ;;  %v5910_v30 = vpop.f32.mrf.mxu1 }
 0x1f5   :  { %1375 = vst [vmem:[#allocation3 + $0x160] sm:$0xf] %v4447_v40  ;;  %1087 = vst [vmem:[#allocation3 + $0x178] sm:$0xf] %v4447_v40  ;;  %v815_v51 = vld [vmem:[#allocation2 + $0xc2] sm:$0xff]  ;;  %v4477_v55 = vpack.c.bf16 %v623_v49, %v623_v49  ;;  %4787 = vmatpush3.bf16.msra.mxu1 %v5219_v11  ;;  %v554_v33 = vmax.f32 %v534_v25, 0.0 }
 0x1f6   :  { %608 = vst [vmem:[#allocation2 + $0xe1] sm:$0xff] %v551_v47  ;;  %v4462_v56 = vpack.c.bf16 %v815_v51, %v815_v51  ;;  %6672 = vst [vmem:[#allocation25_spill] sm:$0xff] %v5892_v60  ;;  %v5160_v61 = vld [vmem:[#allocation3 + $0xe4] ss:$36 sps:$4 sm:$0xff]   ;;  %4991 = vmatprep.subr.bf16.mxu1 %v5388_v39  ;;  %v537_v38 = vpop.f32.mrf.mxu1  ;;  %v5212_v24 = vld [vmem:[#allocation3 + $0x18] ss:$36 sps:$4 sm:$0xff]  }
 0x1f7   :  { %990 = vst [vmem:[#allocation3 + $0x150] sm:$0xf] %v4477_v55  ;;  %703 = vst [vmem:[#allocation3 + $0x168] sm:$0xf] %v4477_v55  ;;  %2662 = vmatprep.mubr.bf16.mxu1 %v5160_v61  ;;  %v538_v40 = vadd.f32 %v537_v38, %v5767_v19  ;;  %v4451_v45 = vpack.c.bf16 %v554_v33, %v554_v33  ;;  %v5228_v25 = vld [vmem:[%s6627_s5 + $0x228] sm:$0xff]  }
 0x1f8   :  { %895 = vst [vmem:[#allocation3 + $0x170] sm:$0xf] %v4462_v56  ;;  %801 = vst [vmem:[#allocation3 + $0x1b4] sm:$0xf] %v4448_v57  ;;  %v624_v3 = vld [vmem:[#allocation2 + $0xd0] sm:$0xff]  ;;  %2663 = vmatmul.mubr.bf16.gmra.mxu1 %v5162_v63 }
 0x1f9   :  { %1182 = vst [vmem:[#allocation3 + $0x158] sm:$0xf] %v4462_v56  ;;  %1278 = vst [vmem:[#allocation3 + $0x138] sm:$0xf] %v4477_v55  ;;  %v816_v5 = vld [vmem:[#allocation2 + $0xd2] sm:$0xff]  ;;  %v4431_v8 = vpack.c.bf16 %v624_v3, %v624_v3  ;;  %v555_v48 = vmax.f32 %v538_v40, 0.0 }
 0x1fa   :  { %1088 = vst [vmem:[#allocation3 + $0x19c] sm:$0xf] %v4448_v57  ;;  %1376 = vst [vmem:[#allocation3 + $0x184] sm:$0xf] %v4448_v57  ;;  %v4463_v9 = vpack.c.bf16 %v816_v5, %v816_v5  ;;  %v5168_v15 = vld [vmem:[#allocation3 + $0x120] ss:$36 sps:$4 sm:$0xff]  }
 0x1fb   :  { %1470 = vst [vmem:[#allocation3 + $0x140] sm:$0xf] %v4462_v56  ;;  %609 = vst [vmem:[#allocation2 + $0xf1] sm:$0xff] %v552_v0  ;;  %2574 = vmatmul.mubr.bf16.gmra.mxu0 %v5168_v15  ;;  %v5172_v32 = vld [vmem:[#allocation3 + $0x128] ss:$36 sps:$4 sm:$0xff]   ;;  %v4499_v53 = vpack.c.bf16 %v555_v48, %v555_v48  ;;  %v1500_v40 = vld [vmem:[#allocation3 + $0xa0] sm:$0xff] }
 0x1fc   :  { %6673 = vst [vmem:[#allocation26_spill] sm:$0xff] %v5906_v12  ;;  %704 = vst [vmem:[#allocation3 + $0x18c] sm:$0xf] %v4431_v8  ;;  %v5175_v46 = vld [vmem:[#allocation3 + $0x16c] ss:$36 sps:$4 sm:$0xff]  }
 0x1fd   :  { %896 = vst [vmem:[#allocation3 + $0x194] sm:$0xf] %v4463_v9  ;;  %991 = vst [vmem:[#allocation3 + $0x174] sm:$0xf] %v4431_v8  ;;  %v625_v18 = vld [vmem:[#allocation2 + $0xe0] sm:$0xff]  ;;  %2581 = vmatprep.mubr.bf16.mxu0 %v5175_v46 }
 0x1fe   :  { %802 = vst [vmem:[#allocation3 + $0x1d8] sm:$0xf] %v4449_v10  ;;  %1279 = vst [vmem:[#allocation3 + $0x15c] sm:$0xf] %v4431_v8  ;;  %v817_v21 = vld [vmem:[#allocation2 + $0xe2] sm:$0xff]  ;;  %v4479_v26 = vpack.c.bf16 %v625_v18, %v625_v18  ;;  %v5222_v18 = vld [vmem:[%s6627_s5 + $0x230] sm:$0xff]  }
 0x1ff   :  { %1183 = vst [vmem:[#allocation3 + $0x17c] sm:$0xf] %v4463_v9  ;;  %1377 = vst [vmem:[#allocation3 + $0x1a8] sm:$0xf] %v4449_v10  ;;  %v4464_v27 = vpack.c.bf16 %v817_v21, %v817_v21  ;;  %v5170_v31 = vld [vmem:[#allocation3 + $0x12c] ss:$36 sps:$4 sm:$0xff]  }
 0x200   :  { %1089 = vst [vmem:[#allocation3 + $0x1c0] sm:$0xf] %v4449_v10  ;;  %1471 = vst [vmem:[#allocation3 + $0x164] sm:$0xf] %v4463_v9  ;;  %2670 = vmatprep.mubr.bf16.mxu1 %v5170_v31  ;;  %v5205_v10 = vld [vmem:[#allocation3 + $0x14] ss:$36 sps:$4 sm:$0xff]  }
 0x201   :  { %610 = vst [vmem:[#allocation2 + $0x101] sm:$0xff] %v553_v17  ;;  %6674 = vst [vmem:[#allocation27_spill] sm:$0xff] %v5910_v30  ;;  %2671 = vmatmul.mubr.bf16.gmra.mxu1 %v5172_v32  ;;  %v5214_v15 = vld [vmem:[#allocation3 + $0x1c] ss:$36 sps:$4 sm:$0xff]   ;;  %v5203_v17 = vld [vmem:[#allocation3 + $0x10] ss:$36 sps:$4 sm:$0xff]  }
 0x202   :  { %992 = vst [vmem:[#allocation3 + $0x198] sm:$0xf] %v4479_v26  ;;  %705 = vst [vmem:[#allocation3 + $0x1b0] sm:$0xf] %v4479_v26  ;;  %v626_v36 = vld [vmem:[#allocation2 + $0xf0] sm:$0xff]  ;;  %v5234_v32 = vld [vmem:[%s6627_s5 + $0x220] sm:$0xff]  }
 0x203   :  { %897 = vst [vmem:[#allocation3 + $0x1b8] sm:$0xf] %v4464_v27  ;;  %803 = vst [vmem:[#allocation3 + $0x1fc] sm:$0xf] %v4450_v29  ;;  %v818_v37 = vld [vmem:[#allocation2 + $0xf2] sm:$0xff]  ;;  %v4433_v41 = vpack.c.bf16 %v626_v36, %v626_v36 }
 0x204   :  { %1184 = vst [vmem:[#allocation3 + $0x1a0] sm:$0xf] %v4464_v27  ;;  %1280 = vst [vmem:[#allocation3 + $0x180] sm:$0xf] %v4479_v26  ;;  %v4465_v42 = vpack.c.bf16 %v818_v37, %v818_v37  ;;  %v5178_v47 = vld [vmem:[#allocation3 + $0x168] ss:$36 sps:$4 sm:$0xff]  }
 0x205   :  { %1090 = vst [vmem:[#allocation3 + $0x1e4] sm:$0xf] %v4450_v29  ;;  %1378 = vst [vmem:[#allocation3 + $0x1cc] sm:$0xf] %v4450_v29  ;;  %2582 = vmatmul.mubr.bf16.gmra.mxu0 %v5178_v47  ;;  %v5182_v55 = vld [vmem:[#allocation3 + $0x170] ss:$36 sps:$4 sm:$0xff]  }
 0x206   :  { %1472 = vst [vmem:[#allocation3 + $0x188] sm:$0xf] %v4464_v27  ;;  %611 = vst [vmem:[#allocation2 + $0x111] sm:$0xff] %v554_v33  ;;  %v5185_v61 = vld [vmem:[#allocation3 + $0x1b4] ss:$36 sps:$4 sm:$0xff]   ;;  %v1495_v26 = vld [vmem:[#allocation3 + $0x7c] sm:$0xff] }
 0x207   :  { %706 = vst [vmem:[#allocation3 + $0x1d4] sm:$0xf] %v4433_v41  ;;  %898 = vst [vmem:[#allocation3 + $0x1dc] sm:$0xf] %v4465_v42  ;;  %2589 = vmatprep.mubr.bf16.mxu0 %v5185_v61  ;;  %v5217_v21 = vld [vmem:[#allocation3 + $0x5c] ss:$36 sps:$4 sm:$0xff]  }
 0x208   :  { %993 = vst [vmem:[#allocation3 + $0x1bc] sm:$0xf] %v4433_v41  ;;  %804 = vst [vmem:[#allocation3 + $0x220] sm:$0xf] %v4451_v45  ;;  %v627_v39 = vld [vmem:[#allocation2 + $0x100] sm:$0xff]  ;;  %v1490_v29 = vld [vmem:[#allocation3 + $0x58] sm:$0xff] }
 0x209   :  { %1281 = vst [vmem:[#allocation3 + $0x1a4] sm:$0xf] %v4433_v41  ;;  %1185 = vst [vmem:[#allocation3 + $0x1c4] sm:$0xf] %v4465_v42  ;;  %v819_v49 = vld [vmem:[#allocation2 + $0x102] sm:$0xff]  ;;  %v4481_v19 = vpack.c.bf16 %v627_v39, %v627_v39  ;;  %v4250_v31 = vcombine.low %v1490_v29, %v1495_v26  ;;  %v5240_v36 = vld [vmem:[%s6627_s5 + $0x218] sm:$0xff]  }
 0x20a   :  { %1379 = vst [vmem:[#allocation3 + $0x1f0] sm:$0xf] %v4451_v45  ;;  %1091 = vst [vmem:[#allocation3 + $0x208] sm:$0xf] %v4451_v45  ;;  %v4466_v51 = vpack.c.bf16 %v819_v49, %v819_v49  ;;  %v5180_v54 = vld [vmem:[#allocation3 + $0x174] ss:$36 sps:$4 sm:$0xff]  }
 0x20b   :  { %1473 = vst [vmem:[#allocation3 + $0x1ac] sm:$0xf] %v4465_v42  ;;  %612 = vst [vmem:[#allocation2 + $0x121] sm:$0xff] %v555_v48  ;;  %2678 = vmatprep.mubr.bf16.mxu1 %v5180_v54  ;;  %v5220_v27 = vld [vmem:[#allocation3 + $0x64] ss:$36 sps:$4 sm:$0xff]   ;;  %v5246_v42 = vld [vmem:[%s6627_s5 + $0x210] sm:$0xff]  }
 0x20c   :  { %994 = vst [vmem:[#allocation3 + $0x1e0] sm:$0xf] %v4481_v19  ;;  %707 = vst [vmem:[#allocation3 + $0x1f8] sm:$0xf] %v4481_v19  ;;  %2679 = vmatmul.mubr.bf16.gmra.mxu1 %v5182_v55  ;;  %v5225_v33 = vld [vmem:[#allocation3 + $0x60] ss:$36 sps:$4 sm:$0xff]  }
 0x20d   :  { %899 = vst [vmem:[#allocation3 + $0x200] sm:$0xf] %v4466_v51  ;;  %1186 = vst [vmem:[#allocation3 + $0x1e8] sm:$0xf] %v4466_v51  ;;  %v628_v56 = vld [vmem:[#allocation2 + $0x110] sm:$0xff]  ;;  %v1505_v37 = vld [vmem:[#allocation3 + $0xc4] sm:$0xff] }
 0x20e   :  { %1282 = vst [vmem:[#allocation3 + $0x1c8] sm:$0xf] %v4481_v19  ;;  %1092 = vst [vmem:[#allocation3 + $0x22c] sm:$0xf] %v4499_v53  ;;  %v820_v57 = vld [vmem:[#allocation2 + $0x112] sm:$0xff]  ;;  %v4435_v58 = vpack.c.bf16 %v628_v56, %v628_v56  ;;  %v4259_v41 = vcombine.low %v1500_v40, %v1505_v37  ;;  %v5252_v47 = vld [vmem:[%s6627_s5 + $0x208] sm:$0xff]  }
 0x20f   :  { %1380 = vst [vmem:[#allocation3 + $0x214] sm:$0xf] %v4499_v53  ;;  %1474 = vst [vmem:[#allocation3 + $0x1d0] sm:$0xf] %v4466_v51  ;;  %v4467_v59 = vpack.c.bf16 %v820_v57, %v820_v57  ;;  %v5188_v63 = vld [vmem:[#allocation3 + $0x1b0] ss:$36 sps:$4 sm:$0xff]  }
 0x210   :  { %708 = vst [vmem:[#allocation3 + $0x21c] sm:$0xf] %v4435_v58  ;;  %995 = vst [vmem:[#allocation3 + $0x204] sm:$0xf] %v4435_v58  ;;  %2590 = vmatmul.mubr.bf16.gmra.mxu0 %v5188_v63  ;;  %v5194_v7 = vld [vmem:[#allocation3 + $0x1b8] ss:$36 sps:$4 sm:$0xff]  }
 0x211   :  { %900 = vst [vmem:[#allocation3 + $0x224] sm:$0xf] %v4467_v59  ;;  %1283 = vst [vmem:[#allocation3 + $0x1ec] sm:$0xf] %v4435_v58  ;;  %v5197_v8 = vld [vmem:[#allocation3 + $0x1fc] ss:$36 sps:$4 sm:$0xff]  }
 0x212   :  { %1187 = vst [vmem:[#allocation3 + $0x20c] sm:$0xf] %v4467_v59  ;;  %1475 = vst [vmem:[#allocation3 + $0x1f4] sm:$0xf] %v4467_v59  ;;  %v916_v0 = vld [vmem:[#allocation2 + $0x120] sm:$0xff]  ;;  %2597 = vmatprep.mubr.bf16.mxu0 %v5197_v8  ;;  %v1515_v48 = vld [vmem:[#allocation3 + $0x10c] sm:$0xff] }
 0x213   :  { %v1108_v2 = vld [vmem:[#allocation2 + $0x122] sm:$0xff]  ;;  %v4483_v3 = vpack.c.bf16 %v916_v0, %v916_v0  ;;  %v5226_v38 = vld [vmem:[#allocation3 + $0xac] ss:$36 sps:$4 sm:$0xff]   ;;  %v5232_v39 = vld [vmem:[#allocation3 + $0xf4] ss:$36 sps:$4 sm:$0xff]  }
 0x214   :  { %v4515_v5 = vpack.c.bf16 %v1108_v2, %v1108_v2  ;;  %v5192_v6 = vld [vmem:[#allocation3 + $0x1bc] ss:$36 sps:$4 sm:$0xff]   ;;  %v5229_v45 = vld [vmem:[#allocation3 + $0xec] ss:$36 sps:$4 sm:$0xff]   ;;  %v5235_v53 = vld [vmem:[#allocation3 + $0x134] ss:$36 sps:$4 sm:$0xff]  }
 0x215   :  { %996 = vst [vmem:[#allocation3 + $0x228] sm:$0xf] %v4483_v3  ;;  %1284 = vst [vmem:[#allocation3 + $0x210] sm:$0xf] %v4483_v3  ;;  %2686 = vmatprep.mubr.bf16.mxu1 %v5192_v6  ;;  %v5231_v46 = vld [vmem:[#allocation3 + $0xa8] ss:$36 sps:$4 sm:$0xff]  }
 0x216   :  { %1188 = vst [vmem:[#allocation3 + $0x230] sm:$0xf] %v4515_v5  ;;  %1476 = vst [vmem:[#allocation3 + $0x218] sm:$0xf] %v4515_v5  ;;  %2687 = vmatmul.mubr.bf16.gmra.mxu1 %v5194_v7  ;;  %v1510_v49 = vld [vmem:[#allocation3 + $0xe8] sm:$0xff]  ;;  %v5258_v51 = vld [vmem:[%s6627_s5 + $0x200] sm:$0xff]  }
 0x217   :  { %v5200_v9 = vld [vmem:[#allocation3 + $0x1f8] ss:$36 sps:$4 sm:$0xff]   ;;  %v4268_v19 = vcombine.low %v1510_v49, %v1515_v48  ;;  %v5237_v54 = vld [vmem:[#allocation3 + $0xf0] ss:$36 sps:$4 sm:$0xff]   ;;  %v5244_v0 = vld [vmem:[#allocation3 + $0x184] ss:$36 sps:$4 sm:$0xff]  }
 0x218   :  { %2598 = vmatmul.mubr.bf16.gmra.mxu0 %v5200_v9  ;;  %v5209_v14 = vld [vmem:[#allocation3 + $0x200] ss:$36 sps:$4 sm:$0xff]   ;;  %v1525_v55 = vld [vmem:[#allocation3 + $0x154] sm:$0xff]  ;;  %v5250_v8 = vld [vmem:[#allocation3 + $0x1cc] ss:$36 sps:$4 sm:$0xff]  }
 0x219   :  { %2735 = vmatprep.mubr.bf16.mxu0 %v5205_v10  ;;  %v5238_v56 = vld [vmem:[#allocation3 + $0x13c] ss:$36 sps:$4 sm:$0xff]   ;;  %v1520_v57 = vld [vmem:[#allocation3 + $0x130] sm:$0xff]  ;;  %v5247_v5 = vld [vmem:[#allocation3 + $0x1c4] ss:$36 sps:$4 sm:$0xff]  }
 0x21a   :  { %v4277_v58 = vcombine.low %v1520_v57, %v1525_v55  ;;  %v5241_v59 = vld [vmem:[#allocation3 + $0x17c] ss:$36 sps:$4 sm:$0xff]   ;;  %v1545_v7 = vld [vmem:[#allocation3 + $0x1e4] sm:$0xff]  ;;  %v5269_v37 = vld [vmem:[%s6629_s7 + $0x30] sm:$0xff]  }
 0x21b   :  { %v5243_v61 = vld [vmem:[#allocation3 + $0x138] ss:$36 sps:$4 sm:$0xff]   ;;  %v5249_v6 = vld [vmem:[#allocation3 + $0x180] ss:$36 sps:$4 sm:$0xff]   ;;  %v5261_v26 = vld [vmem:[#allocation3 + $0x68] ss:$36 sps:$4 sm:$0xff]  }
 0x21c   :  { %v5207_v11 = vld [vmem:[#allocation3 + $0x204] ss:$36 sps:$4 sm:$0xff]   ;;  %v1535_v63 = vld [vmem:[#allocation3 + $0x19c] sm:$0xff] }
 0x21d   :  { %2694 = vmatprep.mubr.bf16.mxu1 %v5207_v11  ;;  %v1530_v2 = vld [vmem:[#allocation3 + $0x178] sm:$0xff]  ;;  %v1540_v9 = vld [vmem:[#allocation3 + $0x1c0] sm:$0xff]  ;;  %v5253_v11 = vld [vmem:[#allocation3 + $0x20c] ss:$36 sps:$4 sm:$0xff]  }
 0x21e   :  { %2695 = vmatmul.mubr.bf16.gmra.mxu1 %v5209_v14  ;;  %v4286_v3 = vcombine.low %v1530_v2, %v1535_v63  ;;  %v4295_v10 = vcombine.low %v1540_v9, %v1545_v7  ;;  %v5255_v14 = vld [vmem:[#allocation3 + $0x1c8] ss:$36 sps:$4 sm:$0xff]   ;;  %v5263_v29 = vld [vmem:[#allocation3 + $0xf8] ss:$36 sps:$4 sm:$0xff]   ;;  %v5271_v40 = vld [vmem:[%s6629_s7 + $0x20] sm:$0xff]  }
 0x21f   :  { %2832 = vmatprep.mubr.bf16.mxu1 %v5214_v15  ;;  %v1555_v15 = vld [vmem:[#allocation3 + $0x22c] sm:$0xff]  ;;  %v5957_v48 = vld [vmem:[%s6628_s6] ss:$0 sm:$0xff] }
 0x220   :  { %2736 = vmatmul.mubr.bf16.vlgmr.msra.gmra.mxu0 %v5203_v17  ;;  %v5256_v17 = vld [vmem:[#allocation3 + $0x214] ss:$36 sps:$4 sm:$0xff]   ;;  %6675 = vst [vmem:[#allocation28_spill] sm:$0xff] %v5957_v48 }
 0x221   :  { %4928 = vmatpush3.bf16.msra.mxu0 %v5897_v1  ;;  %2743 = vmatprep.mubr.bf16.mxu0 %v5217_v21  ;;  %v5223_v1 = vld [vmem:[#allocation3 + $0xa4] ss:$36 sps:$4 sm:$0xff]  }
 0x222   :  { %4929 = vmatprep.subr.bf16.mxu0 %v5222_v18 }
 0x225   :  { %4930 = vmatpush3.bf16.msra.mxu0 %v5222_v18  ;;  %v1550_v18 = vld [vmem:[#allocation3 + $0x208] sm:$0xff] }
 0x226   :  { %2833 = vmatmul.mubr.bf16.vlgmr.msra.gmra.mxu1 %v5212_v24  ;;  %4931 = vmatprep.subr.bf16.mxu0 %v5228_v25  ;;  %v4304_v21 = vcombine.low %v1550_v18, %v1555_v15  ;;  %v5259_v24 = vld [vmem:[#allocation3 + $0x20] ss:$36 sps:$4 sm:$0xff]  }
 0x227   :  { %2840 = vmatprep.mubr.bf16.mxu1 %v5220_v27  ;;  %v5262_v27 = vld [vmem:[#allocation3 + $0xb0] ss:$36 sps:$4 sm:$0xff]  }
 0x228   :  { %2744 = vmatmul.mubr.bf16.gmra.mxu0 %v4250_v31  ;;  %v5264_v31 = vld [vmem:[#allocation3 + $0x140] ss:$36 sps:$4 sm:$0xff]  }
 0x229   :  { %2751 = vmatprep.mubr.bf16.mxu0 %v5223_v1  ;;  %4932 = vmatpush3.bf16.msra.mxu0 %v5228_v25  ;;  %v5260_v25 = vld [vmem:[#allocation3 + $0x210] ss:$36 sps:$4 sm:$0xff]  }
 0x22a   :  { %4933 = vmatprep.subr.bf16.mxu0 %v5234_v32  ;;  %v5266_v1 = vld [vmem:[#allocation3 + $0x1d0] ss:$36 sps:$4 sm:$0xff]  }
 0x22d   :  { %4934 = vmatpush3.bf16.msra.mxu0 %v5234_v32  ;;  %v5265_v32 = vld [vmem:[#allocation3 + $0x188] ss:$36 sps:$4 sm:$0xff]  }
 0x22e   :  { %2841 = vmatmul.mubr.bf16.gmra.mxu1 %v5225_v33  ;;  %4935 = vmatprep.subr.bf16.mxu0 %v5240_v36  ;;  %v5267_v33 = vld [vmem:[#allocation3 + $0x218] ss:$36 sps:$4 sm:$0xff]  }
 0x22f   :  { %2848 = vmatprep.mubr.bf16.mxu1 %v5226_v38  ;;  %v5270_v38 = vld [vmem:[%s6629_s7 + $0x28] sm:$0xff]  }
 0x230   :  { %2752 = vmatmul.mubr.bf16.gmra.mxu0 %v4259_v41  ;;  %v5272_v41 = vld [vmem:[%s6629_s7 + $0x18] sm:$0xff]  }
 0x231   :  { %2759 = vmatprep.mubr.bf16.mxu0 %v5229_v45  ;;  %4936 = vmatpush3.bf16.msra.mxu0 %v5240_v36  ;;  %v5268_v36 = vld [vmem:[%s6629_s7 + $0x38] sm:$0xff]  }
 0x232   :  { %4937 = vmatprep.subr.bf16.mxu0 %v5246_v42 }
 0x235   :  { %4938 = vmatpush3.bf16.msra.mxu0 %v5246_v42 }
 0x236   :  { %2849 = vmatmul.mubr.bf16.gmra.mxu1 %v5231_v46  ;;  %4939 = vmatprep.subr.bf16.mxu0 %v5252_v47 }
 0x237   :  { %2856 = vmatprep.mubr.bf16.mxu1 %v5232_v39 }
 0x238   :  { %2760 = vmatmul.mubr.bf16.gmra.mxu0 %v4268_v19 }
 0x239   :  { %2767 = vmatprep.mubr.bf16.mxu0 %v5235_v53  ;;  %4940 = vmatpush3.bf16.msra.mxu0 %v5252_v47  ;;  %v5273_v47 = vld [vmem:[%s6629_s7 + $0x10] sm:$0xff]  }
 0x23a   :  { %4941 = vmatprep.subr.bf16.mxu0 %v5258_v51 }
 0x23d   :  { %4942 = vmatpush3.bf16.msra.mxu0 %v5258_v51 }
 0x23e   :  { %2857 = vmatmul.mubr.bf16.gmra.mxu1 %v5237_v54  ;;  %4959 = vmatprep.subr.bf16.mxu0 %v5268_v36 }
 0x23f   :  { %2864 = vmatprep.mubr.bf16.mxu1 %v5238_v56  ;;  %v5274_v56 = vld [vmem:[%s6629_s7 + $0x8] sm:$0xff]  }
 0x240   :  { %2768 = vmatmul.mubr.bf16.gmra.mxu0 %v4277_v58 }
 0x241   :  { %2775 = vmatprep.mubr.bf16.mxu0 %v5241_v59 }
 0x246   :  { %2865 = vmatmul.mubr.bf16.gmra.mxu1 %v5243_v61 }
 0x247   :  { %2872 = vmatprep.mubr.bf16.mxu1 %v5244_v0 }
 0x248   :  { %2776 = vmatmul.mubr.bf16.gmra.mxu0 %v4286_v3 }
 0x249   :  { %2783 = vmatprep.mubr.bf16.mxu0 %v5247_v5  ;;  %v5275_v5 = vld [vmem:[%s6629_s7] sm:$0xff]  }
 0x24e   :  { %2873 = vmatmul.mubr.bf16.gmra.mxu1 %v5249_v6 }
 0x24f   :  { %2880 = vmatprep.mubr.bf16.mxu1 %v5250_v8 }
 0x250   :  { %2784 = vmatmul.mubr.bf16.gmra.mxu0 %v4295_v10 }
 0x251   :  { %2791 = vmatprep.mubr.bf16.mxu0 %v5253_v11 }
 0x256   :  { %2881 = vmatmul.mubr.bf16.gmra.mxu1 %v5255_v14 }
 0x257   :  { %2888 = vmatprep.mubr.bf16.mxu1 %v5256_v17  ;;  %v5972_v17 = vld [vmem:[#allocation2] sm:$0xff] }
 0x258   :  { %2792 = vmatmul.mubr.bf16.gmra.mxu0 %v4304_v21  ;;  %6676 = vst [vmem:[#allocation29_spill] sm:$0xff] %v5972_v17 }
 0x259   :  { %4943 = vmatprep.mubr.bf16.mxu0 %v5259_v24 }
 0x25e   :  { %2889 = vmatmul.mubr.bf16.gmra.mxu1 %v5260_v25 }
 0x260   :  { %4944 = vmatmul.mubr.bf16.vlgmr.msra.gmra.mxu0 %v5261_v26 }
 0x261   :  { %4947 = vmatprep.mubr.bf16.mxu0 %v5262_v27  ;;  %4960 = vmatpush3.bf16.msra.mxu0 %v5268_v36 }
 0x262   :  { %4961 = vmatprep.subr.bf16.mxu0 %v5269_v37 }
 0x265   :  { %4962 = vmatpush3.bf16.msra.mxu0 %v5269_v37 }
 0x266   :  { %4963 = vmatprep.subr.bf16.mxu0 %v5270_v38 }
 0x268   :  { %4948 = vmatmul.mubr.bf16.gmra.mxu0 %v5263_v29 }
 0x269   :  { %4951 = vmatprep.mubr.bf16.mxu0 %v5264_v31  ;;  %4964 = vmatpush3.bf16.msra.mxu0 %v5270_v38 }
 0x26a   :  { %4965 = vmatprep.subr.bf16.mxu0 %v5271_v40 }
 0x26d   :  { %4966 = vmatpush3.bf16.msra.mxu0 %v5271_v40 }
 0x26e   :  { %4967 = vmatprep.subr.bf16.mxu0 %v5272_v41 }
 0x270   :  { %4952 = vmatmul.mubr.bf16.gmra.mxu0 %v5265_v32 }
 0x271   :  { %4955 = vmatprep.mubr.bf16.mxu0 %v5266_v1  ;;  %4968 = vmatpush3.bf16.msra.mxu0 %v5272_v41 }
 0x272   :  { %4969 = vmatprep.subr.bf16.mxu0 %v5273_v47 }
 0x275   :  { %4970 = vmatpush3.bf16.msra.mxu0 %v5273_v47 }
 0x276   :  { %4971 = vmatprep.subr.bf16.mxu0 %v5274_v56 }
 0x278   :  { %4956 = vmatmul.mubr.bf16.gmra.mxu0 %v5267_v33 }
 0x279   :  { %4972 = vmatpush3.bf16.msra.mxu0 %v5274_v56 }
 0x27a   :  { %4973 = vmatprep.subr.bf16.mxu0 %v5275_v5 }
 0x27d   :  { %4974 = vmatpush3.bf16.msra.mxu0 %v5275_v5 }
 0x27e   :  { %5011 = vmatprep.subr.bf16.mxu0 %v5972_v17 }
 0x291   :  { %v4596_v42 = vpop.f32.mrf.mxu0 }
 0x293   :  { %v4597_v45 = vpop.f32.mrf.mxu0 }
 0x294   :  { %v4598_v46 = vadd.f32 %v4597_v45, %v4596_v42 }
 0x295   :  { %v4599_v39 = vpop.f32.mrf.mxu0 }
 0x296   :  { %v2544_v53 = vadd.f32 %v4598_v46, %v5957_v48 }
 0x297   :  { %v4600_v19 = vpop.f32.mrf.mxu0 }
 0x298   :  { %v4660_v49 = vpop.f32.mrf.mxu1  ;;  %v4601_v54 = vadd.f32 %v4600_v19, %v4599_v39 }
 0x29a   :  { %v4661_v51 = vpop.f32.mrf.mxu1  ;;  %v2547_v0 = vadd.f32 %v4601_v54, %v5957_v48 }
 0x29b   :  { %v4662_v55 = vadd.f32 %v4661_v51, %v4660_v49 }
 0x29c   :  { %v4602_v57 = vpop.f32.mrf.mxu0  ;;  %v4663_v58 = vpop.f32.mrf.mxu1 }
 0x29d   :  { %v5963_v59 = vadd.f32 %v4662_v55, %v2544_v53 }
 0x29e   :  { %v4603_v61 = vpop.f32.mrf.mxu0  ;;  %v4664_v63 = vpop.f32.mrf.mxu1 }
 0x29f   :  { %v4604_v2 = vadd.f32 %v4603_v61, %v4602_v57  ;;  %v4665_v3 = vadd.f32 %v4664_v63, %v4663_v58 }
 0x2a0   :  { %v4605_v6 = vpop.f32.mrf.mxu0 }
 0x2a1   :  { %v5969_v8 = vadd.f32 %v4665_v3, %v2547_v0  ;;  %v2552_v11 = vadd.f32 %v4604_v2, %v5957_v48 }
 0x2a2   :  { %v4606_v9 = vpop.f32.mrf.mxu0 }
 0x2a3   :  { %v4666_v7 = vpop.f32.mrf.mxu1  ;;  %v4607_v14 = vadd.f32 %v4606_v9, %v4605_v6 }
 0x2a5   :  { %v4667_v10 = vpop.f32.mrf.mxu1  ;;  %v2555_v27 = vadd.f32 %v4607_v14, %v5957_v48 }
 0x2a6   :  { %v4668_v15 = vadd.f32 %v4667_v10, %v4666_v7 }
 0x2a7   :  { %v4608_v18 = vpop.f32.mrf.mxu0  ;;  %v4669_v21 = vpop.f32.mrf.mxu1 }
 0x2a8   :  { %v5975_v24 = vadd.f32 %v4668_v15, %v2552_v11 }
 0x2a9   :  { %v4609_v25 = vpop.f32.mrf.mxu0  ;;  %v4670_v26 = vpop.f32.mrf.mxu1 }
 0x2aa   :  { %v4610_v29 = vadd.f32 %v4609_v25, %v4608_v18  ;;  %v4671_v31 = vadd.f32 %v4670_v26, %v4669_v21  ;;  %v5276_v25 = vld [vmem:[%s6631_s9 + $0x38] sm:$0xff]  }
 0x2ab   :  { %v4611_v32 = vpop.f32.mrf.mxu0  ;;  %4992 = vmatpush3.bf16.msra.mxu1 %v5276_v25 }
 0x2ac   :  { %v5978_v33 = vadd.f32 %v4671_v31, %v2555_v27  ;;  %v2560_v38 = vadd.f32 %v4610_v29, %v5957_v48  ;;  %4993 = vmatprep.subr.bf16.mxu1 %v5972_v17 }
 0x2ad   :  { %v4612_v36 = vpop.f32.mrf.mxu0 }
 0x2ae   :  { %v4672_v1 = vpop.f32.mrf.mxu1  ;;  %v4613_v40 = vadd.f32 %v4612_v36, %v4611_v32 }
 0x2b0   :  { %v4673_v37 = vpop.f32.mrf.mxu1  ;;  %v2563_v49 = vadd.f32 %v4613_v40, %v5957_v48 }
 0x2b1   :  { %v4674_v41 = vadd.f32 %v4673_v37, %v4672_v1 }
 0x2b2   :  { %v4614_v42 = vpop.f32.mrf.mxu0  ;;  %v4675_v45 = vpop.f32.mrf.mxu1 }
 0x2b3   :  { %v5981_v46 = vadd.f32 %v4674_v41, %v2560_v38 }
 0x2b4   :  { %v4615_v47 = vpop.f32.mrf.mxu0  ;;  %v4676_v39 = vpop.f32.mrf.mxu1 }
 0x2b5   :  { %v4616_v19 = vadd.f32 %v4615_v47, %v4614_v42  ;;  %v4677_v51 = vadd.f32 %v4676_v39, %v4675_v45 }
 0x2b6   :  { %v4617_v53 = vpop.f32.mrf.mxu0 }
 0x2b7   :  { %v5984_v55 = vadd.f32 %v4677_v51, %v2563_v49  ;;  %v2568_v58 = vadd.f32 %v4616_v19, %v5957_v48 }
 0x2b8   :  { %v4678_v54 = vpop.f32.mrf.mxu1  ;;  %v4618_v56 = vpop.f32.mrf.mxu0 }
 0x2b9   :  { %v4619_v61 = vadd.f32 %v4618_v56, %v4617_v53 }
 0x2ba   :  { %v4679_v57 = vpop.f32.mrf.mxu1 }
 0x2bb   :  { %v4680_v63 = vadd.f32 %v4679_v57, %v4678_v54  ;;  %v4620_v0 = vpop.f32.mrf.mxu0  ;;  %v2571_v7 = vadd.f32 %v4619_v61, %v5957_v48 }
 0x2bc   :  { %v4681_v2 = vpop.f32.mrf.mxu1 }
 0x2bd   :  { %v5987_v3 = vadd.f32 %v4680_v63, %v2568_v58  ;;  %v4621_v5 = vpop.f32.mrf.mxu0 }
 0x2be   :  { %v4682_v6 = vpop.f32.mrf.mxu1  ;;  %v4622_v9 = vadd.f32 %v4621_v5, %v4620_v0 }
 0x2bf   :  { %v4683_v10 = vadd.f32 %v4682_v6, %v4681_v2  ;;  %v4623_v11 = vpop.f32.mrf.mxu0 }
 0x2c0   :  { %v2576_v26 = vadd.f32 %v4622_v9, %v5957_v48 }
 0x2c1   :  { %v4684_v14 = vpop.f32.mrf.mxu1  ;;  %v5990_v15 = vadd.f32 %v4683_v10, %v2571_v7  ;;  %v4624_v18 = vpop.f32.mrf.mxu0 }
 0x2c2   :  { %v4625_v27 = vadd.f32 %v4624_v18, %v4623_v11 }
 0x2c3   :  { %v4685_v21 = vpop.f32.mrf.mxu1 }
 0x2c4   :  { %v4686_v29 = vadd.f32 %v4685_v21, %v4684_v14  ;;  %v2579_v38 = vadd.f32 %v4625_v27, %v5957_v48 }
 0x2c5   :  { %v4626_v31 = vpop.f32.mrf.mxu0  ;;  %v4687_v32 = vpop.f32.mrf.mxu1 }
 0x2c6   :  { %v5996_v1 = vadd.f32 %v4686_v29, %v2576_v26 }
 0x2c7   :  { %v4627_v36 = vpop.f32.mrf.mxu0  ;;  %v4688_v37 = vpop.f32.mrf.mxu1 }
 0x2c8   :  { %6677 = vst [vmem:[#allocation30_spill] sm:$0xff] %v5996_v1  ;;  %v4628_v40 = vadd.f32 %v4627_v36, %v4626_v31  ;;  %v4689_v41 = vadd.f32 %v4688_v37, %v4687_v32 }
 0x2c9   :  { %v4629_v42 = vpop.f32.mrf.mxu0 }
 0x2ca   :  { %v6000_v47 = vadd.f32 %v4689_v41, %v2579_v38  ;;  %v2584_v19 = vadd.f32 %v4628_v40, %v5957_v48 }
 0x2cb   :  { %v4630_v39 = vpop.f32.mrf.mxu0 }
 0x2cc   :  { %v4690_v45 = vpop.f32.mrf.mxu1  ;;  %6678 = vst [vmem:[#allocation31_spill] sm:$0xff] %v6000_v47  ;;  %v4631_v51 = vadd.f32 %v4630_v39, %v4629_v42 }
 0x2ce   :  { %v4691_v49 = vpop.f32.mrf.mxu1  ;;  %v2587_v63 = vadd.f32 %v4631_v51, %v5957_v48 }
 0x2cf   :  { %v4692_v53 = vadd.f32 %v4691_v49, %v4690_v45 }
 0x2d0   :  { %v4632_v54 = vpop.f32.mrf.mxu0  ;;  %v4693_v56 = vpop.f32.mrf.mxu1 }
 0x2d1   :  { %v6003_v57 = vadd.f32 %v4692_v53, %v2584_v19 }
 0x2d2   :  { %v4633_v58 = vpop.f32.mrf.mxu0  ;;  %v4694_v61 = vpop.f32.mrf.mxu1 }
 0x2d3   :  { %6679 = vst [vmem:[#allocation32_spill] sm:$0xff] %v6003_v57  ;;  %v4634_v0 = vadd.f32 %v4633_v58, %v4632_v54  ;;  %v4695_v2 = vadd.f32 %v4694_v61, %v4693_v56 }
 0x2d4   :  { %v4635_v5 = vpop.f32.mrf.mxu0 }
 0x2d5   :  { %v6006_v7 = vadd.f32 %v4695_v2, %v2587_v63  ;;  %v2592_v11 = vadd.f32 %v4634_v0, %v5957_v48 }
 0x2d6   :  { %v4696_v6 = vpop.f32.mrf.mxu1  ;;  %v4636_v9 = vpop.f32.mrf.mxu0 }
 0x2d7   :  { %6680 = vst [vmem:[#allocation33_spill] sm:$0xff] %v6006_v7  ;;  %v4637_v14 = vadd.f32 %v4636_v9, %v4635_v5 }
 0x2d8   :  { %v4697_v10 = vpop.f32.mrf.mxu1  ;;  %v4638_v21 = vpop.f32.mrf.mxu0 }
 0x2d9   :  { %v4698_v18 = vadd.f32 %v4697_v10, %v4696_v6  ;;  %v2595_v31 = vadd.f32 %v4637_v14, %v5957_v48 }
 0x2da   :  { %v4699_v25 = vpop.f32.mrf.mxu1  ;;  %v4639_v27 = vpop.f32.mrf.mxu0 }
 0x2db   :  { %v6009_v26 = vadd.f32 %v4698_v18, %v2592_v11  ;;  %v4640_v32 = vadd.f32 %v4639_v27, %v4638_v21 }
 0x2dc   :  { %v4700_v29 = vpop.f32.mrf.mxu1  ;;  %v4641_v37 = vpop.f32.mrf.mxu0 }
 0x2dd   :  { %6681 = vst [vmem:[#allocation34_spill] sm:$0xff] %v6009_v26  ;;  %v4701_v36 = vadd.f32 %v4700_v29, %v4699_v25  ;;  %v2600_v45 = vadd.f32 %v4640_v32, %v5957_v48 }
 0x2de   :  { %v4702_v38 = vpop.f32.mrf.mxu1  ;;  %v4642_v41 = vpop.f32.mrf.mxu0 }
 0x2df   :  { %v6012_v40 = vadd.f32 %v4701_v36, %v2595_v31  ;;  %v6015_v39 = vadd.f32 %v4642_v41, %v4641_v37 }
 0x2e0   :  { %v4703_v42 = vpop.f32.mrf.mxu1  ;;  %v4724_v51 = vpop.f32.mrf.mxu0 }
 0x2e1   :  { %6682 = vst [vmem:[#allocation35_spill] sm:$0xff] %v6012_v40  ;;  %6683 = vst [vmem:[#allocation36_spill] sm:$0xff] %v6015_v39  ;;  %v4704_v49 = vadd.f32 %v4703_v42, %v4702_v38 }
 0x2e2   :  { %v6017_v19 = vpop.f32.mrf.mxu1  ;;  %v4725_v56 = vpop.f32.mrf.mxu0 }
 0x2e3   :  { %6684 = vst [vmem:[#allocation37_spill] sm:$0xff] %v6017_v19  ;;  %v6019_v53 = vadd.f32 %v4704_v49, %v2600_v45  ;;  %v4726_v58 = vadd.f32 %v4725_v56, %v4724_v51 }
 0x2e4   :  { %v6021_v54 = vpop.f32.mrf.mxu1  ;;  %v4727_v61 = vpop.f32.mrf.mxu0 }
 0x2e5   :  { %6685 = vst [vmem:[#allocation38_spill] sm:$0xff] %v6019_v53  ;;  %6686 = vst [vmem:[#allocation39_spill] sm:$0xff] %v6021_v54  ;;  %v6024_v0 = vadd.f32 %v4726_v58, %v5963_v59 }
 0x2e6   :  { %v4788_v63 = vpop.f32.mrf.mxu1  ;;  %v4728_v2 = vpop.f32.mrf.mxu0 }
 0x2e8   :  { %v4789_v5 = vpop.f32.mrf.mxu1  ;;  %v4730_v6 = vpop.f32.mrf.mxu0 }
 0x2ea   :  { %v4791_v9 = vpop.f32.mrf.mxu1  ;;  %v4731_v10 = vpop.f32.mrf.mxu0 }
 0x2eb   :  { %v4732_v7 = vadd.f32 %v4731_v10, %v4730_v6 }
 0x2ec   :  { %v4792_v11 = vpop.f32.mrf.mxu1  ;;  %v4733_v14 = vpop.f32.mrf.mxu0 }
 0x2ee   :  { %v4794_v18 = vpop.f32.mrf.mxu1  ;;  %v4734_v21 = vpop.f32.mrf.mxu0 }
 0x2f0   :  { %v4795_v25 = vpop.f32.mrf.mxu1  ;;  %v4736_v27 = vpop.f32.mrf.mxu0 }
 0x2f1   :  { %v4796_v1 = vadd.f32 %v4795_v25, %v4794_v18 }
 0x2f2   :  { %v4797_v29 = vpop.f32.mrf.mxu1  ;;  %v4737_v31 = vpop.f32.mrf.mxu0 }
 0x2f4   :  { %v4798_v32 = vpop.f32.mrf.mxu1  ;;  %v6026_v36 = vpop.f32.mrf.mxu0 }
 0x2f6   :  { %v6028_v37 = vpop.f32.mrf.mxu1  ;;  %v6030_v59 = vpop.f32.mrf.mxu0 }
 0x2f8   :  { %v6032_v38 = vpop.f32.mrf.mxu1  ;;  %v4742_v41 = vpop.f32.mrf.mxu0 }
 0x2fa   :  { %v6034_v42 = vpop.f32.mrf.mxu1  ;;  %v4743_v45 = vpop.f32.mrf.mxu0 }
 0x2fb   :  { %v4744_v10 = vadd.f32 %v4743_v45, %v4742_v41  ;;  %v6700_v45 = vld [vmem:[#allocation32_spill] sm:$0xff] }
 0x2fc   :  { %v6036_v49 = vpop.f32.mrf.mxu1  ;;  %v4745_v51 = vpop.f32.mrf.mxu0 }
 0x2fe   :  { %v4806_v56 = vpop.f32.mrf.mxu1  ;;  %v4746_v58 = vpop.f32.mrf.mxu0 }
 0x300   :  { %v4807_v30 = vpop.f32.mrf.mxu1  ;;  %v6038_v12 = vpop.f32.mrf.mxu0 }
 0x302   :  { %v4809_v60 = vpop.f32.mrf.mxu1  ;;  %v6040_v44 = vpop.f32.mrf.mxu0 }
 0x304   :  { %v4810_v22 = vpop.f32.mrf.mxu1  ;;  %v6042_v4 = vpop.f32.mrf.mxu0 }
 0x306   :  { %v6044_v50 = vpop.f32.mrf.mxu1  ;;  %v6046_v35 = vpop.f32.mrf.mxu0 }
 0x308   :  { %v6048_v13 = vpop.f32.mrf.mxu1  ;;  %v6050_v62 = vpop.f32.mrf.mxu0 }
 0x30a   :  { %v6052_v52 = vpop.f32.mrf.mxu1  ;;  %v4755_v43 = vpop.f32.mrf.mxu0 }
 0x30b   :  { %6687 = vst [vmem:[#allocation40_spill] sm:$0xff] %v6052_v52  ;;  %v4735_v52 = vadd.f32 %v4734_v21, %v4733_v14 }
 0x30c   :  { %v6054_v23 = vpop.f32.mrf.mxu1  ;;  %v6056_v34 = vpop.f32.mrf.mxu0 }
 0x30d   :  { %6688 = vst [vmem:[#allocation41_spill] sm:$0xff] %v6054_v23 }
 0x30e   :  { %v6058_v28 = vpop.f32.mrf.mxu1  ;;  %v6060_v20 = vpop.f32.mrf.mxu0 }
 0x310   :  { %v6062_v16 = vpop.f32.mrf.mxu1  ;;  %v6064_v17 = vpop.f32.mrf.mxu0 }
 0x311   :  { %6689 = vst [vmem:[#allocation42_spill] sm:$0xff] %v6064_v17 }
 0x312   :  { %v6066_v40 = vpop.f32.mrf.mxu1  ;;  %v6068_v26 = vpop.f32.mrf.mxu0 }
 0x313   :  { %6690 = vst [vmem:[#allocation43_spill] sm:$0xff] %v6066_v40  ;;  %6691 = vst [vmem:[#allocation44_spill] sm:$0xff] %v6068_v26  ;;  %v4790_v40 = vadd.f32 %v4789_v5, %v4788_v63  ;;  %v4747_v63 = vadd.f32 %v4746_v58, %v4745_v51 }
 0x314   :  { %v6070_v53 = vpop.f32.mrf.mxu1  ;;  %v6072_v39 = vpop.f32.mrf.mxu0 }
 0x315   :  { %6692 = vst [vmem:[#allocation45_spill] sm:$0xff] %v6070_v53  ;;  %6693 = vst [vmem:[#allocation46_spill] sm:$0xff] %v6072_v39  ;;  %v4729_v53 = vadd.f32 %v4728_v2, %v4727_v61  ;;  %v2746_v39 = vadd.f32 %v4732_v7, %v5975_v24  ;;  %v2835_v18 = vadd.f32 %v4790_v40, %v6024_v0 }
 0x316   :  { %v6074_v48 = vpop.f32.mrf.mxu0  ;;  %v6076_v47 = vpop.f32.mrf.mxu1  ;;  %v4738_v61 = vadd.f32 %v4737_v31, %v4736_v27  ;;  %v4808_v7 = vadd.f32 %v4807_v30, %v4806_v56  ;;  %v2765_v30 = vadd.f32 %v4747_v63, %v5990_v15  ;;  %v4759_v15 = vadd.f32 %v6060_v20, %v6056_v34 }
 0x317   :  { %6694 = vst [vmem:[#allocation47_spill] sm:$0xff] %v6074_v48  ;;  %6695 = vst [vmem:[#allocation48_spill] sm:$0xff] %v6076_v47  ;;  %v4799_v48 = vadd.f32 %v4798_v32, %v4797_v29  ;;  %v2843_v6 = vadd.f32 %v4796_v1, %v2746_v39 }
 0x318   :  { %v6078_v54 = vpop.f32.mrf.mxu0  ;;  %v6082_v23 = vpop.f32.mrf.mxu1 }
 0x319   :  { %6696 = vst [vmem:[#allocation49_spill] sm:$0xff] %v6078_v54  ;;  %6698 = vst [vmem:[#allocation51_spill] sm:$0xff] %v6082_v23  ;;  %v4793_v54 = vadd.f32 %v4792_v11, %v4791_v9 }
 0x31a   :  { %v6080_v19 = vpop.f32.mrf.mxu0  ;;  %v6089_v57 = vpop.f32.mrf.mxu1  ;;  %v6701_v20 = vld [vmem:[#allocation43_spill] sm:$0xff] }
 0x31b   :  { %6697 = vst [vmem:[#allocation50_spill] sm:$0xff] %v6080_v19  ;;  %v2749_v19 = vadd.f32 %v4735_v52, %v5978_v33  ;;  %v4741_v52 = vadd.f32 %v6030_v59, %v6026_v36  ;;  %v4802_v33 = vadd.f32 %v6032_v38, %v6028_v37  ;;  %v4750_v36 = vadd.f32 %v6040_v44, %v6038_v12 }
 0x31c   :  { %v6084_v17 = vpop.f32.mrf.mxu0  ;;  %v6094_v2 = vpop.f32.mrf.mxu1  ;;  %v4820_v38 = vadd.f32 %v6062_v16, %v6058_v28  ;;  %v6702_v34 = vld [vmem:[#allocation45_spill] sm:$0xff]  ;;  %v6703_v28 = vld [vmem:[#allocation30_spill] sm:$0xff] }
 0x31d   :  { %6699 = vst [vmem:[#allocation52_spill] sm:$0xff] %v6084_v17  ;;  %v2741_v17 = vadd.f32 %v4729_v53, %v5969_v8  ;;  %v2846_v21 = vadd.f32 %v4799_v48, %v2749_v19  ;;  %v2762_v8 = vadd.f32 %v4744_v10, %v5987_v3  ;;  %v2754_v19 = vadd.f32 %v4738_v61, %v5981_v46  ;;  %v6705_v10 = vld [vmem:[#allocation41_spill] sm:$0xff] }
 0x31e   :  { %v6086_v26 = vpop.f32.mrf.mxu0  ;;  %v2757_v3 = vadd.f32 %v4741_v52, %v5984_v55  ;;  %v2770_v58 = vadd.f32 %v4750_v36, %v6703_v28  ;;  %v6717_v36 = vld [vmem:[#allocation46_spill] sm:$0xff] }
 0x31f   :  { %v2838_v9 = vadd.f32 %v4793_v54, %v2741_v17  ;;  %v4830_v17 = vpop.f32.mrf.mxu1  ;;  %v2859_v27 = vadd.f32 %v4808_v7, %v2762_v8  ;;  %v2851_v32 = vadd.f32 %v4802_v33, %v2754_v19  ;;  %v6708_v7 = vld [vmem:[#allocation39_spill] sm:$0xff]  ;;  %v6712_v19 = vld [vmem:[#allocation28_spill] sm:$0xff] }
 0x320   :  { %v4945_v47 = vpop.f32.mrf.mxu0  ;;  %v6710_v52 = vld [vmem:[#allocation49_spill] sm:$0xff] }
 0x321   :  { %v2940_v14 = vadd.f32 %v4945_v47, %v2843_v6  ;;  %v4811_v47 = vadd.f32 %v4810_v22, %v4809_v60  ;;  %v4756_v22 = vadd.f32 %v4755_v43, %v6050_v62  ;;  %v4831_v37 = vpop.f32.mrf.mxu1  ;;  %v4753_v62 = vadd.f32 %v6046_v35, %v6042_v4  ;;  %v6704_v6 = vld [vmem:[#allocation40_spill] sm:$0xff] }
 0x322   :  { %v2931_v23 = vpop.f32.mrf.mxu0  ;;  %v6711_v33 = vld [vmem:[#allocation50_spill] sm:$0xff] }
 0x323   :  { %v2932_v5 = vadd.f32 %v2931_v23, %v2835_v18  ;;  %v2996_v48 = vmax.f32 %v2940_v14, 0.0  ;;  %v4805_v23 = vadd.f32 %v6036_v49, %v6034_v42  ;;  %v2862_v46 = vadd.f32 %v4811_v47, %v2765_v30  ;;  %v6706_v18 = vld [vmem:[#allocation33_spill] sm:$0xff]  ;;  %v4833_v4 = vpop.f32.mrf.mxu1 }
 0x324   :  { %v4946_v24 = vpop.f32.mrf.mxu0  ;;  %v4814_v42 = vadd.f32 %v6048_v13, %v6044_v50  ;;  %v2778_v44 = vadd.f32 %v4756_v22, %v6700_v45  ;;  %v4823_v49 = vadd.f32 %v6702_v34, %v6701_v20  ;;  %v4817_v14 = vadd.f32 %v6705_v10, %v6704_v6 }
 0x325   :  { %v2943_v25 = vadd.f32 %v4946_v24, %v2846_v21  ;;  %v2994_v54 = vmax.f32 %v2932_v5, 0.0  ;;  %v2854_v43 = vadd.f32 %v4805_v23, %v2757_v3  ;;  %v2781_v35 = vadd.f32 %v4759_v15, %v6706_v18  ;;  %v6707_v24 = vld [vmem:[#allocation37_spill] sm:$0xff]  ;;  %v6713_v23 = vld [vmem:[#allocation36_spill] sm:$0xff]  ;;  %v4834_v3 = vpop.f32.mrf.mxu1  ;;  %v6718_v15 = vld [vmem:[#allocation47_spill] sm:$0xff] }
 0x326   :  { %v2934_v1 = vpop.f32.mrf.mxu0  ;;  %v2875_v63 = vadd.f32 %v4820_v38, %v2778_v44  ;;  %v4707_v5 = vadd.f32 %v6708_v7, %v6707_v24  ;;  %v4768_v8 = vadd.f32 %v6711_v33, %v6710_v52  ;;  %v2603_v30 = vadd.f32 %v6713_v23, %v6712_v19  ;;  %v6719_v38 = vld [vmem:[#allocation48_spill] sm:$0xff]  ;;  %v6724_v33 = vld [vmem:[#allocation29_spill] sm:$0xff] }
 0x327   :  { %v2997_v40 = vmax.f32 %v2943_v25, 0.0  ;;  %v2935_v39 = vadd.f32 %v2934_v1, %v2838_v9  ;;  %v6709_v25 = vld [vmem:[#allocation31_spill] sm:$0xff]  ;;  %v4835_v45 = vadd.f32 %v4834_v3, %v4833_v4  ;;  %v4829_v20 = vadd.f32 %v6094_v2, %v6089_v57  ;;  %v5277_v52 = vld [vmem:[%s6631_s9 + $0x30] sm:$0xff]   ;;  %5007 = vmatprep.mubr.msk.bf16.mxu1 %vm5390_vm0, %v6724_v33  ;;  %v5284_v19 = vld [vmem:[%s6633_s11 + $0x38] sm:$0xff]  }
 0x328   :  { %v4949_v53 = vpop.f32.mrf.mxu0  ;;  %v2773_v9 = vadd.f32 %v4753_v62, %v6709_v25  ;;  %4994 = vmatpush3.bf16.msra.mxu1 %v5277_v52  ;;  %v5285_v23 = vld [vmem:[%s6633_s11 + $0x30] sm:$0xff]  }
 0x329   :  { %v3011_v0 = vpack.c.bf16 %v2997_v40, %v2996_v48  ;;  %v2995_v11 = vmax.f32 %v2935_v39, 0.0  ;;  %v2956_v31 = vadd.f32 %v4949_v53, %v2859_v27  ;;  %v2867_v40 = vadd.f32 %v4814_v42, %v2770_v58  ;;  %v6714_v53 = vld [vmem:[#allocation42_spill] sm:$0xff]  ;;  %v6723_v58 = vld [vmem:[#allocation35_spill] sm:$0xff]  ;;  %4995 = vmatprep.subr.bf16.mxu1 %v6724_v33 }
 0x32a   :  { %v2947_v60 = vpop.f32.mrf.mxu0  ;;  %v2878_v39 = vadd.f32 %v4823_v49, %v2781_v35 }
 0x32b   :  { %v3010_v29 = vpack.c.bf16 %v2995_v11, %v2994_v54  ;;  %v2948_v41 = vadd.f32 %v2947_v60, %v2851_v32  ;;  %v3000_v51 = vmax.f32 %v2956_v31, 0.0  ;;  %v6715_v54 = vld [vmem:[#allocation44_spill] sm:$0xff]  ;;  %v4832_v60 = vadd.f32 %v4831_v37, %v4830_v17  ;;  %v6722_v17 = vld [vmem:[#allocation34_spill] sm:$0xff] }
 0x32c   :  { %v4950_v59 = vpop.f32.mrf.mxu0  ;;  %v6716_v11 = vld [vmem:[#allocation52_spill] sm:$0xff]  ;;  %v2870_v32 = vadd.f32 %v4817_v14, %v2773_v9 }
 0x32d   :  { %v2959_v55 = vadd.f32 %v4950_v59, %v2862_v46  ;;  %4975 = vmatprep.mubr.bf16.mxu0 %v3010_v29  ;;  %v2998_v13 = vmax.f32 %v2948_v41, 0.0  ;;  %v4771_v27 = vadd.f32 %v6086_v26, %v6716_v11  ;;  %v2700_v46 = vadd.f32 %v4707_v5, %v2603_v30  ;;  %v6720_v41 = vld [vmem:[#allocation51_spill] sm:$0xff] }
 0x32e   :  { %v2950_v12 = vpop.f32.mrf.mxu0  ;;  %4976 = vmatmul.mubr.bf16.vlgmr.msra.gmra.mxu0 %v3011_v0  ;;  %v4762_v0 = vadd.f32 %v6715_v54, %v6714_v53  ;;  %v4765_v59 = vadd.f32 %v6718_v15, %v6717_v36  ;;  %v5286_v30 = vld [vmem:[%s6633_s11 + $0x28] sm:$0xff]   ;;  %v5287_v53 = vld [vmem:[%s6633_s11 + $0x20] sm:$0xff]   ;;  %v5288_v54 = vld [vmem:[%s6633_s11 + $0x18] sm:$0xff]  }
 0x32f   :  { %v3001_v56 = vmax.f32 %v2959_v55, 0.0  ;;  %v2951_v16 = vadd.f32 %v2950_v12, %v2854_v43  ;;  %v4826_v55 = vadd.f32 %v6720_v41, %v6719_v38  ;;  %v6721_v43 = vld [vmem:[#allocation38_spill] sm:$0xff]  ;;  %v2797_v34 = vadd.f32 %v4771_v27, %v2700_v46  ;;  %5012 = vmatpush3.bf16.msra.mxu0 %v5284_v19  ;;  %v5290_v11 = vld [vmem:[%s6633_s11 + $0x8] sm:$0xff]  }
 0x330   :  { %v4953_v21 = vpop.f32.mrf.mxu0  ;;  %v2794_v62 = vadd.f32 %v4768_v8, %v6721_v43  ;;  %v2786_v37 = vadd.f32 %v4762_v0, %v6722_v17  ;;  %v2789_v6 = vadd.f32 %v4765_v59, %v6723_v58  ;;  %v5278_v8 = vld [vmem:[%s6631_s9 + $0x28] sm:$0xff]   ;;  %5013 = vmatprep.subr.bf16.mxu0 %v6724_v33  ;;  %v5289_v0 = vld [vmem:[%s6633_s11 + $0x10] sm:$0xff]  }
 0x331   :  { %v3013_v50 = vpack.c.bf16 %v3001_v56, %v3000_v51  ;;  %v2999_v61 = vmax.f32 %v2951_v16, 0.0  ;;  %v2972_v48 = vadd.f32 %v4953_v21, %v2875_v63  ;;  %v2894_v4 = vadd.f32 %v4835_v45, %v2797_v34  ;;  %4996 = vmatpush3.bf16.msra.mxu1 %v5278_v8 }
 0x332   :  { %v2963_v1 = vpop.f32.mrf.mxu0  ;;  %v2891_v28 = vadd.f32 %v4832_v60, %v2794_v62  ;;  %v2883_v35 = vadd.f32 %v4826_v55, %v2786_v37  ;;  %4997 = vmatprep.subr.bf16.mxu1 %v6724_v33  ;;  %v4381_v60 = vld [vmem:[%s6630_s8] ss:$0 sm:$0xff] }
 0x333   :  { %v3012_v47 = vpack.c.bf16 %v2999_v61, %v2998_v13  ;;  %v2964_v29 = vadd.f32 %v2963_v1, %v2867_v40  ;;  %v3004_v26 = vmax.f32 %v2972_v48, 0.0  ;;  %v2886_v61 = vadd.f32 %v4829_v20, %v2789_v6  ;;  %v5279_v1 = vld [vmem:[%s6631_s9 + $0x20] sm:$0xff]   ;;  %v5281_v48 = vld [vmem:[%s6631_s9 + $0x10] sm:$0xff]   ;;  %v5282_v40 = vld [vmem:[%s6631_s9 + $0x8] sm:$0xff]   ;;  %5014 = vmatpush3.bf16.msra.mxu0 %v5285_v23 }
 0x334   :  { %v4954_v22 = vpop.f32.mrf.mxu0  ;;  %5015 = vmatprep.subr.bf16.mxu0 %v6724_v33 }
 0x335   :  { %v2975_v31 = vadd.f32 %v4954_v22, %v2878_v39  ;;  %4979 = vmatprep.mubr.bf16.mxu0 %v3012_v47  ;;  %v3002_v51 = vmax.f32 %v2964_v29, 0.0  ;;  %4998 = vmatpush3.bf16.msra.mxu1 %v5279_v1  ;;  %v5280_v47 = vld [vmem:[%s6631_s9 + $0x18] sm:$0xff]   ;;  %v5283_v39 = vld [vmem:[%s6631_s9] sm:$0xff]  }
 0x336   :  { %v2966_v42 = vpop.f32.mrf.mxu0  ;;  %4980 = vmatmul.mubr.bf16.gmra.mxu0 %v3013_v50  ;;  %4999 = vmatprep.subr.bf16.mxu1 %v6724_v33 }
 0x337   :  { %v3005_v44 = vmax.f32 %v2975_v31, 0.0  ;;  %v2967_v12 = vadd.f32 %v2966_v42, %v2870_v32  ;;  %5016 = vmatpush3.bf16.msra.mxu0 %v5286_v30 }
 0x338   :  { %v4957_v49 = vpop.f32.mrf.mxu0  ;;  %5017 = vmatprep.subr.bf16.mxu0 %v6724_v33 }
 0x339   :  { %v3015_v56 = vpack.c.bf16 %v3005_v44, %v3004_v26  ;;  %v3003_v16 = vmax.f32 %v2967_v12, 0.0  ;;  %v2988_v18 = vadd.f32 %v4957_v49, %v2891_v28  ;;  %5000 = vmatpush3.bf16.msra.mxu1 %v5280_v47 }
 0x33a   :  { %v2979_v10 = vpop.f32.mrf.mxu0  ;;  %5001 = vmatprep.subr.bf16.mxu1 %v6724_v33 }
 0x33b   :  { %v3014_v14 = vpack.c.bf16 %v3003_v16, %v3002_v51  ;;  %v2980_v13 = vadd.f32 %v2979_v10, %v2883_v35  ;;  %v3008_v57 = vmax.f32 %v2988_v18, 0.0  ;;  %5018 = vmatpush3.bf16.msra.mxu0 %v5287_v53 }
 0x33c   :  { %v4958_v21 = vpop.f32.mrf.mxu0  ;;  %5019 = vmatprep.subr.bf16.mxu0 %v6724_v33 }
 0x33d   :  { %v2991_v50 = vadd.f32 %v4958_v21, %v2894_v4  ;;  %4983 = vmatprep.mubr.bf16.mxu0 %v3014_v14  ;;  %v3006_v7 = vmax.f32 %v2980_v13, 0.0  ;;  %5002 = vmatpush3.bf16.msra.mxu1 %v5281_v48 }
 0x33e   :  { %v2982_v63 = vpop.f32.mrf.mxu0  ;;  %4984 = vmatmul.mubr.bf16.gmra.mxu0 %v3015_v56  ;;  %5003 = vmatprep.subr.bf16.mxu1 %v6724_v33 }
 0x33f   :  { %v3009_v2 = vmax.f32 %v2991_v50, 0.0  ;;  %v2983_v24 = vadd.f32 %v2982_v63, %v2886_v61  ;;  %5020 = vmatpush3.bf16.msra.mxu0 %v5288_v54 }
 0x340   :  { %5021 = vmatprep.subr.bf16.mxu0 %v6724_v33 }
 0x341   :  { %v3017_v5 = vpack.c.bf16 %v3009_v2, %v3008_v57  ;;  %v3007_v25 = vmax.f32 %v2983_v24, 0.0  ;;  %5004 = vmatpush3.bf16.msra.mxu1 %v5282_v40 }
 0x342   :  { %5005 = vmatprep.subr.bf16.mxu1 %v6724_v33 }
 0x343   :  { %v3016_v9 = vpack.c.bf16 %v3007_v25, %v3006_v7  ;;  %5022 = vmatpush3.bf16.msra.mxu0 %v5289_v0 }
 0x344   :  { %5023 = vmatprep.subr.bf16.mxu0 %v6724_v33 }
 0x345   :  { %4987 = vmatprep.mubr.bf16.mxu0 %v3016_v9  ;;  %5006 = vmatpush3.bf16.msra.mxu1 %v5283_v39 }
 0x346   :  { %4988 = vmatmul.mubr.bf16.gmra.mxu0 %v3017_v5  ;;  %5031 = vmatprep.subr.bf16.mxu1 %v6724_v33 }
 0x347   :  { %5027 = vmatprep.mubr.msk.bf16.mxu0 %vm5390_vm0, %v6724_v33  ;;  %5024 = vmatpush3.bf16.msra.mxu0 %v5290_v11 }
 0x348   :  { %5025 = vmatprep.subr.bf16.mxu0 %v6724_v33 }
 0x3ee   :  { %v4977_v27 = vpop.f32.mrf.mxu0 }
 0x3ef   :  { %v6211_v36 = vadd.f32 %v4977_v27, %v4381_v60 }
 0x3f0   :  { %v3123_v3 = vpop.f32.mrf.mxu0 }
 0x3f1   :  { %v6207_v31 = vadd.f32 %v4381_v60, %v3123_v3 }
 0x3f2   :  { %v4978_v22 = vpop.f32.mrf.mxu0 }
 0x3f3   :  { %v6215_v38 = vadd.f32 %v4978_v22, %v4381_v60 }
 0x3f4   :  { %v3126_v29 = vpop.f32.mrf.mxu0 }
 0x3f5   :  { %v6209_v32 = vadd.f32 %v4381_v60, %v3126_v29  ;;  %v5291_v29 = vld [vmem:[%s6633_s11] sm:$0xff]  }
 0x3f6   :  { %v4981_v46 = vpop.f32.mrf.mxu0  ;;  %5026 = vmatpush3.bf16.msra.mxu0 %v5291_v29 }
 0x3f7   :  { %v3186_v15 = vadd.f32 %v6209_v32, %v6207_v31  ;;  %v6224_v12 = vadd.f32 %v4981_v46, %v4381_v60  ;;  %v4390_v46 = vld [vmem:[%s6632_s10] ss:$0 sm:$0xff] }
 0x3f8   :  { %v3139_v59 = vpop.f32.mrf.mxu0 }
 0x3f9   :  { %v3187_v41 = vadd.f32 %v3186_v15, %v6211_v36  ;;  %v6218_v43 = vadd.f32 %v4381_v60, %v3139_v59 }
 0x3fa   :  { %v4982_v55 = vpop.f32.mrf.mxu0 }
 0x3fb   :  { %v3188_v62 = vadd.f32 %v3187_v41, %v6215_v38  ;;  %v6227_v20 = vadd.f32 %v4982_v55, %v4381_v60 }
 0x3fc   :  { %v3142_v42 = vpop.f32.mrf.mxu0 }
 0x3fd   :  { %v3189_v45 = vadd.f32 %v3188_v62, %v6218_v43  ;;  %v6222_v26 = vadd.f32 %v4381_v60, %v3142_v42 }
 0x3fe   :  { %v4985_v44 = vpop.f32.mrf.mxu0 }
 0x3ff   :  { %v3190_v17 = vadd.f32 %v3189_v45, %v6222_v26  ;;  %v6235_v10 = vadd.f32 %v4985_v44, %v4381_v60 }
 0x400   :  { %v3155_v37 = vpop.f32.mrf.mxu0 }
 0x401   :  { %v3191_v34 = vadd.f32 %v3190_v17, %v6224_v12  ;;  %v6231_v28 = vadd.f32 %v4381_v60, %v3155_v37 }
 0x402   :  { %v4986_v49 = vpop.f32.mrf.mxu0 }
 0x403   :  { %v3192_v51 = vadd.f32 %v3191_v34, %v6227_v20  ;;  %v6239_v4 = vadd.f32 %v4986_v49, %v4381_v60 }
 0x404   :  { %v3158_v56 = vpop.f32.mrf.mxu0 }
 0x405   :  { %v3193_v16 = vrot.slane %v3192_v51, 4  ;;  %v6233_v58 = vadd.f32 %v4381_v60, %v3158_v56 }
 0x406   :  { %v4989_v6 = vpop.f32.mrf.mxu0 }
 0x407   :  { %v3199_v14 = vadd.f32 %v6233_v58, %v6231_v28  ;;  %v3194_v35 = vadd.f32 %v3193_v16, %v3192_v51  ;;  %v6248_v7 = vadd.f32 %v4989_v6, %v4381_v60  ;;  %v5391_v6 = vmov 1966171168  }
 0x408   :  { %v3171_v18 = vpop.f32.mrf.mxu0 }
 0x409   :  { %v3200_v21 = vadd.f32 %v3199_v14, %v6235_v10  ;;  %v6242_v50 = vadd.f32 %v4381_v60, %v3171_v18  ;;  %v3195_v57 = vrot.slane %v3194_v35, 2  ;;  %v3457_v14 = vunpack.c.l.s4 %v5391_v6 }
 0x40a   :  { %v4990_v13 = vpop.f32.mrf.mxu0 }
 0x40b   :  { %v3201_v61 = vadd.f32 %v3200_v21, %v6239_v4  ;;  %v3196_v25 = vadd.f32 %v3195_v57, %v3194_v35  ;;  %v6251_v9 = vadd.f32 %v4990_v13, %v4381_v60  ;;  %v3458_v18 = vunpack.c.0.s8 %v3457_v14  ;;  %v6725_v35 = vld [vmem:[#allocation11_spill] sm:$0xff]  ;;  %v5341_v57 = vld [vmem:[%s6626_s4] sm:$0x3] }
 0x40c   :  { %v3174_v63 = vpop.f32.mrf.mxu0  ;;  %v339_v13 = vsub.s32 0, %v6725_v35 }
 0x40d   :  { %v3202_v2 = vadd.f32 %v3201_v61, %v6242_v50  ;;  %v6246_v24 = vadd.f32 %v4381_v60, %v3174_v63  ;;  %v3197_v1 = vrot.slane %v3196_v25, 1  ;;  %v3461_v21 = vsub.s32 %v3458_v18, %v6725_v35 }
 0x40f   :  { %v3203_v5 = vadd.f32 %v3202_v2, %v6246_v24  ;;  %v3198_v40 = vadd.f32 %v3197_v1, %v3196_v25  ;;  %v6272_v2 = vrot.slane %v5341_v57, %v339_v13 }
 0x411   :  { %v3204_v52 = vadd.f32 %v3203_v5, %v6248_v7  ;;  %v3213_v23 = vmul.f32 0.015625, %v3198_v40  ;;  %v6728_v40 = vld [vmem:[#allocation15_spill] sm:$0xff] }
 0x413   :  { %v3205_v8 = vadd.f32 %v3204_v52, %v6251_v9  ;;  %v3215_v54 = vpack.c.bf16 %v3213_v23, %v3213_v23 }
 0x415   :  { %v3206_v47 = vrot.slane %v3205_v8, 4  ;;  %v3242_v27 = vunpack.c.l.b16 %v3215_v54  ;;  %v6729_v54 = vld [vmem:[#allocation13_spill] sm:$0xff] }
 0x417   :  { %v3207_v48 = vadd.f32 %v3206_v47, %v3205_v8  ;;  %v6726_v8 = vld [vmem:[#allocation12_spill] sm:$0xff]  ;;  %v6727_v47 = vld [vmem:[#allocation14_spill] sm:$0xff] }
 0x418   :  { %v462_v1 = vadd.f32 %v6726_v8, %v6272_v2 }
 0x419   :  { %v3208_v39 = vrot.slane %v3207_v48, 2 }
 0x41b   :  { %v3209_v19 = vadd.f32 %v3208_v39, %v3207_v48  ;;  %v472_v48 = vadd.f32 %v6727_v47, %v6272_v2  ;;  %v476_v39 = vadd.f32 %v6728_v40, %v6272_v2  ;;  %v6736_v47 = vld [vmem:[#allocation22_spill] sm:$0xff]  ;;  %v6737_v40 = vld [vmem:[#allocation23_spill] sm:$0xff] }
 0x41d   :  { %v3210_v30 = vrot.slane %v3209_v19, 1 }
 0x41f   :  { %v3211_v53 = vadd.f32 %v3210_v30, %v3209_v19 }
 0x421   :  { %v3214_v0 = vmul.f32 0.015625, %v3211_v53 }
 0x423   :  { %v3216_v11 = vpack.c.bf16 %v3214_v0, %v3214_v0  ;;  %v466_v0 = vadd.f32 %v6729_v54, %v6272_v2 }
 0x425   :  { %v3243_v3 = vunpack.c.l.b16 %v3216_v11 }
 0x427   :  { %v3245_v22 = vsel %vm3244_vm1, %v3243_v3, %v3242_v27 }
 0x428   :  { %v3246_v60 = vpack.c.b16 %v3245_v22, %v3245_v22 }
 0x42a   :  { %5008 = vmatmul.mubr.bf16.vlgmr.msra.gmra.mxu1 %v3246_v60 }
 0x42b   :  { %5047 = vmatprep.mubr.msk.bf16.mxu1 %vm5390_vm0, %v6724_v33  ;;  %v4399_v33 = vld [vmem:[%s6634_s12] ss:$0 sm:$0xff] }
 0x4ea   :  { %v3330_v15 = vpop.f32.mrf.mxu1 }
 0x4eb   :  { %v3331_v59 = vadd.f32 %v4390_v46, %v3330_v15 }
 0x4ec   :  { %v5009_v41 = vpop.f32.mrf.mxu1 }
 0x4ed   :  { %v3336_v55 = vmax.f32 %v3331_v59, 0.0 }
 0x4ee   :  { %v3333_v62 = vpop.f32.mrf.mxu1 }
 0x4ef   :  { %v3337_v42 = vpack.c.bf16 %v3336_v55, %v3336_v55 }
 0x4f0   :  { %v5010_v45 = vpop.f32.mrf.mxu1 }
 0x4f1   :  { %5028 = vmatmul.mubr.bf16.vlgmr.msra.gmra.mxu0 %v3337_v42 }
 0x5b1   :  { %v3443_v44 = vpop.f32.mrf.mxu0 }
 0x5b2   :  { %v3444_v17 = vadd.f32 %v4399_v33, %v3443_v44 }
 0x5b3   :  { %v5029_v37 = vpop.f32.mrf.mxu0 }
 0x5b4   :  { %v4408_v34 = vmul.f32 -1.442695, %v3444_v17  ;;  %v6732_v37 = vld [vmem:[#allocation18_spill] sm:$0xff] }
 0x5b5   :  { %v3446_v49 = vpop.f32.mrf.mxu0 }
 0x5b6   :  { %5300 = vpow2.f32 %v4408_v34  ;;  %v492_v34 = vadd.f32 %v6732_v37, %v6272_v2  ;;  %v6733_v49 = vld [vmem:[#allocation19_spill] sm:$0xff] }
 0x5b7   :  { %v5030_v51 = vpop.f32.mrf.mxu0 }
 0x5c3   :  { %v5301_v56 = vpop.eup %5300 }
 0x5c4   :  { %v3452_v16 = vadd.f32 1.0, %v5301_v56 }
 0x5c6   :  { %5302 = vrcp.f32 %v3452_v16 }
 0x5d3   :  { %v5303_v61 = vpop.eup %5302 }
 0x5d4   :  { %v3462_v63 = vrot.slane %v5303_v61, %v3461_v21  ;;  %v6735_v61 = vld [vmem:[#allocation21_spill] sm:$0xff] }
 0x5d6   :  { %v3463_v5 = vcombine.high %v3462_v63, %v3462_v63  ;;  %v3470_v25 = vrot.slane %v3462_v63, %v3461_v21  ;;  %v506_v63 = vadd.f32 %v6735_v61, %v6272_v2 }
 0x5d8   :  { %v3481_v52 = vrot.slane %v3470_v25, %v339_v13  ;;  %v3477_v19 = vrot.slane %v3463_v5, %v3461_v21  ;;  %v6734_v21 = vld [vmem:[#allocation20_spill] sm:$0xff] }
 0x5da   :  { %v3490_v23 = vmul.f32 %v3481_v52, %v6211_v36  ;;  %v3488_v30 = vmul.f32 %v3481_v52, %v6207_v31  ;;  %v3491_v53 = vmul.f32 %v3481_v52, %v6215_v38  ;;  %v3489_v11 = vmul.f32 %v3481_v52, %v6209_v32  ;;  %v6730_v36 = vld [vmem:[#allocation16_spill] sm:$0xff]  ;;  %v6731_v38 = vld [vmem:[#allocation17_spill] sm:$0xff]  ;;  %v6301_v32 = vld [vmem:[%s6635_s13] ss:$0 sm:$0xff] }
 0x5db   :  { %v3493_v27 = vmul.f32 %v3481_v52, %v6222_v26  ;;  %v3492_v3 = vmul.f32 %v3481_v52, %v6218_v43  ;;  %v482_v31 = vadd.f32 %v6730_v36, %v6272_v2  ;;  %v486_v46 = vadd.f32 %v6731_v38, %v6272_v2 }
 0x5dc   :  { %v6288_v22 = vadd.f32 %v3490_v23, %v472_v48  ;;  %v6290_v60 = vadd.f32 %v3488_v30, %v462_v1  ;;  %v6292_v29 = vadd.f32 %v3491_v53, %v476_v39  ;;  %v6303_v26 = vadd.f32 %v3489_v11, %v466_v0  ;;  %v6738_v11 = vld [vmem:[#allocation24_spill] sm:$0xff] }
 0x5dd   :  { %v3485_v43 = vrot.slane %v3477_v19, %v339_v13  ;;  %v6307_v41 = vadd.f32 %v3493_v27, %v486_v46  ;;  %v6309_v55 = vadd.f32 %v3492_v3, %v482_v31  ;;  %v3495_v62 = vmul.f32 %v3481_v52, %v6227_v20  ;;  %v6739_v3 = vld [vmem:[#allocation25_spill] sm:$0xff] }
 0x5de   :  { %v3522_v15 = vmax.f32 %v6288_v22, 0.0  ;;  %v3520_v59 = vmax.f32 %v6290_v60, 0.0  ;;  %v3494_v42 = vmul.f32 %v3481_v52, %v6224_v12  ;;  %v3523_v44 = vmax.f32 %v6292_v29, 0.0 }
 0x5df   :  { %v3521_v17 = vmax.f32 %v6303_v26, 0.0  ;;  %v496_v20 = vadd.f32 %v6733_v49, %v6272_v2  ;;  %v3525_v12 = vmax.f32 %v6307_v41, 0.0  ;;  %v3524_v51 = vmax.f32 %v6309_v55, 0.0 }
 0x5e0   :  { %v3545_v45 = vmul.f32 %v6301_v32, %v3522_v15  ;;  %v3543_v33 = vmul.f32 %v6301_v32, %v3520_v59  ;;  %v6329_v16 = vadd.f32 %v3494_v42, %v492_v34  ;;  %v3546_v6 = vmul.f32 %v6301_v32, %v3523_v44  ;;  %v6741_v34 = vld [vmem:[#allocation27_spill] sm:$0xff] }
 0x5e1   :  { %v6327_v56 = vadd.f32 %v3495_v62, %v496_v20  ;;  %v3544_v14 = vmul.f32 %v6301_v32, %v3521_v17  ;;  %v3497_v18 = vmul.f32 %v3485_v43, %v6233_v58  ;;  %v3496_v35 = vmul.f32 %v3485_v43, %v6231_v28 }
 0x5e2   :  { %3563 = vadd.xlane.f32.xlu1 %v3545_v45  ;;  %3559 = vadd.xlane.f32.xlu0 %v3543_v33  ;;  %v502_v13 = vadd.f32 %v6734_v21, %v6272_v2  ;;  %v3548_v57 = vmul.f32 %v6301_v32, %v3525_v12  ;;  %v3547_v5 = vmul.f32 %v6301_v32, %v3524_v51  ;;  %v6651_v28 = vmax.f32 %v6329_v16, 0.0  ;;  %v6740_v33 = vld [vmem:[#allocation26_spill] sm:$0xff] }
 0x5e3   :  { %v6648_v58 = vmax.f32 %v6327_v56, 0.0  ;;  %v6351_v25 = vadd.f32 %v3497_v18, %v506_v63  ;;  %v3499_v8 = vmul.f32 %v3485_v43, %v6239_v4  ;;  %v3498_v1 = vmul.f32 %v3485_v43, %v6235_v10 }
 0x5e4   :  { %v6353_v52 = vadd.f32 %v3496_v35, %v502_v13  ;;  %v512_v48 = vadd.f32 %v6736_v47, %v6272_v2  ;;  %v516_v39 = vadd.f32 %v6737_v40, %v6272_v2  ;;  %v3549_v23 = vmul.f32 %v6301_v32, %v6651_v28 }
 0x5e5   :  { %v3550_v19 = vmul.f32 %v6301_v32, %v6648_v58  ;;  %v3501_v4 = vmul.f32 %v3485_v43, %v6246_v24  ;;  %v3500_v10 = vmul.f32 %v3485_v43, %v6242_v50  ;;  %v3529_v30 = vmax.f32 %v6351_v25, 0.0 }
 0x5e6   :  { %3565 = vadd.xlane.f32.xlu1 %v3546_v6  ;;  %3561 = vadd.xlane.f32.xlu0 %v3544_v14  ;;  %v3528_v53 = vmax.f32 %v6353_v52, 0.0  ;;  %v6371_v54 = vadd.f32 %v3499_v8, %v516_v39  ;;  %v6373_v0 = vadd.f32 %v3498_v1, %v512_v48  ;;  %v522_v27 = vadd.f32 %v6738_v11, %v6272_v2 }
 0x5e7   :  { %v526_v36 = vadd.f32 %v6739_v3, %v6272_v2  ;;  %v3503_v50 = vmul.f32 %v3485_v43, %v6251_v9  ;;  %v3502_v38 = vmul.f32 %v3485_v43, %v6248_v7  ;;  %v3552_v46 = vmul.f32 %v6301_v32, %v3529_v30 }
 0x5e8   :  { %v6381_v24 = vadd.f32 %v3500_v10, %v522_v27  ;;  %v3551_v62 = vmul.f32 %v6301_v32, %v3528_v53  ;;  %v3531_v42 = vmax.f32 %v6371_v54, 0.0  ;;  %v3530_v45 = vmax.f32 %v6373_v0, 0.0 }
 0x5e9   :  { %v6379_v31 = vadd.f32 %v3501_v4, %v526_v36  ;;  %v532_v37 = vadd.f32 %v6740_v33, %v6272_v2  ;;  %v536_v9 = vadd.f32 %v6741_v34, %v6272_v2  ;;  %v6742_v55 = vmax.f32 %v6329_v16, 0.0 }
 0x5ea   :  { %3569 = vadd.xlane.f32.xlu1 %v3548_v57  ;;  %3567 = vadd.xlane.f32.xlu0 %v3547_v5  ;;  %v3554_v49 = vmul.f32 %v6301_v32, %v3531_v42  ;;  %v3553_v20 = vmul.f32 %v6301_v32, %v3530_v45  ;;  %v3532_v14 = vmax.f32 %v6381_v24, 0.0  ;;  %v4410_v5 = vld [vmem:[#allocation4] ss:$0 sm:$0xff] }
 0x5eb   :  { %v6397_v7 = vadd.f32 %v3503_v50, %v536_v9  ;;  %v6399_v43 = vadd.f32 %v3502_v38, %v532_v37  ;;  %v3533_v6 = vmax.f32 %v6379_v31, 0.0 }
 0x5ec   :  { %v3555_v18 = vmul.f32 %v6301_v32, %v3532_v14 }
 0x5ed   :  { %v3556_v2 = vmul.f32 %v6301_v32, %v3533_v6  ;;  %v6649_v35 = vmax.f32 %v6397_v7, 0.0  ;;  %v6650_v21 = vmax.f32 %v6399_v43, 0.0  ;;  %v6744_v24 = vmax.f32 %v6397_v7, 0.0 }
 0x5ee   :  { %3573 = vadd.xlane.f32.xlu1 %v3550_v19  ;;  %3571 = vadd.xlane.f32.xlu0 %v3549_v23 }
 0x5ef   :  { %v3558_v13 = vmul.f32 %v6301_v32, %v6649_v35  ;;  %v3557_v61 = vmul.f32 %v6301_v32, %v6650_v21 }
 0x5f2   :  { %3577 = vadd.xlane.f32.xlu1 %v3552_v46  ;;  %3575 = vadd.xlane.f32.xlu0 %v3551_v62 }
 0x5f6   :  { %3581 = vadd.xlane.f32.xlu1 %v3554_v49  ;;  %3579 = vadd.xlane.f32.xlu0 %v3553_v20 }
 0x5fa   :  { %3585 = vadd.xlane.f32.xlu1 %v3556_v2  ;;  %3583 = vadd.xlane.f32.xlu0 %v3555_v18 }
 0x5fe   :  { %3589 = vadd.xlane.f32.xlu1 %v3558_v13  ;;  %3587 = vadd.xlane.f32.xlu0 %v3557_v61 }
 0x66b   :  { %v3564_v63 = vpop.xlane.xlu1 %3563  ;;  %v3560_v57 = vpop.xlane.xlu0 %3559 }
 0x66c   :  { %v6423_v8 = vadd.f32 %v4410_v5, %v3564_v63  ;;  %v6425_v1 = vadd.f32 %v4410_v5, %v3560_v57 }
 0x66e   :  { %v3617_v19 = vsel %vm3614_vm2, %v6423_v8, -inf  ;;  %v3615_v32 = vsel %vm3614_vm2, %v6425_v1, -inf }
 0x66f   :  { %v3566_v47 = vpop.xlane.xlu1 %3565  ;;  %v3562_v48 = vpop.xlane.xlu0 %3561  ;;  %v3618_v38 = vmax.f32 %v3615_v32, %v3617_v19 }
 0x670   :  { %v6427_v40 = vadd.f32 %v4410_v5, %v3566_v47  ;;  %v6429_v39 = vadd.f32 %v4410_v5, %v3562_v48 }
 0x672   :  { %v3619_v10 = vsel %vm3614_vm2, %v6427_v40, -inf  ;;  %v3616_v11 = vsel %vm3614_vm2, %v6429_v39, -inf }
 0x673   :  { %v3570_v23 = vpop.xlane.xlu1 %3569  ;;  %v3568_v4 = vpop.xlane.xlu0 %3567  ;;  %v3620_v46 = vmax.f32 %v3616_v11, %v3619_v10 }
 0x674   :  { %v6439_v27 = vadd.f32 %v4410_v5, %v3570_v23  ;;  %v6441_v3 = vadd.f32 %v4410_v5, %v3568_v4 }
 0x676   :  { %v3623_v36 = vsel %vm3614_vm2, %v6439_v27, -inf  ;;  %v3621_v50 = vsel %vm3614_vm2, %v6441_v3, -inf }
 0x677   :  { %v3574_v62 = vpop.xlane.xlu1 %3573  ;;  %v3572_v33 = vpop.xlane.xlu0 %3571  ;;  %v3624_v9 = vmax.f32 %v3620_v46, %v3623_v36  ;;  %v3622_v49 = vmax.f32 %v3618_v38, %v3621_v50 }
 0x678   :  { %v6447_v37 = vadd.f32 %v4410_v5, %v3574_v62  ;;  %v6449_v34 = vadd.f32 %v4410_v5, %v3572_v33 }
 0x67a   :  { %v3627_v20 = vsel %vm3614_vm2, %v6447_v37, -inf  ;;  %v3625_v2 = vsel %vm3614_vm2, %v6449_v34, -inf }
 0x67b   :  { %v3628_v18 = vmax.f32 %v3624_v9, %v3627_v20  ;;  %v3626_v13 = vmax.f32 %v3622_v49, %v3625_v2  ;;  %v3578_v61 = vpop.xlane.xlu1 %3577  ;;  %v3576_v63 = vpop.xlane.xlu0 %3575 }
 0x67c   :  { %v6457_v10 = vadd.f32 %v4410_v5, %v3578_v61  ;;  %v6463_v62 = vadd.f32 %v4410_v5, %v3576_v63 }
 0x67d   :  { %v3629_v57 = vmax.f32 %v3626_v13, %v3628_v18 }
 0x67e   :  { %v3637_v20 = vsel %vm3614_vm2, %v6457_v10, -inf }
 0x67f   :  { %v3630_v47 = vrot.slane %v3629_v57, 4  ;;  %v3582_v48 = vpop.xlane.xlu1 %3581  ;;  %v3580_v19 = vpop.xlane.xlu0 %3579 }
 0x680   :  { %v6455_v23 = vadd.f32 %v4410_v5, %v3582_v48  ;;  %v6459_v11 = vadd.f32 %v4410_v5, %v3580_v19  ;;  %v3636_v19 = vsel %vm3614_vm2, %v6463_v62, -inf }
 0x681   :  { %v3631_v32 = vmax.f32 %v3629_v57, %v3630_v47 }
 0x682   :  { %v3640_v33 = vsel %vm3614_vm2, %v6455_v23, -inf  ;;  %v3638_v2 = vsel %vm3614_vm2, %v6459_v11, -inf }
 0x683   :  { %v3632_v4 = vrot.slane %v3631_v32, 2  ;;  %v3586_v36 = vpop.xlane.xlu1 %3585  ;;  %v3584_v50 = vpop.xlane.xlu0 %3583  ;;  %v3641_v57 = vmax.f32 %v3637_v20, %v3640_v33 }
 0x684   :  { %v6461_v38 = vadd.f32 %v4410_v5, %v3586_v36  ;;  %v6467_v9 = vadd.f32 %v4410_v5, %v3584_v50 }
 0x685   :  { %v3633_v46 = vmax.f32 %v3631_v32, %v3632_v4  ;;  %v3639_v4 = vmax.f32 %v3636_v19, %v3638_v2 }
 0x686   :  { %v3644_v18 = vsel %vm3614_vm2, %v6461_v38, -inf  ;;  %v3642_v32 = vsel %vm3614_vm2, %v6467_v9, -inf }
 0x687   :  { %v3634_v49 = vrot.slane %v3633_v46, 1  ;;  %v3590_v13 = vpop.xlane.xlu1 %3589  ;;  %v3588_v61 = vpop.xlane.xlu0 %3587  ;;  %v3645_v36 = vmax.f32 %v3641_v57, %v3644_v18 }
 0x688   :  { %v6475_v63 = vadd.f32 %v4410_v5, %v3590_v13  ;;  %v6477_v47 = vadd.f32 %v4410_v5, %v3588_v61  ;;  %v3643_v13 = vmax.f32 %v3639_v4, %v3642_v32 }
 0x689   :  { %v3635_v48 = vmax.f32 %v3633_v46, %v3634_v49 }
 0x68a   :  { %v3648_v50 = vsel %vm3614_vm2, %v6475_v63, -inf  ;;  %v3646_v58 = vsel %vm3614_vm2, %v6477_v47, -inf }
 0x68b   :  { %v3657_v33 = vsub.f32 %v6425_v1, %v3635_v48  ;;  %v3658_v5 = vsub.f32 %v6429_v39, %v3635_v48  ;;  %v3659_v46 = vsub.f32 %v6423_v8, %v3635_v48  ;;  %v3660_v49 = vsub.f32 %v6427_v40, %v3635_v48 }
 0x68c   :  { %v3661_v20 = vsub.f32 %v6441_v3, %v3635_v48  ;;  %v3649_v57 = vmax.f32 %v3645_v36, %v3648_v50  ;;  %v3662_v19 = vsub.f32 %v6439_v27, %v3635_v48  ;;  %v3647_v21 = vmax.f32 %v3643_v13, %v3646_v58 }
 0x68d   :  { %v3673_v61 = vmul.f32 1.442695, %v3657_v33  ;;  %v3675_v2 = vmul.f32 1.442695, %v3658_v5  ;;  %v3677_v18 = vmul.f32 1.442695, %v3659_v46  ;;  %v3663_v1 = vsub.f32 %v6449_v34, %v3635_v48 }
 0x68e   :  { %v3679_v35 = vmul.f32 1.442695, %v3660_v49  ;;  %v3681_v39 = vmul.f32 1.442695, %v3661_v20  ;;  %v3650_v28 = vmax.f32 %v3647_v21, %v3649_v57  ;;  %v3664_v8 = vsub.f32 %v6447_v37, %v3635_v48 }
 0x68f   :  { %5304 = vpow2.f32 %v3673_v61  ;;  %v3683_v40 = vmul.f32 1.442695, %v3662_v19  ;;  %v3685_v32 = vmul.f32 1.442695, %v3663_v1 }
 0x690   :  { %5306 = vpow2.f32 %v3675_v2  ;;  %v3651_v3 = vrot.slane %v3650_v28, 4  ;;  %v3687_v36 = vmul.f32 1.442695, %v3664_v8 }
 0x691   :  { %5308 = vpow2.f32 %v3677_v18 }
 0x692   :  { %5310 = vpow2.f32 %v3679_v35  ;;  %v3652_v4 = vmax.f32 %v3650_v28, %v3651_v3 }
 0x693   :  { %5312 = vpow2.f32 %v3681_v39 }
 0x694   :  { %5314 = vpow2.f32 %v3683_v40  ;;  %v3653_v27 = vrot.slane %v3652_v4, 2 }
 0x695   :  { %5316 = vpow2.f32 %v3685_v32 }
 0x696   :  { %v3654_v58 = vmax.f32 %v3652_v4, %v3653_v27  ;;  %5318 = vpow2.f32 %v3687_v36 }
 0x698   :  { %v3655_v50 = vrot.slane %v3654_v58, 1 }
 0x69a   :  { %v3656_v33 = vmax.f32 %v3654_v58, %v3655_v50 }
 0x69c   :  { %v6495_v34 = vpop.eup %5304  ;;  %v3665_v48 = vsub.f32 %v6463_v62, %v3656_v33  ;;  %v3666_v5 = vsub.f32 %v6457_v10, %v3656_v33  ;;  %v3667_v46 = vsub.f32 %v6459_v11, %v3656_v33  ;;  %v3668_v13 = vsub.f32 %v6455_v23, %v3656_v33 }
 0x69d   :  { %v6497_v21 = vpop.eup %5306  ;;  %v3705_v35 = vsel %vm3614_vm2, %v6495_v34, 0.0  ;;  %v3669_v2 = vsub.f32 %v6467_v9, %v3656_v33  ;;  %v3670_v11 = vsub.f32 %v6461_v38, %v3656_v33  ;;  %v3671_v9 = vsub.f32 %v6477_v47, %v3656_v33 }
 0x69e   :  { %v6501_v37 = vpop.eup %5308  ;;  %v3706_v28 = vsel %vm3614_vm2, %v6497_v21, 0.0  ;;  %v3689_v19 = vmul.f32 1.442695, %v3665_v48  ;;  %v3691_v1 = vmul.f32 1.442695, %v3666_v5  ;;  %v3672_v36 = vsub.f32 %v6475_v63, %v3656_v33 }
 0x69f   :  { %v6508_v49 = vpop.eup %5310  ;;  %v3707_v20 = vadd.f32 %v3706_v28, %v3705_v35  ;;  %v3708_v61 = vsel %vm3614_vm2, %v6501_v37, 0.0  ;;  %v3693_v62 = vmul.f32 1.442695, %v3667_v46  ;;  %v3695_v39 = vmul.f32 1.442695, %v3668_v13 }
 0x6a0   :  { %v6514_v18 = vpop.eup %5312  ;;  %v3710_v10 = vsel %vm3614_vm2, %v6508_v49, 0.0  ;;  %5320 = vpow2.f32 %v3689_v19  ;;  %v3697_v3 = vmul.f32 1.442695, %v3669_v2  ;;  %v3699_v27 = vmul.f32 1.442695, %v3670_v11 }
 0x6a1   :  { %v3709_v57 = vadd.f32 %v3708_v61, %v3707_v20  ;;  %v6519_v8 = vpop.eup %5314  ;;  %v3712_v40 = vsel %vm3614_vm2, %v6514_v18, 0.0  ;;  %5322 = vpow2.f32 %v3691_v1  ;;  %v3701_v47 = vmul.f32 1.442695, %v3671_v9 }
 0x6a2   :  { %v6524_v32 = vpop.eup %5316  ;;  %5324 = vpow2.f32 %v3693_v62  ;;  %v3714_v38 = vsel %vm3614_vm2, %v6519_v8, 0.0  ;;  %v3703_v5 = vmul.f32 1.442695, %v3672_v36 }
 0x6a3   :  { %v3711_v23 = vadd.f32 %v3710_v10, %v3709_v57  ;;  %5326 = vpow2.f32 %v3695_v39  ;;  %v6529_v58 = vpop.eup %5318  ;;  %v3716_v35 = vsel %vm3614_vm2, %v6524_v32, 0.0 }
 0x6a4   :  { %5328 = vpow2.f32 %v3697_v3  ;;  %v3718_v48 = vsel %vm3614_vm2, %v6529_v58, 0.0 }
 0x6a5   :  { %v3713_v4 = vadd.f32 %v3712_v40, %v3711_v23  ;;  %5330 = vpow2.f32 %v3699_v27 }
 0x6a6   :  { %5332 = vpow2.f32 %v3701_v47 }
 0x6a7   :  { %v3715_v50 = vadd.f32 %v3714_v38, %v3713_v4  ;;  %5334 = vpow2.f32 %v3703_v5 }
 0x6a9   :  { %v3717_v28 = vadd.f32 %v3716_v35, %v3715_v50 }
 0x6ab   :  { %v3719_v46 = vadd.f32 %v3718_v48, %v3717_v28 }
 0x6ad   :  { %v3720_v20 = vrot.slane %v3719_v46, 4  ;;  %v5321_v33 = vpop.eup %5320 }
 0x6ae   :  { %v5323_v13 = vpop.eup %5322  ;;  %v3726_v2 = vsel %vm3614_vm2, %v5321_v33, 0.0 }
 0x6af   :  { %v3721_v63 = vadd.f32 %v3720_v20, %v3719_v46  ;;  %v5325_v57 = vpop.eup %5324  ;;  %v3727_v19 = vsel %vm3614_vm2, %v5323_v13, 0.0 }
 0x6b0   :  { %v6537_v1 = vpop.eup %5326  ;;  %v3728_v11 = vadd.f32 %v3727_v19, %v3726_v2  ;;  %v3729_v62 = vsel %vm3614_vm2, %v5325_v57, 0.0 }
 0x6b1   :  { %v3722_v61 = vrot.slane %v3721_v63, 2  ;;  %v5329_v39 = vpop.eup %5328  ;;  %v3731_v9 = vsel %vm3614_vm2, %v6537_v1, 0.0 }
 0x6b2   :  { %v3730_v40 = vadd.f32 %v3729_v62, %v3728_v11  ;;  %v5331_v3 = vpop.eup %5330  ;;  %v3733_v36 = vsel %vm3614_vm2, %v5329_v39, 0.0 }
 0x6b3   :  { %v3723_v10 = vadd.f32 %v3722_v61, %v3721_v63  ;;  %v5333_v27 = vpop.eup %5332  ;;  %v3735_v35 = vsel %vm3614_vm2, %v5331_v3, 0.0 }
 0x6b4   :  { %v3732_v38 = vadd.f32 %v3731_v9, %v3730_v40  ;;  %v5335_v47 = vpop.eup %5334  ;;  %v3737_v48 = vsel %vm3614_vm2, %v5333_v27, 0.0 }
 0x6b5   :  { %v3724_v23 = vrot.slane %v3723_v10, 1  ;;  %v3739_v46 = vsel %vm3614_vm2, %v5335_v47, 0.0 }
 0x6b6   :  { %v3734_v50 = vadd.f32 %v3733_v36, %v3732_v38 }
 0x6b7   :  { %v3725_v4 = vadd.f32 %v3724_v23, %v3723_v10 }
 0x6b8   :  { %v3736_v28 = vadd.f32 %v3735_v35, %v3734_v50 }
 0x6b9   :  { %5336 = vrcp.f32 %v3725_v4 }
 0x6ba   :  { %v3738_v5 = vadd.f32 %v3737_v48, %v3736_v28 }
 0x6bc   :  { %v3740_v20 = vadd.f32 %v3739_v46, %v3738_v5 }
 0x6be   :  { %v3741_v63 = vrot.slane %v3740_v20, 4 }
 0x6c0   :  { %v3742_v61 = vadd.f32 %v3741_v63, %v3740_v20 }
 0x6c2   :  { %v3743_v2 = vrot.slane %v3742_v61, 2 }
 0x6c4   :  { %v3744_v10 = vadd.f32 %v3743_v2, %v3742_v61 }
 0x6c6   :  { %v5337_v19 = vpop.eup %5336  ;;  %v3745_v23 = vrot.slane %v3744_v10, 1 }
 0x6c7   :  { %v3749_v11 = vmul.f32 %v5337_v19, %v6497_v21  ;;  %v3748_v62 = vmul.f32 %v5337_v19, %v6495_v34  ;;  %v3750_v4 = vmul.f32 %v5337_v19, %v6501_v37  ;;  %v3751_v50 = vmul.f32 %v5337_v19, %v6508_v49 }
 0x6c8   :  { %v3746_v38 = vadd.f32 %v3745_v23, %v3744_v10  ;;  %v3752_v28 = vmul.f32 %v5337_v19, %v6514_v18  ;;  %v3753_v34 = vmul.f32 %v5337_v19, %v6519_v8 }
 0x6c9   :  { %v3766_v40 = vadd.f32 1.0, %v3749_v11  ;;  %v3765_v9 = vadd.f32 1.0, %v3748_v62  ;;  %v3767_v36 = vadd.f32 1.0, %v3750_v4  ;;  %v3768_v35 = vadd.f32 1.0, %v3751_v50  ;;  %v5297_v4 = vld [vmem:[%s6637_s15 + $0x10] sm:$0xff]  }
 0x6ca   :  { %5338 = vrcp.f32 %v3746_v38  ;;  %v3769_v21 = vadd.f32 1.0, %v3752_v28  ;;  %v3770_v48 = vadd.f32 1.0, %v3753_v34  ;;  %v5298_v38 = vld [vmem:[%s6637_s15 + $0x8] sm:$0xff]  }
 0x6cb   :  { %3788 = vperm.xlu1 %5058, %v3766_v40   ;;  %3783 = vperm.xlu0 %5057, %v3765_v9   ;;  %v5293_v9 = vld [vmem:[%s6637_s15 + $0x30] sm:$0xff]  }
 0x6cf   :  { %3793 = vperm.xlu1 %5058, %v3767_v36   ;;  %v5299_v36 = vld [vmem:[%s6637_s15] sm:$0xff]  }
 0x6d3   :  { %3798 = vperm.xlu1 %5058, %v3768_v35  }
 0x6d7   :  { %3803 = vperm.xlu1 %5058, %v3769_v21   ;;  %v5339_v5 = vpop.eup %5338 }
 0x6d8   :  { %v3761_v37 = vmul.f32 %v5339_v5, %v5329_v39  ;;  %v3757_v46 = vmul.f32 %v5339_v5, %v5321_v33  ;;  %v3762_v63 = vmul.f32 %v5339_v5, %v5331_v3  ;;  %v3758_v2 = vmul.f32 %v5339_v5, %v5323_v13 }
 0x6d9   :  { %v3763_v10 = vmul.f32 %v5339_v5, %v5333_v27  ;;  %v3759_v18 = vmul.f32 %v5339_v5, %v5325_v57  ;;  %v3764_v8 = vmul.f32 %v5339_v5, %v5335_v47  ;;  %v3760_v40 = vmul.f32 %v5339_v5, %v6537_v1  ;;  %v5292_v47 = vld [vmem:[%s6637_s15 + $0x38] sm:$0xff]   ;;  %v5342_v1 = vld [vmem:[#allocation2] sm:$0xff] }
 0x6da   :  { %v3777_v20 = vadd.f32 1.0, %v3761_v37  ;;  %v3773_v61 = vadd.f32 1.0, %v3757_v46  ;;  %v3778_v49 = vadd.f32 1.0, %v3762_v63  ;;  %v3774_v11 = vadd.f32 1.0, %v3758_v2  ;;  %5032 = vmatpush3.bf16.msra.mxu1 %v5292_v47 }
 0x6db   :  { %3808 = vperm.xlu1 %5058, %v3770_v48   ;;  %v3779_v62 = vadd.f32 1.0, %v3763_v10  ;;  %v3775_v23 = vadd.f32 1.0, %v3759_v18  ;;  %v3780_v33 = vadd.f32 1.0, %v3764_v8  ;;  %v3776_v39 = vadd.f32 1.0, %v3760_v40  ;;  %5033 = vmatprep.subr.bf16.mxu1 %v5342_v1 }
 0x6dc   :  { %3843 = vperm.xlu0 %5057, %v3777_v20   ;;  %v3754_v3 = vmul.f32 %v5337_v19, %v6524_v32  ;;  %v3755_v27 = vmul.f32 %v5337_v19, %v6529_v58  ;;  %v5294_v32 = vld [vmem:[%s6637_s15 + $0x28] sm:$0xff]   ;;  %v5295_v58 = vld [vmem:[%s6637_s15 + $0x20] sm:$0xff]   ;;  %v5296_v19 = vld [vmem:[%s6637_s15 + $0x18] sm:$0xff]   ;;  %s5392_s15 = smov [#allocation7]  }
 0x6dd   :  { %s4047_s0 = sshll.u32 %s5392_s15, 4  ;;  %s4048_s0 = int_to_ptr.vmem [resolvable:$true] %s4047_s0 }
 0x6de   :  { %v3771_v13 = vadd.f32 1.0, %v3754_v3  ;;  %v3772_v57 = vadd.f32 1.0, %v3755_v27  ;;  %5034 = vmatpush3.bf16.msra.mxu1 %v5293_v9  ;;  %s5343_s8 = scalar_lea.vmem %s4048_s0, 32  ;;  %p5348_p1 = scmp.lt.s32.totalorder %s4048_s0, %s4048_s0 }
 0x6df   :  { %3823 = vperm.xlu1 %5058, %v3773_v61   ;;  %5035 = vmatprep.subr.bf16.mxu1 %v5342_v1  ;;  %p5344_p0 = scmp.ne.s32.totalorder %s4048_s0, %s5343_s8  ;;  %p5349_p2 = scmp.lt.s32.totalorder %s5343_s8, %s5343_s8 }
 0x6e0   :  { %3848 = vperm.xlu0 %5057, %v3778_v49  }
 0x6e1   :  { %p5350_p3 = por %p5349_p2, %p5348_p1 }
 0x6e2   :  { %5036 = vmatpush3.bf16.msra.mxu1 %v5294_v32 }
 0x6e3   :  { %3828 = vperm.xlu1 %5058, %v3774_v11   ;;  %5037 = vmatprep.subr.bf16.mxu1 %v5342_v1  ;;  %p5351_p4 = pnand %p5350_p3, %p5344_p0 }
 0x6e4   :  { %3853 = vperm.xlu0 %5057, %v3779_v62  }
 0x6e6   :  { %5038 = vmatpush3.bf16.msra.mxu1 %v5295_v58 }
 0x6e7   :  { %3833 = vperm.xlu1 %5058, %v3775_v23   ;;  %5039 = vmatprep.subr.bf16.mxu1 %v5342_v1 }
 0x6e8   :  { %3858 = vperm.xlu0 %5057, %v3780_v33  }
 0x6ea   :  { %5040 = vmatpush3.bf16.msra.mxu1 %v5296_v19 }
 0x6eb   :  { %3838 = vperm.xlu1 %5058, %v3776_v39   ;;  %5041 = vmatprep.subr.bf16.mxu1 %v5342_v1 }
 0x6ee   :  { %5042 = vmatpush3.bf16.msra.mxu1 %v5297_v4 }
 0x6ef   :  { %3813 = vperm.xlu1 %5058, %v3771_v13   ;;  %5043 = vmatprep.subr.bf16.mxu1 %v5342_v1  ;;  %v6745_v13 = vmax.f32 %v6327_v56, 0.0 }
 0x6f2   :  { %5044 = vmatpush3.bf16.msra.mxu1 %v5298_v38 }
 0x6f3   :  { %3818 = vperm.xlu1 %5058, %v3772_v57   ;;  %5045 = vmatprep.subr.bf16.mxu1 %v5342_v1 }
 0x6f6   :  { %5046 = vmatpush3.bf16.msra.mxu1 %v5299_v36 }
 0x746   :  { %v3789_v50 = vpop.permute.xlu1 %3788  ;;  %v3784_v34 = vpop.permute.xlu0 %3783 }
 0x747   :  { %v3862_v63 = vmul.f32 %v3789_v50, %v3521_v17  ;;  %v3861_v61 = vmul.f32 %v3784_v34, %v3520_v59 }
 0x749   :  { %v3877_v62 = vadd.f32 %v3862_v63, %v3861_v61 }
 0x74a   :  { %v3794_v35 = vpop.permute.xlu1 %3793 }
 0x74b   :  { %v3863_v10 = vmul.f32 %v3794_v35, %v3522_v15 }
 0x74d   :  { %v3878_v8 = vadd.f32 %v3877_v62, %v3863_v10 }
 0x74e   :  { %v3799_v28 = vpop.permute.xlu1 %3798 }
 0x74f   :  { %v3864_v26 = vmul.f32 %v3799_v28, %v3523_v44 }
 0x751   :  { %v3879_v15 = vadd.f32 %v3878_v8, %v3864_v26 }
 0x752   :  { %v3804_v21 = vpop.permute.xlu1 %3803 }
 0x753   :  { %v3865_v25 = vmul.f32 %v3804_v21, %v3524_v51 }
 0x755   :  { %v3880_v0 = vadd.f32 %v3879_v15, %v3865_v25 }
 0x756   :  { %v3809_v48 = vpop.permute.xlu1 %3808 }
 0x757   :  { %v3844_v5 = vpop.permute.xlu0 %3843  ;;  %v3866_v52 = vmul.f32 %v3809_v48, %v3525_v12 }
 0x759   :  { %v3881_v54 = vadd.f32 %v3880_v0, %v3866_v52 }
 0x75a   :  { %v3824_v37 = vpop.permute.xlu1 %3823 }
 0x75b   :  { %v3849_v20 = vpop.permute.xlu0 %3848  ;;  %v3869_v11 = vmul.f32 %v3824_v37, %v3528_v53  ;;  %v3873_v53 = vmul.f32 %v3844_v5, %v3532_v14 }
 0x75e   :  { %v3829_v46 = vpop.permute.xlu1 %3828 }
 0x75f   :  { %v3870_v2 = vmul.f32 %v3829_v46, %v3529_v30  ;;  %v3854_v60 = vpop.permute.xlu0 %3853 }
 0x761   :  { %v3890_v17 = vadd.f32 %v3870_v2, %v3869_v11 }
 0x762   :  { %v3834_v49 = vpop.permute.xlu1 %3833 }
 0x763   :  { %v3871_v18 = vmul.f32 %v3834_v49, %v3530_v45  ;;  %v3874_v45 = vmul.f32 %v3849_v20, %v3533_v6  ;;  %v3859_v40 = vpop.permute.xlu0 %3858 }
 0x764   :  { %v3876_v14 = vmul.f32 %v3859_v40, %v6744_v24 }
 0x765   :  { %v3891_v30 = vadd.f32 %v3890_v17, %v3871_v18 }
 0x766   :  { %v3839_v59 = vpop.permute.xlu1 %3838 }
 0x767   :  { %v3872_v22 = vmul.f32 %v3839_v59, %v3531_v42  ;;  %v6743_v42 = vmax.f32 %v6399_v43, 0.0 }
 0x769   :  { %v3892_v29 = vadd.f32 %v3891_v30, %v3872_v22  ;;  %v3875_v33 = vmul.f32 %v3854_v60, %v6743_v42 }
 0x76a   :  { %v3814_v44 = vpop.permute.xlu1 %3813 }
 0x76b   :  { %v3893_v23 = vadd.f32 %v3892_v29, %v3873_v53  ;;  %v3867_v51 = vmul.f32 %v3814_v44, %v6742_v55 }
 0x76d   :  { %v3894_v41 = vadd.f32 %v3893_v23, %v3874_v45  ;;  %v3882_v3 = vadd.f32 %v3881_v54, %v3867_v51 }
 0x76e   :  { %v3819_v12 = vpop.permute.xlu1 %3818 }
 0x76f   :  { %v3895_v39 = vadd.f32 %v3894_v41, %v3875_v33  ;;  %v3868_v31 = vmul.f32 %v3819_v12, %v6745_v13 }
 0x771   :  { %v3896_v6 = vadd.f32 %v3895_v39, %v3876_v14  ;;  %v3883_v27 = vadd.f32 %v3882_v3, %v3868_v31 }
 0x773   :  { %v3897_v57 = vrot.slane %v3896_v6, 4  ;;  %v3884_v16 = vrot.slane %v3883_v27, 4 }
 0x775   :  { %v3898_v47 = vadd.f32 %v3897_v57, %v3896_v6  ;;  %v3885_v1 = vadd.f32 %v3884_v16, %v3883_v27 }
 0x777   :  { %v3899_v9 = vrot.slane %v3898_v47, 2  ;;  %v3886_v32 = vrot.slane %v3885_v1, 2 }
 0x779   :  { %v3900_v43 = vadd.f32 %v3899_v9, %v3898_v47  ;;  %v3887_v58 = vadd.f32 %v3886_v32, %v3885_v1 }
 0x77b   :  { %v3901_v19 = vrot.slane %v3900_v43, 1  ;;  %v3888_v4 = vrot.slane %v3887_v58, 1 }
 0x77d   :  { %v3889_v38 = vadd.f32 %v3888_v4, %v3887_v58  ;;  %v3902_v7 = vadd.f32 %v3901_v19, %v3900_v43 }
 0x77f   :  { %v3903_v36 = vmul.f32 0.015625, %v3889_v38  ;;  %v3904_v50 = vmul.f32 0.015625, %v3902_v7 }
 0x781   :  { %v3910_v35 = vpack.c.bf16 %v3903_v36, %v3903_v36  ;;  %v3911_v28 = vpack.c.bf16 %v3904_v50, %v3904_v50  ;;  %v3907_v56 = vsel %vm3244_vm1, %v3904_v50, %v3903_v36 }
 0x782   :  { %3909 = vst [vmem:[#allocation7] sm:$0x3] %v3907_v56 }
 0x783   :  { %v3937_v21 = vunpack.c.l.b16 %v3910_v35  ;;  %v3938_v34 = vunpack.c.l.b16 %v3911_v28 }
 0x785   :  { %v3939_v48 = vsel %vm3244_vm1, %v3938_v34, %v3937_v21 }
 0x786   :  { %v3940_v5 = vpack.c.b16 %v3939_v48, %v3939_v48 }
 0x788   :  { %5048 = vmatmul.mubr.bf16.vlgmr.msra.gmra.mxu1 %v3940_v5 }
 0x789   :  { %5354 = shalt.err (!%p5351_p4)
}
 0x78a   :  { %4050 = dma.vmem_to_hbm [thread:$0]  %s4048_s0, 32, %s6640_s18, [#allocation8]   ;;  %v4411_v37 = vld [vmem:[%s6638_s16] ss:$0 sm:$0xff] }
 0x78b   :  { %s5393_s26 = smov [#allocation5]  }
 0x78c   :  { %s4037_s10 = sshll.u32 %s5393_s26, 4  ;;  %s4038_s10 = int_to_ptr.vmem [resolvable:$true] %s4037_s10 }
 0x78d   :  { %s5363_s11 = scalar_lea.vmem %s4038_s10, 32  ;;  %p5368_p6 = scmp.lt.s32.totalorder %s4038_s10, %s4038_s10 }
 0x78e   :  { %p5364_p5 = scmp.ne.s32.totalorder %s4038_s10, %s5363_s11  ;;  %p5369_p7 = scmp.lt.s32.totalorder %s5363_s11, %s5363_s11 }
 0x790   :  { %p5370_p8 = por %p5369_p7, %p5368_p6 }
 0x792   :  { %p5371_p9 = pnand %p5370_p8, %p5364_p5 }
 0x848   :  { %v4024_v46 = vpop.f32.mrf.mxu1 }
 0x849   :  { %v4025_v20 = vadd.f32 %v4411_v37, %v4024_v46 }
 0x84a   :  { %v5049_v63 = vpop.f32.mrf.mxu1 }
 0x84b   :  { %4030 = vst [vmem:[#allocation5] sm:$0x3] %v4025_v20 }
 0x84c   :  { %v4027_v61 = vpop.f32.mrf.mxu1 }
 0x84d   :  { %5374 = shalt.err (!%p5371_p9)
}
 0x84e   :  { %4040 = dma.vmem_to_hbm [thread:$0]  %s4038_s10, 32, %s6639_s17, [#allocation6]   ;;  %v5050_v2 = vpop.f32.mrf.mxu1 }
 0x84f   :  { %5383 = dma.done.wait [#allocation6], 32  }
 0x850   :  { %5384 = vsyncadd [#allocation6], 4294967264 }
 0x851   :  { %5385 = dma.done.wait [#allocation8], 32  }
 0x852   :  { %5386 = vsyncadd [#allocation8], 4294967264 }
 0x853   :  { %4057 = vsyncpa [#allocation6], 1 }
 0x854   :  { %4058 = vsyncpa [#allocation8], 1 }

</bundles_post_ra>
